<compile_context>
chip_gen: v7x
topology: tpu7x:2x2x1
jax: 0.10.0
libtpu: 0.0.40
codegen_flags: <defaults>
</compile_context>

<pallas_src>
import functools
import math

import jax
import jax.numpy as jnp
from jax.experimental import pallas as pl
from jax.experimental.pallas import tpu as pltpu


# --------------------------------------------------------------------------- #
# Kernel                                                                       #
# --------------------------------------------------------------------------- #
def _gate_kernel(x_ref, w_ref, gate_ref, idx_ref, stats_ref, *, k: int):
    w = w_ref[...]                       # (D, E)  resident across the grid
    x = x_ref[...]                       # (TS, D) streamed in its HBM dtype
    if x.dtype != w.dtype:
        # gate_in_fp32 path: torch does input.float() @ wg.weight.float();
        # cast the tile in VMEM so x still streams from HBM at half width.
        x = x.astype(w.dtype)

    # --- linear (no bias): logits = x @ W^T, f32 accumulation on the MXU ---
    logits = jnp.dot(x, w, preferred_element_type=jnp.float32)      # (TS, E)
    TS, E = logits.shape

    # --- iterative top-k over raw logits (softmax_before_topk=False) ---
    expert_iota = jax.lax.broadcasted_iota(jnp.int32, (TS, E), 1)
    work = logits
    mask = jnp.zeros((TS, E), jnp.float32)
    gate_cols, idx_cols = [], []
    for _ in range(k):
        mx = jnp.max(work, axis=-1, keepdims=True)                  # (TS, 1)
        # first occurrence on ties (matches torch.topk tie order)
        idx = jnp.min(jnp.where(work == mx, expert_iota, E),
                      axis=-1, keepdims=True)                       # (TS, 1) int32
        gate_cols.append(mx)
        idx_cols.append(idx)
        sel = expert_iota == idx
        mask = mask + sel.astype(jnp.float32)
        work = jnp.where(sel, -jnp.inf, work)

    # --- softmax over experts; reuse the top-1 logit max as the shift,
    #     exact reciprocal (feeds the l_aux loss; kernel is HBM-bound anyway) ---
    ex = jnp.exp(logits - gate_cols[0])
    scores = ex / jnp.sum(ex, axis=-1, keepdims=True)               # (TS, E) f32

    # --- lane-dense stores: (k, TS) blocks instead of (TS, k) masked writes ---
    gate_ref[...] = jnp.transpose(jnp.concatenate(gate_cols, axis=1))[None]
    idx_ref[...] = jnp.transpose(jnp.concatenate(idx_cols, axis=1))[None]

    # --- per-tile partial sums, lane-padded to a multiple of 128 ---
    row_scores = jnp.sum(scores, axis=0, keepdims=True)             # (1, E)
    row_mask = jnp.sum(mask, axis=0, keepdims=True)                 # (1, E)
    stats = jnp.concatenate([row_scores, row_mask], axis=0)         # (2, E)
    pad = stats_ref.shape[-1] - E
    if pad:
        stats = jnp.concatenate([stats, jnp.zeros((2, pad), jnp.float32)], axis=1)
    stats_ref[...] = stats[None]                                    # (1, 2, Epad)


# --------------------------------------------------------------------------- #
# Generation-aware tile / VMEM sizing                                          #
# --------------------------------------------------------------------------- #
def _round_up(v, m):
    return ((v + m - 1) // m) * m


def _vmem_capacity_bytes() -> int:
    try:
        info = pltpu.get_tpu_info()
        cap = getattr(info, "vmem_capacity_bytes", None)
        if cap:
            return int(cap)
    except Exception:
        pass
    return 64 << 20  # conservative fallback: v7x per-TensorCore VMEM


def _vmem_tile_bytes(ts, D, E, k, x_itemsize, gate_itemsize):
    """Rough per-grid-step VMEM footprint for an S-tile of `ts` tokens."""
    e_pad = _round_up(max(E, 128), 128)
    x_bufs = 2 * ts * D * x_itemsize                     # double-buffered x tile
    x_cast = ts * D * gate_itemsize if gate_itemsize != x_itemsize else 0
    w_bufs = 2 * D * E * gate_itemsize                   # weight (2 bufs, conservative)
    interm = 6 * ts * e_pad * 4                          # logits/ex/scores/work/mask/iota
    outs = 2 * (2 * ts * k * 4 + 2 * e_pad * 4)          # double-buffered outputs
    return x_bufs + x_cast + w_bufs + interm + outs


def _choose_tile_s(S, D, E, k, x_itemsize, gate_itemsize, vmem_cap):
    """Largest S-tile that divides S and fits ~70% of this generation's VMEM."""
    usable = int(0.70 * vmem_cap)
    hi = min(S, 4096)
    # Prefer multiples of 128 (lane-dense, packing friendly); fall back to
    # multiples of 16 (bf16 sublane packing -- never 8); finally a single block.
    for step in (128, 16):
        ts = (hi // step) * step
        while ts >= step:
            if S % ts == 0 and _vmem_tile_bytes(ts, D, E, k, x_itemsize,
                                                gate_itemsize) <= usable:
                return ts
            ts -= step
    return S


# --------------------------------------------------------------------------- #
# Wrapper                                                                      #
# --------------------------------------------------------------------------- #
def topk_gate_v2_forward(x, wg_weight, *, k=2, capacity_factor=1.0,
                         min_capacity=8, drop_tokens=True, tile_s=None,
                         gate_in_fp32=False):
    """Forward of TopKGatev2.

    Args:
      x:            [S, D] tokens (streamed in their own dtype, e.g. bf16).
      wg_weight:    [E, D] gate weight (torch.nn.Linear(model_dim, num_experts).weight).
      gate_in_fp32: if True, the gate matmul runs in f32 (bit-faithful to the
                    torch module's input.float() / weight.float()) at the cost
                    of a larger in-kernel VMEM footprint.

    Returns:
      (l_aux, indices, bin_ids, bins, expert_weights, tokens_per_expert)
    """
    S, D = x.shape
    E, D2 = wg_weight.shape
    assert D == D2 and k <= E

    # TODO(synk): noisy_gate_policy == 'Jitter' (multiplicative_jitter) not implemented.
    gate_dtype = jnp.float32 if gate_in_fp32 else x.dtype
    w_t = wg_weight.astype(gate_dtype).T                            # (D, E)

    x_item = jnp.dtype(x.dtype).itemsize
    g_item = jnp.dtype(gate_dtype).itemsize
    vmem_cap = _vmem_capacity_bytes()
    if tile_s is None:
        tile_s = _choose_tile_s(S, D, E, k, x_item, g_item, vmem_cap)
    assert S % tile_s == 0, (S, tile_s)
    num_tiles = S // tile_s
    e_pad = _round_up(max(E, 128), 128)

    est = _vmem_tile_bytes(tile_s, D, E, k, x_item, g_item)
    vmem_limit = int(min(0.92 * vmem_cap, max(1.5 * est, 32 << 20)))
    vmem_limit = max(vmem_limit, 16 << 20)

    cost = pl.CostEstimate(
        flops=2 * S * D * E,
        transcendentals=S * E,
        bytes_accessed=S * D * x_item + D * E * g_item
        + S * k * 8 + num_tiles * 2 * e_pad * 4)

    kernel = functools.partial(_gate_kernel, k=k)
    x_spec = pl.BlockSpec((tile_s, D), lambda i: (i, 0))            # x: tiled over S
    out_shapes = (
        jax.ShapeDtypeStruct((num_tiles, k, tile_s), jnp.float32),  # top_gate slab
        jax.ShapeDtypeStruct((num_tiles, k, tile_s), jnp.int32),    # top_idx slab
        jax.ShapeDtypeStruct((num_tiles, 2, e_pad), jnp.float32),   # per-tile partials
    )
    out_specs = (
        pl.BlockSpec((1, k, tile_s), lambda i: (i, 0, 0)),
        pl.BlockSpec((1, k, tile_s), lambda i: (i, 0, 0)),
        pl.BlockSpec((1, 2, e_pad), lambda i: (i, 0, 0)),
    )
    cparams = pltpu.CompilerParams(
        dimension_semantics=("parallel",),        # megacore-shardable on v7x
        vmem_limit_bytes=vmem_limit)

    def _call(w_pipeline_mode):
        if w_pipeline_mode is None:
            w_spec = pl.BlockSpec((D, E), lambda i: (0, 0))         # W: resident
        else:
            w_spec = pl.BlockSpec((D, E), lambda i: (0, 0),
                                  pipeline_mode=w_pipeline_mode)
        return pl.pallas_call(
            kernel,
            grid=(num_tiles,),
            out_shape=out_shapes,
            in_specs=[x_spec, w_spec],
            out_specs=out_specs,
            compiler_params=cparams,
            cost_estimate=cost,
        )(x, w_t)

    try:
        # W's block index never changes -> a single pipeline buffer suffices.
        gates, idxs, stats = _call(pl.Buffered(1))
    except Exception:
        # Older JAX without BlockSpec.pipeline_mode / Buffered(1): default buffering.
        gates, idxs, stats = _call(None)

    # --- reassemble lane-dense slabs into torch-shaped (S, k) outputs ---
    top_gate = jnp.transpose(gates, (0, 2, 1)).reshape(S, k)        # (S, k) f32
    top_idx = jnp.transpose(idxs, (0, 2, 1)).reshape(S, k)          # (S, k) int32

    # --- tiny final reductions (num_tiles x E) in plain JAX ---
    sum_scores = jnp.sum(stats[:, 0, :E], axis=0)                   # (E,)
    sum_mask = jnp.sum(stats[:, 1, :E], axis=0)                     # (E,)
    me = sum_scores / S
    ce = sum_mask / S
    # mean(me*ce) * E * E / k  ==  sum(me*ce) * E / k
    l_aux = jnp.sum(me * ce) * (float(E) / float(k))
    tokens_per_expert = sum_mask.astype(jnp.int32)                  # pre-drop histogram

    # expert_weights are the raw top-k LOGIT values: matches the provided spec
    # (softmax_before_topk=False -> top_gate taken from logits before softmax).
    expert_weights = top_gate.reshape(-1)                           # (S*k,)
    top_experts = top_idx.reshape(-1)

    # --- glue (no_grad bookkeeping in the reference) ---
    indices = jnp.argsort(top_experts, stable=True).astype(jnp.int32)
    bin_ids = top_experts[indices]
    bins = jnp.cumsum(tokens_per_expert, dtype=jnp.int32)
    if drop_tokens:
        # _capacity: ceil(num_tokens / num_experts * capacity_factor * k), min min_capacity.
        capacity = int(max(min_capacity,
                           math.ceil(S * capacity_factor * k / E)))
        # TODO(synk): indices_and_bins_and_drop / drop_policy='probs' internals are not
        # in the reference source; only the per-expert counts are clamped at capacity
        # (indices/bin_ids/expert_weights are not truncated).
        tokens_per_expert = jnp.minimum(tokens_per_expert, capacity)

    return l_aux, indices, bin_ids, bins, expert_weights, tokens_per_expert


# --------------------------------------------------------------------------- #
# Pure-JAX reference (same dtype path as the default kernel configuration)     #
# --------------------------------------------------------------------------- #
def _reference_forward(x, wg_weight, k):
    logits = jnp.dot(x, wg_weight.astype(x.dtype).T,
                     preferred_element_type=jnp.float32)
    scores = jax.nn.softmax(logits, axis=1)
    top_gate, top_idx = jax.lax.top_k(logits, k)
    S, E = logits.shape
    mask = jnp.zeros_like(scores).at[jnp.arange(S)[:, None], top_idx].set(1.0)
    me = jnp.mean(scores, axis=0)
    ce = jnp.mean(mask, axis=0)
    l_aux = jnp.mean(me * ce) * E * E / k
    tpe = jnp.sum(mask, axis=0).astype(jnp.int32)
    return l_aux, top_gate, top_idx, tpe


if __name__ == "__main__":
    # Small, deterministic example: 256 tokens, model_dim=128, 8 experts, k=2.
    # tile_s=128 forces a 2-step grid to exercise the tiled/partial-sum path.
    S, D, E, K = 256, 128, 8, 2
    key = jax.random.PRNGKey(0)
    kx, kw = jax.random.split(key)
    x = jax.random.normal(kx, (S, D), dtype=jnp.bfloat16)                 # module input
    # torch.nn.Linear(model_dim, num_experts).weight -> shape (E, D)
    wg_weight = (jax.random.uniform(kw, (E, D), dtype=jnp.float32) - 0.5) * (2.0 / (D ** 0.5))

    out = topk_gate_v2_forward(x, wg_weight, k=K, capacity_factor=1.0,
                               min_capacity=8, drop_tokens=True, tile_s=128)
    out = jax.block_until_ready(out)
    l_aux, indices, bin_ids, bins, expert_weights, tokens_per_expert = out

    # sanity check against pure-JAX reference
    ref_laux, ref_gate, ref_idx, ref_tpe = _reference_forward(x, wg_weight, K)
    capacity = max(8, math.ceil(S * 1.0 * K / E))                         # 64
    assert jnp.allclose(l_aux, ref_laux, rtol=1e-2, atol=1e-4), (l_aux, ref_laux)
    assert jnp.allclose(expert_weights, ref_gate.reshape(-1), rtol=1e-3, atol=1e-3)
    assert indices.shape == (S * K,)
    assert bool(jnp.all(bin_ids[1:] >= bin_ids[:-1]))
    assert bins.shape == (E,) and int(bins[-1]) == S * K
    assert int(jnp.sum(jnp.minimum(ref_tpe, capacity) != tokens_per_expert)) == 0

    # torch-faithful f32 gate-matmul path + generation-aware auto tile selection.
    out32 = jax.block_until_ready(
        topk_gate_v2_forward(x, wg_weight, k=K, capacity_factor=1.0,
                             min_capacity=8, drop_tokens=True, gate_in_fp32=True))
    assert out32[4].shape == (S * K,)
    assert jnp.allclose(out32[0], ref_laux, rtol=5e-2, atol=1e-3), (out32[0], ref_laux)

    print("KERNEL_OK")
</pallas_src>

<mosaic_0001>
module attributes {stable_mosaic.version = 11 : i64} {
  func.func @_gate_kernel(%arg0: i32, %arg1: memref<128x128xbf16, #tpu.memory_space<vmem>>, %arg2: memref<128x8xbf16, #tpu.memory_space<vmem>>, %arg3: memref<1x2x128xf32, #tpu.memory_space<vmem>>, %arg4: memref<1x2x128xi32, #tpu.memory_space<vmem>>, %arg5: memref<1x2x128xf32, #tpu.memory_space<vmem>>) attributes {dimension_semantics = [#tpu.dimension_semantics<parallel>], iteration_bounds = array<i64: 2>, scalar_prefetch = 0 : i64, scratch_operands = 0 : i64, tpu.core_type = #tpu.core_type<tc>, window_params = [{transform_indices = @transform_0, window_bounds = array<i64: 128, 128>}, {pipeline_mode = #tpu.pipeline_mode<synchronous>, transform_indices = @transform_1, window_bounds = array<i64: 128, 8>}, {transform_indices = @transform_2, window_bounds = array<i64: 1, 2, 128>}, {transform_indices = @transform_3, window_bounds = array<i64: 1, 2, 128>}, {transform_indices = @transform_4, window_bounds = array<i64: 1, 2, 128>}]} {
    %c0 = arith.constant 0 : index
    %c0_0 = arith.constant 0 : index
    %0 = vector.load %arg2[%c0, %c0_0] : memref<128x8xbf16, #tpu.memory_space<vmem>>, vector<128x8xbf16>
    %c0_1 = arith.constant 0 : index
    %c0_2 = arith.constant 0 : index
    %1 = vector.load %arg1[%c0_1, %c0_2] : memref<128x128xbf16, #tpu.memory_space<vmem>>, vector<128x128xbf16>
    %cst = arith.constant dense<0.000000e+00> : vector<128x8xf32>
    %2 = tpu.matmul %1, %0, %cst {dimension_numbers = #tpu.dot_dimension_numbers<[1], [0], [0], [1], [0, 0, 1, 1], [], []>} : vector<128x128xbf16>, vector<128x8xbf16>, vector<128x8xf32> -> vector<128x8xf32>
    %3 = tpu.iota {dimensions = array<i32: 1>} : vector<128x8xi32>
    %cst_3 = arith.constant 0.000000e+00 : f32
    %4 = vector.broadcast %cst_3 : f32 to vector<128x8xf32>
    %cst_4 = arith.constant dense<0xFF800000> : vector<128xf32>
    %5 = vector.multi_reduction <maximumf>, %2, %cst_4 [1] : vector<128x8xf32> to vector<128xf32>
    %6 = vector.shape_cast %5 : vector<128xf32> to vector<128x1xf32>
    %7 = vector.broadcast %6 : vector<128x1xf32> to vector<128x8xf32>
    %8 = arith.cmpf oeq, %2, %7 : vector<128x8xf32>
    %c8_i32 = arith.constant 8 : i32
    %9 = vector.broadcast %c8_i32 : i32 to vector<128x8xi32>
    %10 = arith.select %8, %3, %9 : vector<128x8xi1>, vector<128x8xi32>
    %cst_5 = arith.constant dense<2147483647> : vector<128xi32>
    %11 = vector.multi_reduction <minsi>, %10, %cst_5 [1] : vector<128x8xi32> to vector<128xi32>
    %12 = vector.shape_cast %11 : vector<128xi32> to vector<128x1xi32>
    %13 = vector.broadcast %12 : vector<128x1xi32> to vector<128x8xi32>
    %14 = arith.cmpi eq, %3, %13 : vector<128x8xi32>
    %15 = arith.extui %14 : vector<128x8xi1> to vector<128x8xi32>
    %16 = arith.sitofp %15 : vector<128x8xi32> to vector<128x8xf32>
    %17 = arith.addf %4, %16 : vector<128x8xf32>
    %cst_6 = arith.constant 0xFF800000 : f32
    %18 = vector.broadcast %cst_6 : f32 to vector<128x8xf32>
    %19 = arith.select %14, %18, %2 : vector<128x8xi1>, vector<128x8xf32>
    %cst_7 = arith.constant dense<0xFF800000> : vector<128xf32>
    %20 = vector.multi_reduction <maximumf>, %19, %cst_7 [1] : vector<128x8xf32> to vector<128xf32>
    %21 = vector.shape_cast %20 : vector<128xf32> to vector<128x1xf32>
    %22 = vector.broadcast %21 : vector<128x1xf32> to vector<128x8xf32>
    %23 = arith.cmpf oeq, %19, %22 : vector<128x8xf32>
    %c8_i32_8 = arith.constant 8 : i32
    %24 = vector.broadcast %c8_i32_8 : i32 to vector<128x8xi32>
    %25 = arith.select %23, %3, %24 : vector<128x8xi1>, vector<128x8xi32>
    %cst_9 = arith.constant dense<2147483647> : vector<128xi32>
    %26 = vector.multi_reduction <minsi>, %25, %cst_9 [1] : vector<128x8xi32> to vector<128xi32>
    %27 = vector.shape_cast %26 : vector<128xi32> to vector<128x1xi32>
    %28 = vector.broadcast %27 : vector<128x1xi32> to vector<128x8xi32>
    %29 = arith.cmpi eq, %3, %28 : vector<128x8xi32>
    %30 = arith.extui %29 : vector<128x8xi1> to vector<128x8xi32>
    %31 = arith.sitofp %30 : vector<128x8xi32> to vector<128x8xf32>
    %32 = arith.addf %17, %31 : vector<128x8xf32>
    %33 = vector.broadcast %6 : vector<128x1xf32> to vector<128x8xf32>
    %34 = arith.subf %2, %33 : vector<128x8xf32>
    %35 = math.exp %34 : vector<128x8xf32>
    %cst_10 = arith.constant dense<0.000000e+00> : vector<128xf32>
    %36 = vector.multi_reduction <add>, %35, %cst_10 [1] : vector<128x8xf32> to vector<128xf32>
    %37 = vector.shape_cast %36 : vector<128xf32> to vector<128x1xf32>
    %38 = vector.broadcast %37 : vector<128x1xf32> to vector<128x8xf32>
    %39 = arith.divf %35, %38 : vector<128x8xf32>
    %40 = tpu.concatenate %6, %21 in 1 : vector<128x1xf32>, vector<128x1xf32> -> vector<128x2xf32>
    %41 = tpu.transpose %40, [1, 0] : vector<128x2xf32> -> vector<2x128xf32>
    %42 = vector.shape_cast %41 : vector<2x128xf32> to vector<1x2x128xf32>
    %c0_11 = arith.constant 0 : index
    %c0_12 = arith.constant 0 : index
    %c0_13 = arith.constant 0 : index
    %43 = vector.load %arg3[%c0_11, %c0_12, %c0_13] : memref<1x2x128xf32, #tpu.memory_space<vmem>>, vector<1x2x128xf32>
    tpu.vector_store %arg3[%c0_11, %c0_12, %c0_13], %42 {strides = array<i32>} : memref<1x2x128xf32, #tpu.memory_space<vmem>>, vector<1x2x128xf32>,
    %44 = tpu.concatenate %12, %27 in 1 : vector<128x1xi32>, vector<128x1xi32> -> vector<128x2xi32>
    %45 = tpu.transpose %44, [1, 0] : vector<128x2xi32> -> vector<2x128xi32>
    %46 = vector.shape_cast %45 : vector<2x128xi32> to vector<1x2x128xi32>
    %c0_14 = arith.constant 0 : index
    %c0_15 = arith.constant 0 : index
    %c0_16 = arith.constant 0 : index
    %47 = vector.load %arg4[%c0_14, %c0_15, %c0_16] : memref<1x2x128xi32, #tpu.memory_space<vmem>>, vector<1x2x128xi32>
    tpu.vector_store %arg4[%c0_14, %c0_15, %c0_16], %46 {strides = array<i32>} : memref<1x2x128xi32, #tpu.memory_space<vmem>>, vector<1x2x128xi32>,
    %cst_17 = arith.constant dense<0.000000e+00> : vector<8xf32>
    %48 = vector.multi_reduction <add>, %39, %cst_17 [0] : vector<128x8xf32> to vector<8xf32>
    %49 = vector.shape_cast %48 : vector<8xf32> to vector<1x8xf32>
    %cst_18 = arith.constant dense<0.000000e+00> : vector<8xf32>
    %50 = vector.multi_reduction <add>, %32, %cst_18 [0] : vector<128x8xf32> to vector<8xf32>
    %51 = vector.shape_cast %50 : vector<8xf32> to vector<1x8xf32>
    %52 = tpu.concatenate %49, %51 in 0 : vector<1x8xf32>, vector<1x8xf32> -> vector<2x8xf32>
    %cst_19 = arith.constant 0.000000e+00 : f32
    %53 = vector.broadcast %cst_19 : f32 to vector<2x120xf32>
    %54 = tpu.concatenate %52, %53 in 1 : vector<2x8xf32>, vector<2x120xf32> -> vector<2x128xf32>
    %55 = vector.shape_cast %54 : vector<2x128xf32> to vector<1x2x128xf32>
    %c0_20 = arith.constant 0 : index
    %c0_21 = arith.constant 0 : index
    %c0_22 = arith.constant 0 : index
    %56 = vector.load %arg5[%c0_20, %c0_21, %c0_22] : memref<1x2x128xf32, #tpu.memory_space<vmem>>, vector<1x2x128xf32>
    tpu.vector_store %arg5[%c0_20, %c0_21, %c0_22], %55 {strides = array<i32>} : memref<1x2x128xf32, #tpu.memory_space<vmem>>, vector<1x2x128xf32>,
    return
  }
  func.func @transform_0(%arg0: i32) -> (i32, i32) {
    %c0_i32 = arith.constant 0 : i32
    %c0_i32_0 = arith.constant 0 : i32
    return %arg0, %c0_i32 : i32, i32
  }
  func.func @transform_1(%arg0: i32) -> (i32, i32) {
    %c0_i32 = arith.constant 0 : i32
    %c0_i32_0 = arith.constant 0 : i32
    %c0_i32_1 = arith.constant 0 : i32
    return %c0_i32, %c0_i32_0 : i32, i32
  }
  func.func @transform_2(%arg0: i32) -> (i32, i32, i32) {
    %c0_i32 = arith.constant 0 : i32
    %c0_i32_0 = arith.constant 0 : i32
    %c0_i32_1 = arith.constant 0 : i32
    return %arg0, %c0_i32, %c0_i32_0 : i32, i32, i32
  }
  func.func @transform_3(%arg0: i32) -> (i32, i32, i32) {
    %c0_i32 = arith.constant 0 : i32
    %c0_i32_0 = arith.constant 0 : i32
    %c0_i32_1 = arith.constant 0 : i32
    return %arg0, %c0_i32, %c0_i32_0 : i32, i32, i32
  }
  func.func @transform_4(%arg0: i32) -> (i32, i32, i32) {
    %c0_i32 = arith.constant 0 : i32
    %c0_i32_0 = arith.constant 0 : i32
    %c0_i32_1 = arith.constant 0 : i32
    return %arg0, %c0_i32, %c0_i32_0 : i32, i32, i32
  }
}

module attributes {stable_mosaic.version = 11 : i64} {
  func.func @_gate_kernel(%arg0: i32, %arg1: memref<128x128xbf16, #tpu.memory_space<vmem>>, %arg2: memref<128x8xbf16, #tpu.memory_space<vmem>>, %arg3: memref<1x2x128xf32, #tpu.memory_space<vmem>>, %arg4: memref<1x2x128xi32, #tpu.memory_space<vmem>>, %arg5: memref<1x2x128xf32, #tpu.memory_space<vmem>>) attributes {dimension_semantics = [#tpu.dimension_semantics<parallel>], iteration_bounds = array<i64: 2>, scalar_prefetch = 0 : i64, scratch_operands = 0 : i64, tpu.core_type = #tpu.core_type<tc>, window_params = [{transform_indices = @transform_0, window_bounds = array<i64: 128, 128>}, {pipeline_mode = #tpu.pipeline_mode<synchronous>, transform_indices = @transform_1, window_bounds = array<i64: 128, 8>}, {transform_indices = @transform_2, window_bounds = array<i64: 1, 2, 128>}, {transform_indices = @transform_3, window_bounds = array<i64: 1, 2, 128>}, {transform_indices = @transform_4, window_bounds = array<i64: 1, 2, 128>}]} {
    %c0 = arith.constant 0 : index
    %c0_0 = arith.constant 0 : index
    %0 = vector.load %arg2[%c0, %c0_0] : memref<128x8xbf16, #tpu.memory_space<vmem>>, vector<128x8xbf16>
    %c0_1 = arith.constant 0 : index
    %c0_2 = arith.constant 0 : index
    %1 = vector.load %arg1[%c0_1, %c0_2] : memref<128x128xbf16, #tpu.memory_space<vmem>>, vector<128x128xbf16>
    %cst = arith.constant dense<0.000000e+00> : vector<128x8xf32>
    %2 = tpu.matmul %1, %0, %cst {dimension_numbers = #tpu.dot_dimension_numbers<[1], [0], [0], [1], [0, 0, 1, 1], [], []>} : vector<128x128xbf16>, vector<128x8xbf16>, vector<128x8xf32> -> vector<128x8xf32>
    %3 = tpu.iota {dimensions = array<i32: 1>} : vector<128x8xi32>
    %cst_3 = arith.constant 0.000000e+00 : f32
    %4 = vector.broadcast %cst_3 : f32 to vector<128x8xf32>
    %cst_4 = arith.constant dense<0xFF800000> : vector<128xf32>
    %5 = vector.multi_reduction <maximumf>, %2, %cst_4 [1] : vector<128x8xf32> to vector<128xf32>
    %6 = vector.shape_cast %5 : vector<128xf32> to vector<128x1xf32>
    %7 = vector.broadcast %6 : vector<128x1xf32> to vector<128x8xf32>
    %8 = arith.cmpf oeq, %2, %7 : vector<128x8xf32>
    %c8_i32 = arith.constant 8 : i32
    %9 = vector.broadcast %c8_i32 : i32 to vector<128x8xi32>
    %10 = arith.select %8, %3, %9 : vector<128x8xi1>, vector<128x8xi32>
    %cst_5 = arith.constant dense<2147483647> : vector<128xi32>
    %11 = vector.multi_reduction <minsi>, %10, %cst_5 [1] : vector<128x8xi32> to vector<128xi32>
    %12 = vector.shape_cast %11 : vector<128xi32> to vector<128x1xi32>
    %13 = vector.broadcast %12 : vector<128x1xi32> to vector<128x8xi32>
    %14 = arith.cmpi eq, %3, %13 : vector<128x8xi32>
    %15 = arith.extui %14 : vector<128x8xi1> to vector<128x8xi32>
    %16 = arith.sitofp %15 : vector<128x8xi32> to vector<128x8xf32>
    %17 = arith.addf %4, %16 : vector<128x8xf32>
    %cst_6 = arith.constant 0xFF800000 : f32
    %18 = vector.broadcast %cst_6 : f32 to vector<128x8xf32>
    %19 = arith.select %14, %18, %2 : vector<128x8xi1>, vector<128x8xf32>
    %cst_7 = arith.constant dense<0xFF800000> : vector<128xf32>
    %20 = vector.multi_reduction <maximumf>, %19, %cst_7 [1] : vector<128x8xf32> to vector<128xf32>
    %21 = vector.shape_cast %20 : vector<128xf32> to vector<128x1xf32>
    %22 = vector.broadcast %21 : vector<128x1xf32> to vector<128x8xf32>
    %23 = arith.cmpf oeq, %19, %22 : vector<128x8xf32>
    %c8_i32_8 = arith.constant 8 : i32
    %24 = vector.broadcast %c8_i32_8 : i32 to vector<128x8xi32>
    %25 = arith.select %23, %3, %24 : vector<128x8xi1>, vector<128x8xi32>
    %cst_9 = arith.constant dense<2147483647> : vector<128xi32>
    %26 = vector.multi_reduction <minsi>, %25, %cst_9 [1] : vector<128x8xi32> to vector<128xi32>
    %27 = vector.shape_cast %26 : vector<128xi32> to vector<128x1xi32>
    %28 = vector.broadcast %27 : vector<128x1xi32> to vector<128x8xi32>
    %29 = arith.cmpi eq, %3, %28 : vector<128x8xi32>
    %30 = arith.extui %29 : vector<128x8xi1> to vector<128x8xi32>
    %31 = arith.sitofp %30 : vector<128x8xi32> to vector<128x8xf32>
    %32 = arith.addf %17, %31 : vector<128x8xf32>
    %33 = vector.broadcast %6 : vector<128x1xf32> to vector<128x8xf32>
    %34 = arith.subf %2, %33 : vector<128x8xf32>
    %35 = math.exp %34 : vector<128x8xf32>
    %cst_10 = arith.constant dense<0.000000e+00> : vector<128xf32>
    %36 = vector.multi_reduction <add>, %35, %cst_10 [1] : vector<128x8xf32> to vector<128xf32>
    %37 = vector.shape_cast %36 : vector<128xf32> to vector<128x1xf32>
    %38 = vector.broadcast %37 : vector<128x1xf32> to vector<128x8xf32>
    %39 = arith.divf %35, %38 : vector<128x8xf32>
    %40 = tpu.concatenate %6, %21 in 1 : vector<128x1xf32>, vector<128x1xf32> -> vector<128x2xf32>
    %41 = tpu.transpose %40, [1, 0] : vector<128x2xf32> -> vector<2x128xf32>
    %42 = vector.shape_cast %41 : vector<2x128xf32> to vector<1x2x128xf32>
    %c0_11 = arith.constant 0 : index
    %c0_12 = arith.constant 0 : index
    %c0_13 = arith.constant 0 : index
    %43 = vector.load %arg3[%c0_11, %c0_12, %c0_13] : memref<1x2x128xf32, #tpu.memory_space<vmem>>, vector<1x2x128xf32>
    tpu.vector_store %arg3[%c0_11, %c0_12, %c0_13], %42 {strides = array<i32>} : memref<1x2x128xf32, #tpu.memory_space<vmem>>, vector<1x2x128xf32>,
    %44 = tpu.concatenate %12, %27 in 1 : vector<128x1xi32>, vector<128x1xi32> -> vector<128x2xi32>
    %45 = tpu.transpose %44, [1, 0] : vector<128x2xi32> -> vector<2x128xi32>
    %46 = vector.shape_cast %45 : vector<2x128xi32> to vector<1x2x128xi32>
    %c0_14 = arith.constant 0 : index
    %c0_15 = arith.constant 0 : index
    %c0_16 = arith.constant 0 : index
    %47 = vector.load %arg4[%c0_14, %c0_15, %c0_16] : memref<1x2x128xi32, #tpu.memory_space<vmem>>, vector<1x2x128xi32>
    tpu.vector_store %arg4[%c0_14, %c0_15, %c0_16], %46 {strides = array<i32>} : memref<1x2x128xi32, #tpu.memory_space<vmem>>, vector<1x2x128xi32>,
    %cst_17 = arith.constant dense<0.000000e+00> : vector<8xf32>
    %48 = vector.multi_reduction <add>, %39, %cst_17 [0] : vector<128x8xf32> to vector<8xf32>
    %49 = vector.shape_cast %48 : vector<8xf32> to vector<1x8xf32>
    %cst_18 = arith.constant dense<0.000000e+00> : vector<8xf32>
    %50 = vector.multi_reduction <add>, %32, %cst_18 [0] : vector<128x8xf32> to vector<8xf32>
    %51 = vector.shape_cast %50 : vector<8xf32> to vector<1x8xf32>
    %52 = tpu.concatenate %49, %51 in 0 : vector<1x8xf32>, vector<1x8xf32> -> vector<2x8xf32>
    %cst_19 = arith.constant 0.000000e+00 : f32
    %53 = vector.broadcast %cst_19 : f32 to vector<2x120xf32>
    %54 = tpu.concatenate %52, %53 in 1 : vector<2x8xf32>, vector<2x120xf32> -> vector<2x128xf32>
    %55 = vector.shape_cast %54 : vector<2x128xf32> to vector<1x2x128xf32>
    %c0_20 = arith.constant 0 : index
    %c0_21 = arith.constant 0 : index
    %c0_22 = arith.constant 0 : index
    %56 = vector.load %arg5[%c0_20, %c0_21, %c0_22] : memref<1x2x128xf32, #tpu.memory_space<vmem>>, vector<1x2x128xf32>
    tpu.vector_store %arg5[%c0_20, %c0_21, %c0_22], %55 {strides = array<i32>} : memref<1x2x128xf32, #tpu.memory_space<vmem>>, vector<1x2x128xf32>,
    return
  }
  func.func @transform_0(%arg0: i32) -> (i32, i32) {
    %c0_i32 = arith.constant 0 : i32
    %c0_i32_0 = arith.constant 0 : i32
    return %arg0, %c0_i32 : i32, i32
  }
  func.func @transform_1(%arg0: i32) -> (i32, i32) {
    %c0_i32 = arith.constant 0 : i32
    %c0_i32_0 = arith.constant 0 : i32
    %c0_i32_1 = arith.constant 0 : i32
    return %c0_i32, %c0_i32_0 : i32, i32
  }
  func.func @transform_2(%arg0: i32) -> (i32, i32, i32) {
    %c0_i32 = arith.constant 0 : i32
    %c0_i32_0 = arith.constant 0 : i32
    %c0_i32_1 = arith.constant 0 : i32
    return %arg0, %c0_i32, %c0_i32_0 : i32, i32, i32
  }
  func.func @transform_3(%arg0: i32) -> (i32, i32, i32) {
    %c0_i32 = arith.constant 0 : i32
    %c0_i32_0 = arith.constant 0 : i32
    %c0_i32_1 = arith.constant 0 : i32
    return %arg0, %c0_i32, %c0_i32_0 : i32, i32, i32
  }
  func.func @transform_4(%arg0: i32) -> (i32, i32, i32) {
    %c0_i32 = arith.constant 0 : i32
    %c0_i32_0 = arith.constant 0 : i32
    %c0_i32_1 = arith.constant 0 : i32
    return %arg0, %c0_i32, %c0_i32_0 : i32, i32, i32
  }
}

</mosaic_0001>

<bundles_post_ra>
// kernel: tpu_custom_call.1
= control target key start
LH: loop header
LB: loop body
LE: loop exit
PB: predicated region body
PF: predicated region fallthrough
CT: control target
= control target key end

     0   :  { %10 = vsyncpa [#allocation3], 0  ;;  %s3698_s0 = inlined_call_operand.hbm [shape: bf16[256,128], index: 0, kind: input, shape index: {}]   ;;  %s3699_s1 = inlined_call_operand.vmem [shape: bf16[128,8], index: 1, kind: input, shape index: {}]   ;;  %s3700_s2 = inlined_call_operand.hbm [shape: f32[2,2,128], index: 2, kind: output, shape index: {0}]   ;;  %s3701_s3 = inlined_call_operand.hbm [shape: s32[2,2,128], index: 3, kind: output, shape index: {1}]   ;;  %s3702_s4 = inlined_call_operand.hbm [shape: f32[2,2,128], index: 4, kind: output, shape index: {2}]  }
   0x1   :  { %12 = vsyncpa [#allocation3 + $0x1], 0 }
   0x2   :  { %13 = vsyncpa [#allocation4], 0 }
   0x3   :  { %15 = vsyncpa [#allocation4 + $0x1], 0 }
   0x4   :  { %16 = vsyncpa [#allocation7], 0 }
   0x5   :  { %18 = vsyncpa [#allocation7 + $0x1], 0  ;;  %s2195_s15 = smov 0   ;;  %s2197_s16 = smov 0  }
   0x6   :  { %s2199_s17 = smov 0   ;;  %s2201_s18 = smov 0  }
   0x7 LB: > { %s2216_s19 = sadd.s32 4294967295, %s2161_s18   ;;  %s1734_s20 = sadd.s32 4294967294, %s2161_s18   ;;  %s2161_s18 = sphi %s2201_s18, %s3897_s18   ;;  %s2157_s17 = sphi %s2199_s17, %s3896_s17   ;;  %s2153_s16 = sphi %s2197_s16, %s3895_s16   ;;  %s2149_s15 = sphi %s2195_s15, %s3894_s15  }
   0x8   : > { %s2220_s21 = sadd.s32 1, %s2161_s18   ;;  %s31_s22 = sadd.s32 1, %s2157_s17 }
   0x9   : > { %s28_s23 = ssub.s32 %s2161_s18, %s2220_s21  ;;  %p38_p0 = scmp.ne.s32.totalorder %s2157_s17, %s2153_s16 }
   0xa   : > { %p29_p1 = scmp.eq.s32.totalorder %s28_s23, 0  ;;  %p39_p2 = scmp.eq.s32.totalorder %s2161_s18, 0 }
   0xb   : > { %p44_p3 = scmp.ne.s32.totalorder %s2153_s16, %s2149_s15  ;;  %p45_p4 = scmp.eq.s32.totalorder %s2216_s19, 0 }
   0xc   : > { %s2232_s24 = scalar_select %p29_p1, %s2157_s17, %s31_s22  }
   0xd   : > { %p2234_p5 = por %p39_p2, %p38_p0  ;;  %p2238_p6 = por %p45_p4, %p44_p3 }
   0xe   : > { %p89_p7 = scmp.eq.s32.totalorder %s2216_s19, 1  ;;  %p95_p8 = scmp.eq.s32.totalorder %s1734_s20, 1 }
   0xf   : > { %p1888_p10 = scmp.lt.s32.totalorder %s2161_s18, 2  ;;  %s170_s29 = sand.u32 1, %s2157_s17  }
  0x10   : > { %p2247_p11 = por %p89_p7, %p38_p0  ;;  %p2251_p12 = por %p95_p8, %p44_p3 }
  0x11   : > { %s1801_s30 = sshll.u32 %s2161_s18, 10  ;;  %s1737_s5 = sshll.u32 %s170_s29, 6 }
  0x12   : > { %s3784_s27 = scalar_select %p2247_p11, 1, 0 }
  0x13   : > { %s3785_s28 = scalar_select %p2251_p12, 1, 0 }
  0x14   : > { %s2260_s8 = scalar_lea.hbm %s3698_s0, %s1801_s30  ;;  %s174_s9 = scalar_lea.vmem [#allocation2], %s1737_s5 }
  0x15   : > { %s181_s10 = sshll.u32 %s174_s9, 4  ;;  %p2264_p13 = pnand %p1888_p10, %p2234_p5  ;;  %s2268_s10 = int_to_ptr.vmem [resolvable:$true] %s181_s10 }
  0x16   : > { %s2270_s12 = scalar_lea.sflag [#allocation3], %s170_s29  ;;  %s2005_s13 = scalar_lea.hbm %s2260_s8, 1024 }
  0x17   : > { %p2006_p0 = scmp.ne.s32.totalorder %s2260_s8, %s2005_s13  ;;  %p2007_p1 = pneg %p2264_p13 }
  0x18   : > { %s2010_s23 = scalar_lea.hbm %s3698_s0, 2048  ;;  %p2011_p4 = scmp.lt.u32.totalorder %s2260_s8, %s3698_s0 }
  0x19   : > { %p2008_p2 = pnand %p2007_p1, %p2006_p0  ;;  %p2012_p5 = scmp.lt.u32.totalorder %s2010_s23, %s2005_s13 }
  0x1a   : > { %p2014_p8 = scmp.lt.u32.totalorder %s2005_s13, %s2260_s8 }
  0x1b   : > { %p2009_p3 = pneg %p2008_p2  ;;  %p2013_p7 = por %p2012_p5, %p2011_p4 }
  0x1d   : > { %p2015_p10 = por %p2014_p8, %p2013_p7 }
  0x1f   : > { %p2016_p9 = pnand %p2015_p10, %p2009_p3 }
  0x21   : > { %2019 = shalt.err (!%p2016_p9)
}
  0x22   : > { %s2020_s29 = scalar_lea.vmem %s2268_s10, 1024  ;;  %s2163_s5 = smov [#allocation2]  }
  0x23   : > { %p2021_p0 = scmp.ne.s32.totalorder %s2268_s10, %s2020_s29  ;;  %s2025_s6 = sshll.u32 %s2163_s5, 4  ;;  %s2026_s6 = int_to_ptr.vmem [resolvable:$false] %s2025_s6 }
  0x24   : > { %s2027_s7 = scalar_lea.vmem %s2026_s6, 2048  ;;  %p2028_p11 = scmp.lt.s32.totalorder %s2268_s10, %s2026_s6 }
  0x25   : > { %p2023_p2 = pnand %p2021_p0, %p2007_p1  ;;  %p2029_p4 = scmp.lt.s32.totalorder %s2027_s7, %s2020_s29 }
  0x27   : > { %p2024_p12 = pneg %p2023_p2  ;;  %p2030_p5 = por %p2029_p4, %p2028_p11 }
  0x29   : > { %p2031_p7 = pnand %p2030_p5, %p2024_p12 }
  0x2b   : > { %2034 = shalt.err (!%p2031_p7)
}
  0x2c   : > { %s2164_s9 = smov 64   ;;  %s2165_s13 = smov 4  }
  0x2d   : > { %1877 = dma.hbm_to_vmem [thread:$0]  (!%p2264_p13), %s2260_s8, 1024, %s2268_s10, %s2270_s12, %s2164_s9, %s2164_s9, %s2165_s13  }
  0x2e   : > { %p1740_p9 = scmp.ge.s32.totalorder %s2161_s18, 1  ;;  %p189_p1 = scmp.lt.s32.totalorder %s2161_s18, 3 }
  0x30   : > { %p190_p3 = pnand %p1740_p9, %p189_p1 }
  0x32   : > { %193 = sbr.rel (%p190_p3) target bundleno = 1409 (0x581), region = 28 }
  0x39   : > { %s2301_s14 = sand.u32 1, %s2153_s16  }
  0x3a   : > { %s1741_s22 = sshll.u32 %s2301_s14, 6  ;;  %s196_s23 = scalar_lea.sflag [#allocation3], %s2301_s14 }
  0x3b   : > { %s2305_s25 = scalar_lea.vmem [#allocation2], %s1741_s22 }
  0x3c   : > { %2136 = dma.done.wait (%p2238_p6), %s196_s23, 1024  }
  0x3d   : > { %2138 = vsyncadd (%p2238_p6), %s196_s23, 4294966272  ;;  %v1925_v0 = vld [vmem:[%s3699_s1] sm:$0xff]   ;;  %v1926_v1 = vld [vmem:[%s3699_s1 + $0x8] sm:$0xff]   ;;  %vm463_vm0 = vcmask 64512   ;;  %v461_v48 = vlaneseq  ;;  %s3505_s30 = sshll.u32 %s2216_s19, 5  ;;  %s1554_s6 = scalar_lea.sflag [#allocation4], %s2301_s14 }
  0x3e   : > { %1818 = vmatprep.subr.bf16.mxu0 %v1925_v0  ;;  %1850 = vmatprep.subr.bf16.mxu1 %v1925_v0  ;;  %v1927_v2 = vld [vmem:[%s3699_s1 + $0x10] sm:$0xff]   ;;  %v1928_v3 = vld [vmem:[%s3699_s1 + $0x18] sm:$0xff]   ;;  %v1933_v4 = vld [vmem:[%s2305_s25] sm:$0xff]   ;;  %s3522_s5 = scalar_lea.hbm %s3700_s2, %s3505_s30  ;;  %p3889_p11 = scmp.ne.s32.totalorder %s3784_s27, 0 }
  0x3f   : > { %1819 = vmatpush3.bf16.msra.mxu0 %v1925_v0  ;;  %1858 = vmatpush3.bf16.msra.mxu1 %v1925_v0  ;;  %v1929_v5 = vld [vmem:[%s3699_s1 + $0x20] sm:$0xff]   ;;  %v1930_v7 = vld [vmem:[%s3699_s1 + $0x28] sm:$0xff]   ;;  %v1931_v8 = vld [vmem:[%s3699_s1 + $0x30] sm:$0xff]   ;;  %v2407_v49 = vand.u32 127, %v461_v48  ;;  %s2167_s9 = smov [#allocation5]  }
  0x40   : > { %1820 = vmatprep.subr.bf16.mxu0 %v1926_v1  ;;  %1851 = vmatprep.subr.bf16.mxu1 %v1926_v1  ;;  %v1937_v6 = vld [vmem:[%s2305_s25 + $0x20] sm:$0xff]   ;;  %v1932_v9 = vld [vmem:[%s3699_s1 + $0x38] sm:$0xff]   ;;  %v1934_v10 = vld [vmem:[%s2305_s25 + $0x8] sm:$0xff]   ;;  %s2039_s13 = sshll.u32 %s2167_s9, 4  ;;  %s2040_s13 = int_to_ptr.vmem [resolvable:$false] %s2039_s13 }
  0x41   : > { %1834 = vmatprep.mubr.bf16.mxu0 %v1933_v4  ;;  %1842 = vmatprep.mubr.bf16.mxu1 %v1937_v6  ;;  %v1938_v11 = vld [vmem:[%s2305_s25 + $0x28] sm:$0xff]   ;;  %v1935_v12 = vld [vmem:[%s2305_s25 + $0x10] sm:$0xff]   ;;  %v1936_v14 = vld [vmem:[%s2305_s25 + $0x18] sm:$0xff]   ;;  %3787 = vst [vmem:[#allocation12_spill] sm:$0xff] %v2407_v49  ;;  %s2041_s22 = scalar_lea.vmem %s2040_s13, 64 }
  0x42   : > { %v1939_v13 = vld [vmem:[%s2305_s25 + $0x30] sm:$0xff]   ;;  %v1940_v15 = vld [vmem:[%s2305_s25 + $0x38] sm:$0xff]   ;;  %s3491_s25 = sshll.u32 %s2301_s14, 1 }
  0x43   : > { %1821 = vmatpush3.bf16.msra.mxu0 %v1926_v1  ;;  %1859 = vmatpush3.bf16.msra.mxu1 %v1926_v1  ;;  %s219_s11 = scalar_lea.vmem [#allocation5], %s3491_s25 }
  0x44   : > { %1822 = vmatprep.subr.bf16.mxu0 %v1927_v2  ;;  %1852 = vmatprep.subr.bf16.mxu1 %v1927_v2  ;;  %s1577_s12 = sshll.u32 %s219_s11, 4  ;;  %s3514_s12 = int_to_ptr.vmem [resolvable:$true] %s1577_s12 }
  0x45   : > { %s2035_s7 = scalar_lea.vmem %s3514_s12, 32  ;;  %p2042_p8 = scmp.lt.s32.totalorder %s3514_s12, %s2040_s13 }
  0x46   : > { %p2036_p6 = scmp.ne.s32.totalorder %s3514_s12, %s2035_s7  ;;  %p2043_p10 = scmp.lt.s32.totalorder %s2041_s22, %s2035_s7 }
  0x47   : > { %1823 = vmatpush3.bf16.msra.mxu0 %v1927_v2  ;;  %1860 = vmatpush3.bf16.msra.mxu1 %v1927_v2 }
  0x48   : > { %1824 = vmatprep.subr.bf16.mxu0 %v1928_v3  ;;  %1853 = vmatprep.subr.bf16.mxu1 %v1928_v3  ;;  %p2037_p12 = pnand %p2036_p6, %p3889_p11  ;;  %p2044_p0 = por %p2043_p10, %p2042_p8 }
  0x4a   : > { %p2038_p13 = pneg %p2037_p12 }
  0x4b   : > { %1825 = vmatpush3.bf16.msra.mxu0 %v1928_v3  ;;  %1861 = vmatpush3.bf16.msra.mxu1 %v1928_v3 }
  0x4c   : > { %1826 = vmatprep.subr.bf16.mxu0 %v1929_v5  ;;  %1854 = vmatprep.subr.bf16.mxu1 %v1929_v5  ;;  %p2045_p2 = pnand %p2044_p0, %p2038_p13 }
  0x4f   : > { %1827 = vmatpush3.bf16.msra.mxu0 %v1929_v5  ;;  %1862 = vmatpush3.bf16.msra.mxu1 %v1929_v5 }
  0x50   : > { %1828 = vmatprep.subr.bf16.mxu0 %v1930_v7  ;;  %1855 = vmatprep.subr.bf16.mxu1 %v1930_v7 }
  0x53   : > { %1829 = vmatpush3.bf16.msra.mxu0 %v1930_v7  ;;  %1863 = vmatpush3.bf16.msra.mxu1 %v1930_v7 }
  0x54   : > { %1830 = vmatprep.subr.bf16.mxu0 %v1931_v8  ;;  %1856 = vmatprep.subr.bf16.mxu1 %v1931_v8 }
  0x57   : > { %1831 = vmatpush3.bf16.msra.mxu0 %v1931_v8  ;;  %1864 = vmatpush3.bf16.msra.mxu1 %v1931_v8 }
  0x58   : > { %1832 = vmatprep.subr.bf16.mxu0 %v1932_v9  ;;  %1857 = vmatprep.subr.bf16.mxu1 %v1932_v9 }
  0x5b   : > { %1833 = vmatpush3.bf16.msra.mxu0 %v1932_v9  ;;  %1865 = vmatpush3.bf16.msra.mxu1 %v1932_v9 }
  0x5e   : > { %1835 = vmatmul.mubr.bf16.vlgmr.msra.gmra.mrb[0].mxu0 %v1934_v10  ;;  %1843 = vmatmul.mubr.bf16.vlgmr.msra.gmra.mrb[0].mxu1 %v1938_v11 }
  0x5f   : > { %1838 = vmatprep.mubr.bf16.mxu0 %v1935_v12  ;;  %1846 = vmatprep.mubr.bf16.mxu1 %v1939_v13 }
  0x66   : > { %1839 = vmatmul.mubr.bf16.gmra.mrb[4].mxu0 %v1936_v14  ;;  %1847 = vmatmul.mubr.bf16.gmra.mrb[4].mxu1 %v1940_v15 }
 0x131   : > { %v2343_v16 = vpop.f32.mrb[0].mxu0  ;;  %v2345_v17 = vpop.f32.mrb[0].mxu1 }
 0x132   : > { %v2347_v18 = vpop.f32.mrb[1].mxu0  ;;  %v470_v19 = vsel %vm463_vm0, %v2343_v16, -inf  ;;  %v2351_v20 = vpop.f32.mrb[1].mxu1  ;;  %v494_v42 = vsel %vm463_vm0, %v2345_v17, -inf }
 0x133   : > { %471 = vmax.xlane.f32.xlu1 %v470_v19  ;;  %v2353_v21 = vpop.f32.mrb[2].mxu0  ;;  %v464_v22 = vsel %vm463_vm0, %v2347_v18, -inf  ;;  %v2357_v23 = vpop.f32.mrb[2].mxu1  ;;  %v488_v40 = vsel %vm463_vm0, %v2351_v20, -inf }
 0x134   : > { %465 = vmax.xlane.f32.xlu0 %v464_v22  ;;  %v2359_v24 = vpop.f32.mrb[3].mxu0  ;;  %v2361_v25 = vpop.f32.mrb[3].mxu1  ;;  %v473_v26 = vsel %vm463_vm0, %v2353_v21, -inf  ;;  %v497_v43 = vsel %vm463_vm0, %v2357_v23, -inf }
 0x135   : > { %v467_v27 = vsel %vm463_vm0, %v2359_v24, -inf  ;;  %v491_v41 = vsel %vm463_vm0, %v2361_v25, -inf }
 0x137   : > { %474 = vmax.xlane.f32.xlu1 %v473_v26 }
 0x138   : > { %468 = vmax.xlane.f32.xlu0 %v467_v27 }
 0x139   : > { %v2367_v28 = vpop.f32.mrb[4].mxu0  ;;  %v2369_v29 = vpop.f32.mrb[4].mxu1 }
 0x13a   : > { %v2371_v30 = vpop.f32.mrb[5].mxu0  ;;  %v2373_v31 = vpop.f32.mrb[5].mxu1  ;;  %v482_v38 = vsel %vm463_vm0, %v2367_v28, -inf  ;;  %v506_v46 = vsel %vm463_vm0, %v2369_v29, -inf }
 0x13b   : > { %v2375_v32 = vpop.f32.mrb[6].mxu0  ;;  %v476_v33 = vsel %vm463_vm0, %v2371_v30, -inf  ;;  %v2379_v34 = vpop.f32.mrb[6].mxu1  ;;  %v500_v44 = vsel %vm463_vm0, %v2373_v31, -inf }
 0x13c   : > { %477 = vmax.xlane.f32.xlu0 %v476_v33  ;;  %v2381_v35 = vpop.f32.mrb[7].mxu0  ;;  %v2383_v36 = vpop.f32.mrb[7].mxu1  ;;  %v485_v39 = vsel %vm463_vm0, %v2375_v32, -inf  ;;  %v509_v47 = vsel %vm463_vm0, %v2379_v34, -inf }
 0x13d   : > { %v479_v37 = vsel %vm463_vm0, %v2381_v35, -inf  ;;  %v503_v45 = vsel %vm463_vm0, %v2383_v36, -inf }
 0x13e   : > { %480 = vmax.xlane.f32.xlu1 %v479_v37 }
 0x140   : > { %483 = vmax.xlane.f32.xlu0 %v482_v38 }
 0x142   : > { %486 = vmax.xlane.f32.xlu1 %v485_v39 }
 0x144   : > { %489 = vmax.xlane.f32.xlu0 %v488_v40 }
 0x146   : > { %492 = vmax.xlane.f32.xlu1 %v491_v41 }
 0x148   : > { %495 = vmax.xlane.f32.xlu0 %v494_v42 }
 0x14a   : > { %498 = vmax.xlane.f32.xlu1 %v497_v43 }
 0x14c   : > { %501 = vmax.xlane.f32.xlu0 %v500_v44 }
 0x14e   : > { %504 = vmax.xlane.f32.xlu1 %v503_v45 }
 0x150   : > { %507 = vmax.xlane.f32.xlu0 %v506_v46 }
 0x152   : > { %510 = vmax.xlane.f32.xlu1 %v509_v47 }
 0x1c0   : > { %v2409_v50 = vpop.xlane.xlu1 %471 }
 0x1c1   : > { %v2411_v51 = vpop.xlane.xlu0 %465  ;;  %vm514_vm1 = vcmp.eq.f32.partialorder %v2343_v16, %v2409_v50 }
 0x1c2   : > { %vm512_vm2 = vcmp.eq.f32.partialorder %v2347_v18, %v2411_v51  ;;  %v530_v52 = vsel %vm514_vm1, %v2407_v49, 8 }
 0x1c3   : > { %v528_v53 = vsel %vm512_vm2, %v2407_v49, 8  ;;  %v2425_v56 = vsel %vm463_vm0, %v530_v52, 2147483647 }
 0x1c4   : > { %v2419_v54 = vpop.xlane.xlu1 %474  ;;  %v2422_v55 = vsel %vm463_vm0, %v528_v53, 2147483647  ;;  %v576_v60 = vshra.s32 %v2425_v56, 16 }
 0x1c5   : > { %v2427_v57 = vpop.xlane.xlu0 %468  ;;  %v546_v58 = vshra.s32 %v2422_v55, 16  ;;  %vm515_vm3 = vcmp.eq.f32.partialorder %v2353_v21, %v2419_v54 }
 0x1c6   : > { %vm513_vm4 = vcmp.eq.f32.partialorder %v2359_v24, %v2427_v57  ;;  %v531_v62 = vsel %vm515_vm3, %v2407_v49, 8  ;;  %v2453_v4 = vcvt.s32.f32 %v576_v60 }
 0x1c7   : > { %v2434_v59 = vcvt.s32.f32 %v546_v58  ;;  %v529_v61 = vsel %vm513_vm4, %v2407_v49, 8  ;;  %v2443_v0 = vsel %vm463_vm0, %v531_v62, 2147483647 }
 0x1c8   : > { %v2440_v63 = vsel %vm463_vm0, %v529_v61, 2147483647  ;;  %v591_v7 = vshra.s32 %v2443_v0, 16 }
 0x1c9   : > { %549 = vmin.xlane.f32.xlu0 %v2434_v59  ;;  %v2446_v1 = vpop.xlane.xlu0 %477  ;;  %v561_v2 = vshra.s32 %v2440_v63, 16 }
 0x1ca   : > { %3788 = vst [vmem:[#allocation13_spill] sm:$0xff] %v2446_v1  ;;  %vm516_vm5 = vcmp.eq.f32.partialorder %v2371_v30, %v2446_v1  ;;  %v2476_v14 = vcvt.s32.f32 %v591_v7  ;;  %v590_v1 = vand.u32 65535, %v2443_v0 }
 0x1cb   : > { %v2451_v3 = vpop.xlane.xlu1 %480  ;;  %v2455_v5 = vcvt.s32.f32 %v561_v2  ;;  %v532_v6 = vsel %vm516_vm5, %v2407_v49, 8 }
 0x1cc   : > { %3789 = vst [vmem:[#allocation14_spill] sm:$0xff] %v2451_v3  ;;  %v2460_v8 = vsel %vm463_vm0, %v532_v6, 2147483647  ;;  %vm517_vm6 = vcmp.eq.f32.partialorder %v2381_v35, %v2451_v3 }
 0x1cd   : > { %579 = vmin.xlane.f32.xlu0 %v2453_v4  ;;  %v2465_v9 = vpop.xlane.xlu0 %483  ;;  %564 = vmin.xlane.f32.xlu1 %v2455_v5  ;;  %v606_v10 = vshra.s32 %v2460_v8, 16  ;;  %v533_v11 = vsel %vm517_vm6, %v2407_v49, 8 }
 0x1ce   : > { %3790 = vst [vmem:[#allocation15_spill] sm:$0xff] %v2465_v9  ;;  %vm518_vm7 = vcmp.eq.f32.partialorder %v2367_v28, %v2465_v9  ;;  %v2480_v19 = vsel %vm463_vm0, %v533_v11, 2147483647 }
 0x1cf   : > { %v2472_v12 = vpop.xlane.xlu1 %486  ;;  %v2474_v13 = vcvt.s32.f32 %v606_v10  ;;  %v534_v15 = vsel %vm518_vm7, %v2407_v49, 8  ;;  %v621_v33 = vshra.s32 %v2480_v19, 16  ;;  %v620_v0 = vand.u32 65535, %v2480_v19 }
 0x1d0   : > { %3791 = vst [vmem:[#allocation16_spill] sm:$0xff] %v2472_v12  ;;  %v2483_v22 = vsel %vm463_vm0, %v534_v15, 2147483647  ;;  %vm519_vm8 = vcmp.eq.f32.partialorder %v2375_v32, %v2472_v12  ;;  %v545_v12 = vand.u32 65535, %v2422_v55  ;;  %v605_v55 = vand.u32 65535, %v2460_v8 }
 0x1d1   : > { %609 = vmin.xlane.f32.xlu0 %v2474_v13  ;;  %v2486_v26 = vpop.xlane.xlu0 %489  ;;  %594 = vmin.xlane.f32.xlu1 %v2476_v14  ;;  %v636_v27 = vshra.s32 %v2483_v22, 16  ;;  %v2499_v39 = vcvt.s32.f32 %v621_v33  ;;  %v535_v41 = vsel %vm519_vm8, %v2407_v49, 8  ;;  %v635_v8 = vand.u32 65535, %v2483_v22 }
 0x1d2   : > { %3792 = vst [vmem:[#allocation17_spill] sm:$0xff] %v2486_v26  ;;  %vm520_vm9 = vcmp.eq.f32.partialorder %v2351_v20, %v2486_v26  ;;  %v2512_v45 = vsel %vm463_vm0, %v535_v41, 2147483647 }
 0x1d3   : > { %v2495_v37 = vpop.xlane.xlu1 %492  ;;  %v2497_v38 = vcvt.s32.f32 %v636_v27  ;;  %v536_v40 = vsel %vm520_vm9, %v2407_v49, 8  ;;  %v651_v46 = vshra.s32 %v2512_v45, 16 }
 0x1d4   : > { %3793 = vst [vmem:[#allocation18_spill] sm:$0xff] %v2495_v37  ;;  %v2504_v42 = vsel %vm463_vm0, %v536_v40, 2147483647  ;;  %vm521_vm10 = vcmp.eq.f32.partialorder %v2361_v25, %v2495_v37 }
 0x1d5   : > { %639 = vmin.xlane.f32.xlu0 %v2497_v38  ;;  %v2507_v43 = vpop.xlane.xlu0 %495  ;;  %624 = vmin.xlane.f32.xlu1 %v2499_v39  ;;  %v666_v44 = vshra.s32 %v2504_v42, 16  ;;  %v537_v52 = vsel %vm521_vm10, %v2407_v49, 8  ;;  %v2524_v53 = vcvt.s32.f32 %v651_v46  ;;  %v665_v22 = vand.u32 65535, %v2504_v42 }
 0x1d6   : > { %3794 = vst [vmem:[#allocation19_spill] sm:$0xff] %v2507_v43  ;;  %vm522_vm11 = vcmp.eq.f32.partialorder %v2345_v17, %v2507_v43  ;;  %v2531_v61 = vsel %vm463_vm0, %v537_v52, 2147483647 }
 0x1d7   : > { %v2517_v47 = vpop.xlane.xlu1 %498  ;;  %v2519_v48 = vcvt.s32.f32 %v666_v44  ;;  %v538_v60 = vsel %vm522_vm11, %v2407_v49, 8  ;;  %v681_v7 = vshra.s32 %v2531_v61, 16 }
 0x1d8   : > { %3795 = vst [vmem:[#allocation20_spill] sm:$0xff] %v2517_v47  ;;  %vm523_vm12 = vcmp.eq.f32.partialorder %v2357_v23, %v2517_v47  ;;  %v2537_v62 = vsel %vm463_vm0, %v538_v60, 2147483647 }
 0x1d9   : > { %669 = vmin.xlane.f32.xlu0 %v2519_v48  ;;  %v2527_v58 = vpop.xlane.xlu0 %501  ;;  %654 = vmin.xlane.f32.xlu1 %v2524_v53  ;;  %v696_v6 = vshra.s32 %v2537_v62, 16  ;;  %v539_v10 = vsel %vm523_vm12, %v2407_v49, 8  ;;  %v2551_v33 = vcvt.s32.f32 %v681_v7 }
 0x1da   : > { %3796 = vst [vmem:[#allocation21_spill] sm:$0xff] %v2527_v58  ;;  %vm524_vm13 = vcmp.eq.f32.partialorder %v2373_v31, %v2527_v58  ;;  %v2557_v41 = vsel %vm463_vm0, %v539_v10, 2147483647 }
 0x1db   : > { %v2539_v2 = vpop.xlane.xlu1 %504  ;;  %v540_v11 = vsel %vm524_vm13, %v2407_v49, 8  ;;  %v2547_v15 = vcvt.s32.f32 %v696_v6  ;;  %v711_v52 = vshra.s32 %v2557_v41, 16 }
 0x1dc   : > { %3797 = vst [vmem:[#allocation22_spill] sm:$0xff] %v2539_v2  ;;  %v2554_v40 = vsel %vm463_vm0, %v540_v11, 2147483647  ;;  %vm525_vm15 = vcmp.eq.f32.partialorder %v2383_v36, %v2539_v2 }
 0x1dd   : > { %v2549_v27 = vpop.xlane.xlu0 %507  ;;  %v726_v44 = vshra.s32 %v2554_v40, 16  ;;  %699 = vmin.xlane.f32.xlu0 %v2547_v15  ;;  %684 = vmin.xlane.f32.xlu1 %v2551_v33  ;;  %v2571_v6 = vcvt.s32.f32 %v711_v52  ;;  %v541_v10 = vsel %vm525_vm15, %v2407_v49, 8 }
 0x1de   : > { %3798 = vst [vmem:[#allocation23_spill] sm:$0xff] %v2549_v27  ;;  %vm526_vm14 = vcmp.eq.f32.partialorder %v2369_v29, %v2549_v27  ;;  %v2581_v58 = vsel %vm463_vm0, %v541_v10, 2147483647 }
 0x1df   : > { %v2562_v46 = vpop.xlane.xlu1 %510  ;;  %v2569_v60 = vcvt.s32.f32 %v726_v44  ;;  %v542_v7 = vsel %vm526_vm14, %v2407_v49, 8  ;;  %v741_v52 = vshra.s32 %v2581_v58, 16 }
 0x1e0   : > { %3799 = vst [vmem:[#allocation24_spill] sm:$0xff] %v2562_v46  ;;  %vm527_vm1 = vcmp.eq.f32.partialorder %v2379_v34, %v2562_v46  ;;  %v2578_v11 = vsel %vm463_vm0, %v542_v7, 2147483647 }
 0x1e1   : > { %729 = vmin.xlane.f32.xlu0 %v2569_v60  ;;  %714 = vmin.xlane.f32.xlu1 %v2571_v6  ;;  %v756_v44 = vshra.s32 %v2578_v11, 16  ;;  %v543_v27 = vsel %vm527_vm1, %v2407_v49, 8  ;;  %v2593_v7 = vcvt.s32.f32 %v741_v52  ;;  %v560_v52 = vand.u32 65535, %v2440_v63 }
 0x1e2   : > { %v2589_v43 = vsel %vm463_vm0, %v543_v27, 2147483647  ;;  %v547_v27 = vcvt.s32.f32 %v545_v12  ;;  %v607_v12 = vcvt.s32.f32 %v605_v55  ;;  %v667_v55 = vcvt.s32.f32 %v665_v22 }
 0x1e3   : > { %v2591_v37 = vcvt.s32.f32 %v756_v44  ;;  %v771_v10 = vshra.s32 %v2589_v43, 16  ;;  %v575_v44 = vand.u32 65535, %v2425_v56  ;;  %v562_v47 = vcvt.s32.f32 %v560_v52 }
 0x1e5   : > { %759 = vmin.xlane.f32.xlu0 %v2591_v37  ;;  %744 = vmin.xlane.f32.xlu1 %v2593_v7  ;;  %v2598_v26 = vcvt.s32.f32 %v771_v10  ;;  %v577_v3 = vcvt.s32.f32 %v575_v44  ;;  %v637_v44 = vcvt.s32.f32 %v635_v8 }
 0x1e9   : > { %774 = vmin.xlane.f32.xlu1 %v2598_v26 }
 0x256   : > { %v2602_v46 = vpop.xlane.xlu0 %549 }
 0x257   : > { %vm551_vm2 = vcmp.eq.f32.partialorder %v2434_v59, %v2602_v46 }
 0x258   : > { %v552_v9 = vsel %vm551_vm2, %v547_v27, inf  ;;  %v592_v27 = vcvt.s32.f32 %v590_v1  ;;  %v622_v1 = vcvt.s32.f32 %v620_v0 }
 0x259   : > { %553 = vmin.xlane.f32.xlu0 %v552_v9 }
 0x25a   : > { %v2608_v2 = vpop.xlane.xlu0 %579  ;;  %v2610_v10 = vpop.xlane.xlu1 %564 }
 0x25b   : > { %vm581_vm3 = vcmp.eq.f32.partialorder %v2453_v4, %v2608_v2  ;;  %vm566_vm4 = vcmp.eq.f32.partialorder %v2455_v5, %v2610_v10 }
 0x25c   : > { %v582_v56 = vsel %vm581_vm3, %v577_v3, inf  ;;  %v567_v59 = vsel %vm566_vm4, %v562_v47, inf }
 0x25d   : > { %583 = vmin.xlane.f32.xlu0 %v582_v56  ;;  %568 = vmin.xlane.f32.xlu1 %v567_v59 }
 0x25e   : > { %v2618_v63 = vpop.xlane.xlu0 %609  ;;  %v2620_v9 = vpop.xlane.xlu1 %594 }
 0x25f   : > { %vm611_vm5 = vcmp.eq.f32.partialorder %v2474_v13, %v2618_v63  ;;  %vm596_vm6 = vcmp.eq.f32.partialorder %v2476_v14, %v2620_v9  ;;  %v650_v13 = vand.u32 65535, %v2512_v45 }
 0x260   : > { %v612_v3 = vsel %vm611_vm5, %v607_v12, inf  ;;  %v597_v4 = vsel %vm596_vm6, %v592_v27, inf }
 0x261   : > { %613 = vmin.xlane.f32.xlu0 %v612_v3  ;;  %598 = vmin.xlane.f32.xlu1 %v597_v4  ;;  %v652_v42 = vcvt.s32.f32 %v650_v13  ;;  %v710_v3 = vand.u32 65535, %v2557_v41  ;;  %v740_v41 = vand.u32 65535, %v2581_v58 }
 0x262   : > { %v2628_v5 = vpop.xlane.xlu0 %639  ;;  %v2630_v47 = vpop.xlane.xlu1 %624 }
 0x263   : > { %vm641_vm7 = vcmp.eq.f32.partialorder %v2497_v38, %v2628_v5  ;;  %vm626_vm8 = vcmp.eq.f32.partialorder %v2499_v39, %v2630_v47  ;;  %v695_v38 = vand.u32 65535, %v2537_v62  ;;  %v680_v39 = vand.u32 65535, %v2531_v61 }
 0x264   : > { %v642_v14 = vsel %vm641_vm7, %v637_v44, inf  ;;  %v627_v19 = vsel %vm626_vm8, %v622_v1, inf  ;;  %v712_v1 = vcvt.s32.f32 %v710_v3 }
 0x265   : > { %643 = vmin.xlane.f32.xlu0 %v642_v14  ;;  %628 = vmin.xlane.f32.xlu1 %v627_v19  ;;  %v697_v8 = vcvt.s32.f32 %v695_v38  ;;  %v682_v0 = vcvt.s32.f32 %v680_v39  ;;  %v742_v19 = vcvt.s32.f32 %v740_v41  ;;  %v631_v41 = vcvt.f32.s32 %v2630_v47 }
 0x266   : > { %v2638_v52 = vpop.xlane.xlu0 %669  ;;  %v2640_v56 = vpop.xlane.xlu1 %654 }
 0x267   : > { %vm671_vm9 = vcmp.eq.f32.partialorder %v2519_v48, %v2638_v52  ;;  %vm656_vm10 = vcmp.eq.f32.partialorder %v2524_v53, %v2640_v56  ;;  %v725_v48 = vand.u32 65535, %v2554_v40  ;;  %v755_v40 = vand.u32 65535, %v2578_v11 }
 0x268   : > { %v672_v59 = vsel %vm671_vm9, %v667_v55, inf  ;;  %v657_v45 = vsel %vm656_vm10, %v652_v42, inf  ;;  %v770_v11 = vand.u32 65535, %v2589_v43  ;;  %v556_v43 = vcvt.f32.s32 %v2602_v46 }
 0x269   : > { %673 = vmin.xlane.f32.xlu0 %v672_v59  ;;  %658 = vmin.xlane.f32.xlu1 %v657_v45  ;;  %v727_v44 = vcvt.s32.f32 %v725_v48  ;;  %v757_v14 = vcvt.s32.f32 %v755_v40  ;;  %v586_v59 = vcvt.f32.s32 %v2608_v2  ;;  %v601_v48 = vcvt.f32.s32 %v2620_v9 }
 0x26a   : > { %v2648_v12 = vpop.xlane.xlu0 %699  ;;  %v2650_v27 = vpop.xlane.xlu1 %684  ;;  %v772_v55 = vcvt.s32.f32 %v770_v11  ;;  %v557_v38 = vshll.u32 %v556_v43, 16  ;;  %v646_v40 = vcvt.f32.s32 %v2628_v5  ;;  %v632_v43 = vshll.u32 %v631_v41, 16 }
 0x26b   : > { %vm701_vm11 = vcmp.eq.f32.partialorder %v2547_v15, %v2648_v12  ;;  %vm686_vm12 = vcmp.eq.f32.partialorder %v2551_v33, %v2650_v27 }
 0x26c   : > { %v702_v53 = vsel %vm701_vm11, %v697_v8, inf  ;;  %v687_v61 = vsel %vm686_vm12, %v682_v0, inf  ;;  %v587_v8 = vshll.u32 %v586_v59, 16  ;;  %v616_v0 = vcvt.f32.s32 %v2618_v63 }
 0x26d   : > { %703 = vmin.xlane.f32.xlu0 %v702_v53  ;;  %688 = vmin.xlane.f32.xlu1 %v687_v61  ;;  %v676_v59 = vcvt.f32.s32 %v2638_v52 }
 0x26e   : > { %v2658_v62 = vpop.xlane.xlu0 %729  ;;  %v2660_v4 = vpop.xlane.xlu1 %714  ;;  %v617_v9 = vshll.u32 %v616_v0, 16 }
 0x26f   : > { %vm731_vm13 = vcmp.eq.f32.partialorder %v2569_v60, %v2658_v62  ;;  %vm716_vm14 = vcmp.eq.f32.partialorder %v2571_v6, %v2660_v4 }
 0x270   : > { %v732_v15 = vsel %vm731_vm13, %v727_v44, inf  ;;  %v717_v33 = vsel %vm716_vm14, %v712_v1, inf  ;;  %v602_v1 = vshll.u32 %v601_v48, 16 }
 0x271   : > { %733 = vmin.xlane.f32.xlu0 %v732_v15  ;;  %718 = vmin.xlane.f32.xlu1 %v717_v33 }
 0x272   : > { %v2668_v22 = vpop.xlane.xlu0 %759  ;;  %v2670_v13 = vpop.xlane.xlu1 %744 }
 0x273   : > { %vm761_vm15 = vcmp.eq.f32.partialorder %v2591_v37, %v2668_v22  ;;  %vm746_vm1 = vcmp.eq.f32.partialorder %v2593_v7, %v2670_v13  ;;  %v571_v7 = vcvt.f32.s32 %v2610_v10 }
 0x274   : > { %v762_v58 = vsel %vm761_vm15, %v757_v14, inf  ;;  %v747_v60 = vsel %vm746_vm1, %v742_v19, inf }
 0x275   : > { %763 = vmin.xlane.f32.xlu0 %v762_v58  ;;  %748 = vmin.xlane.f32.xlu1 %v747_v60  ;;  %v572_v53 = vshll.u32 %v571_v7, 16 }
 0x276   : > { %v2677_v6 = vpop.xlane.xlu1 %774 }
 0x277   : > { %vm776_vm2 = vcmp.eq.f32.partialorder %v2598_v26, %v2677_v6 }
 0x278   : > { %v777_v42 = vsel %vm776_vm2, %v772_v55, inf }
 0x279   : > { %778 = vmin.xlane.f32.xlu1 %v777_v42  ;;  %v647_v42 = vshll.u32 %v646_v40, 16 }
 0x2e6   : > { %v554_v37 = vpop.xlane.xlu0 %553 }
 0x2e7   : > { %v555_v39 = vcvt.f32.s32 %v554_v37 }
 0x2e9   : > { %v2684_v45 = vadd.s32 %v557_v38, %v555_v39 }
 0x2ea   : > { %v584_v3 = vpop.xlane.xlu0 %583  ;;  %v569_v26 = vpop.xlane.xlu1 %568 }
 0x2eb   : > { %3800 = vst [vmem:[#allocation25_spill] sm:$0xff] %v2684_v45  ;;  %v585_v61 = vcvt.f32.s32 %v584_v3  ;;  %v570_v44 = vcvt.f32.s32 %v569_v26  ;;  %vm784_vm3 = vcmp.eq.s32.totalorder %v2407_v49, %v2684_v45 }
 0x2ec   : > { %v2694_v2 = vsel %vm784_vm3, -inf, %v2347_v18 }
 0x2ed   : > { %v2696_v46 = vadd.s32 %v587_v8, %v585_v61  ;;  %v2698_v10 = vadd.s32 %v572_v53, %v570_v44  ;;  %v864_v63 = vsel %vm463_vm0, %v2694_v2, -inf  ;;  %v661_v8 = vcvt.f32.s32 %v2640_v56 }
 0x2ee   : > { %865 = vmax.xlane.f32.xlu0 %v864_v63  ;;  %v614_v15 = vpop.xlane.xlu0 %613  ;;  %v599_v33 = vpop.xlane.xlu1 %598  ;;  %v677_v53 = vshll.u32 %v676_v59, 16  ;;  %v706_v61 = vcvt.f32.s32 %v2648_v12  ;;  %v691_v63 = vcvt.f32.s32 %v2650_v27 }
 0x2ef   : > { %3801 = vst [vmem:[#allocation26_spill] sm:$0xff] %v2696_v46  ;;  %3802 = vst [vmem:[#allocation27_spill] sm:$0xff] %v2698_v10  ;;  %v615_v14 = vcvt.f32.s32 %v614_v15  ;;  %v600_v19 = vcvt.f32.s32 %v599_v33  ;;  %vm786_vm4 = vcmp.eq.s32.totalorder %v2407_v49, %v2696_v46  ;;  %vm785_vm5 = vcmp.eq.s32.totalorder %v2407_v49, %v2698_v10 }
 0x2f0   : > { %v2712_v11 = vsel %vm786_vm4, -inf, %v2343_v16  ;;  %v2718_v5 = vsel %vm785_vm5, -inf, %v2359_v24  ;;  %v662_v40 = vshll.u32 %v661_v8, 16 }
 0x2f1   : > { %v2720_v47 = vadd.s32 %v617_v9, %v615_v14  ;;  %v2722_v58 = vadd.s32 %v602_v1, %v600_v19  ;;  %v870_v60 = vsel %vm463_vm0, %v2712_v11, -inf  ;;  %v867_v55 = vsel %vm463_vm0, %v2718_v5, -inf }
 0x2f2   : > { %871 = vmax.xlane.f32.xlu0 %v870_v60  ;;  %v644_v37 = vpop.xlane.xlu0 %643  ;;  %868 = vmax.xlane.f32.xlu1 %v867_v55  ;;  %v629_v38 = vpop.xlane.xlu1 %628  ;;  %v707_v60 = vshll.u32 %v706_v61, 16  ;;  %v692_v55 = vshll.u32 %v691_v63, 16  ;;  %v751_v63 = vcvt.f32.s32 %v2670_v13 }
 0x2f3   : > { %3803 = vst [vmem:[#allocation28_spill] sm:$0xff] %v2720_v47  ;;  %3804 = vst [vmem:[#allocation29_spill] sm:$0xff] %v2722_v58  ;;  %v645_v7 = vcvt.f32.s32 %v644_v37  ;;  %v630_v39 = vcvt.f32.s32 %v629_v38  ;;  %vm788_vm6 = vcmp.eq.s32.totalorder %v2407_v49, %v2720_v47  ;;  %vm787_vm7 = vcmp.eq.s32.totalorder %v2407_v49, %v2722_v58 }
 0x2f4   : > { %v2738_v0 = vsel %vm788_vm6, -inf, %v2371_v30  ;;  %v2744_v52 = vsel %vm787_vm7, -inf, %v2353_v21 }
 0x2f5   : > { %v2746_v48 = vadd.s32 %v647_v42, %v645_v7  ;;  %v2748_v3 = vadd.s32 %v632_v43, %v630_v39  ;;  %v876_v26 = vsel %vm463_vm0, %v2738_v0, -inf  ;;  %v873_v56 = vsel %vm463_vm0, %v2744_v52, -inf }
 0x2f6   : > { %877 = vmax.xlane.f32.xlu0 %v876_v26  ;;  %v674_v44 = vpop.xlane.xlu0 %673  ;;  %874 = vmax.xlane.f32.xlu1 %v873_v56  ;;  %v659_v1 = vpop.xlane.xlu1 %658  ;;  %v736_v42 = vcvt.f32.s32 %v2658_v62  ;;  %v721_v43 = vcvt.f32.s32 %v2660_v4 }
 0x2f7   : > { %3805 = vst [vmem:[#allocation30_spill] sm:$0xff] %v2746_v48  ;;  %3806 = vst [vmem:[#allocation31_spill] sm:$0xff] %v2748_v3  ;;  %v675_v9 = vcvt.f32.s32 %v674_v44  ;;  %vm790_vm8 = vcmp.eq.s32.totalorder %v2407_v49, %v2746_v48  ;;  %vm3728_vm9 = vcmp.eq.s32.totalorder %v2407_v49, %v2748_v3  ;;  %v660_v41 = vcvt.f32.s32 %v659_v1 }
 0x2f8   : > { %v2764_v12 = vsel %vm790_vm8, -inf, %v2367_v28  ;;  %v2770_v27 = vsel %vm3728_vm9, -inf, %v2381_v35  ;;  %v722_v61 = vshll.u32 %v721_v43, 16  ;;  %v766_v44 = vcvt.f32.s32 %v2668_v22 }
 0x2f9   : > { %v2772_v15 = vadd.s32 %v677_v53, %v675_v9  ;;  %v882_v33 = vsel %vm463_vm0, %v2764_v12, -inf  ;;  %v879_v14 = vsel %vm463_vm0, %v2770_v27, -inf  ;;  %v2778_v19 = vadd.s32 %v662_v40, %v660_v41 }
 0x2fa   : > { %883 = vmax.xlane.f32.xlu0 %v882_v33  ;;  %880 = vmax.xlane.f32.xlu1 %v879_v14  ;;  %v704_v59 = vpop.xlane.xlu0 %703  ;;  %v689_v37 = vpop.xlane.xlu1 %688  ;;  %v737_v53 = vshll.u32 %v736_v42, 16  ;;  %v767_v42 = vshll.u32 %v766_v44, 16  ;;  %v752_v43 = vshll.u32 %v751_v63, 16 }
 0x2fb   : > { %3807 = vst [vmem:[#allocation32_spill] sm:$0xff] %v2772_v15  ;;  %3808 = vst [vmem:[#allocation33_spill] sm:$0xff] %v2778_v19  ;;  %vm792_vm10 = vcmp.eq.s32.totalorder %v2407_v49, %v2772_v15  ;;  %vm3741_vm11 = vcmp.eq.s32.totalorder %v2407_v49, %v2778_v19  ;;  %v705_v7 = vcvt.f32.s32 %v704_v59  ;;  %v690_v39 = vcvt.f32.s32 %v689_v37 }
 0x2fc   : > { %v2788_v38 = vsel %vm792_vm10, -inf, %v2351_v20  ;;  %v2798_v62 = vsel %vm3741_vm11, -inf, %v2375_v32  ;;  %v781_v59 = vcvt.f32.s32 %v2677_v6 }
 0x2fd   : > { %v888_v8 = vsel %vm463_vm0, %v2788_v38, -inf  ;;  %v885_v4 = vsel %vm463_vm0, %v2798_v62, -inf  ;;  %v2802_v26 = vadd.s32 %v707_v60, %v705_v7  ;;  %v2804_v56 = vadd.s32 %v692_v55, %v690_v39 }
 0x2fe   : > { %889 = vmax.xlane.f32.xlu0 %v888_v8  ;;  %886 = vmax.xlane.f32.xlu1 %v885_v4  ;;  %v734_v9 = vpop.xlane.xlu0 %733  ;;  %v719_v1 = vpop.xlane.xlu1 %718 }
 0x2ff   : > { %3809 = vst [vmem:[#allocation34_spill] sm:$0xff] %v2802_v26  ;;  %3810 = vst [vmem:[#allocation35_spill] sm:$0xff] %v2804_v56  ;;  %v735_v40 = vcvt.f32.s32 %v734_v9  ;;  %v720_v41 = vcvt.f32.s32 %v719_v1  ;;  %vm794_vm12 = vcmp.eq.s32.totalorder %v2407_v49, %v2802_v26  ;;  %vm793_vm13 = vcmp.eq.s32.totalorder %v2407_v49, %v2804_v56 }
 0x300   : > { %v2816_v33 = vsel %vm794_vm12, -inf, %v2345_v17  ;;  %v2822_v22 = vsel %vm793_vm13, -inf, %v2361_v25  ;;  %v782_v1 = vshll.u32 %v781_v59, 16 }
 0x301   : > { %v2824_v13 = vadd.s32 %v737_v53, %v735_v40  ;;  %v2826_v14 = vadd.s32 %v722_v61, %v720_v41  ;;  %v894_v60 = vsel %vm463_vm0, %v2816_v33, -inf  ;;  %v891_v55 = vsel %vm463_vm0, %v2822_v22, -inf }
 0x302   : > { %895 = vmax.xlane.f32.xlu0 %v894_v60  ;;  %v764_v37 = vpop.xlane.xlu0 %763  ;;  %892 = vmax.xlane.f32.xlu1 %v891_v55  ;;  %v749_v7 = vpop.xlane.xlu1 %748 }
 0x303   : > { %3811 = vst [vmem:[#allocation36_spill] sm:$0xff] %v2824_v13  ;;  %3812 = vst [vmem:[#allocation37_spill] sm:$0xff] %v2826_v14  ;;  %v765_v39 = vcvt.f32.s32 %v764_v37  ;;  %v750_v8 = vcvt.f32.s32 %v749_v7  ;;  %vm3742_vm14 = vcmp.eq.s32.totalorder %v2407_v49, %v2824_v13  ;;  %vm795_vm15 = vcmp.eq.s32.totalorder %v2407_v49, %v2826_v14 }
 0x304   : > { %v2841_v4 = vsel %vm3742_vm14, -inf, %v2373_v31  ;;  %v2847_v6 = vsel %vm795_vm15, -inf, %v2357_v23  ;;  %v1248_v13 = vsub.f32 %v2347_v18, %v2411_v51  ;;  %v1250_v18 = vsub.f32 %v2343_v16, %v2409_v50 }
 0x305   : > { %v2849_v53 = vadd.s32 %v767_v42, %v765_v39  ;;  %v2851_v61 = vadd.s32 %v752_v43, %v750_v8  ;;  %v900_v44 = vsel %vm463_vm0, %v2841_v4, -inf  ;;  %v897_v63 = vsel %vm463_vm0, %v2847_v6, -inf }
 0x306   : > { %901 = vmax.xlane.f32.xlu0 %v900_v44  ;;  %898 = vmax.xlane.f32.xlu1 %v897_v63  ;;  %v779_v9 = vpop.xlane.xlu1 %778  ;;  %v1264_v48 = vmul.f32 1.442695, %v1248_v13 }
 0x307   : > { %3813 = vst [vmem:[#allocation38_spill] sm:$0xff] %v2849_v53  ;;  %3814 = vst [vmem:[#allocation39_spill] sm:$0xff] %v2851_v61  ;;  %v780_v40 = vcvt.f32.s32 %v779_v9  ;;  %vm3751_vm1 = vcmp.eq.s32.totalorder %v2407_v49, %v2849_v53  ;;  %vm3729_vm2 = vcmp.eq.s32.totalorder %v2407_v49, %v2851_v61 }
 0x308   : > { %v2865_v41 = vsel %vm3751_vm1, -inf, %v2369_v29  ;;  %v2871_v60 = vsel %vm3729_vm2, -inf, %v2383_v36  ;;  %1941 = vpow2.f32 %v1264_v48 }
 0x309   : > { %v2873_v55 = vadd.s32 %v782_v1, %v780_v40  ;;  %v906_v42 = vsel %vm463_vm0, %v2865_v41, -inf  ;;  %v903_v43 = vsel %vm463_vm0, %v2871_v60, -inf }
 0x30a   : > { %907 = vmax.xlane.f32.xlu0 %v906_v42  ;;  %904 = vmax.xlane.f32.xlu1 %v903_v43 }
 0x30b   : > { %3815 = vst [vmem:[#allocation40_spill] sm:$0xff] %v2873_v55  ;;  %vm3730_vm9 = vcmp.eq.s32.totalorder %v2407_v49, %v2873_v55 }
 0x30c   : > { %v2885_v59 = vsel %vm3730_vm9, -inf, %v2379_v34 }
 0x30d   : > { %v909_v37 = vsel %vm463_vm0, %v2885_v59, -inf }
 0x30e   : > { %910 = vmax.xlane.f32.xlu1 %v909_v37 }
 0x37b   : > { %v2889_v7 = vpop.xlane.xlu0 %865 }
 0x37f   : > { %v2891_v39 = vpop.xlane.xlu0 %871  ;;  %v2893_v8 = vpop.xlane.xlu1 %868 }
 0x380   : > { %vm914_vm2 = vcmp.eq.f32.partialorder %v2712_v11, %v2891_v39 }
 0x381   : > { %v930_v44 = vsel %vm914_vm2, %v2407_v49, 8  ;;  %vm913_vm2 = vcmp.eq.f32.partialorder %v2718_v5, %v2893_v8 }
 0x382   : > { %v2899_v63 = vsel %vm463_vm0, %v930_v44, 2147483647  ;;  %v929_v56 = vsel %vm913_vm2, %v2407_v49, 8 }
 0x383   : > { %v2901_v9 = vpop.xlane.xlu0 %877  ;;  %v2903_v1 = vpop.xlane.xlu1 %874  ;;  %v976_v40 = vshra.s32 %v2899_v63, 16 }
 0x384   : > { %3816 = vst [vmem:[#allocation41_spill] sm:$0xff] %v2901_v9  ;;  %vm915_vm9 = vcmp.eq.f32.partialorder %v2744_v52, %v2903_v1 }
 0x385   : > { %v931_v42 = vsel %vm915_vm9, %v2407_v49, 8  ;;  %v2909_v43 = vcvt.s32.f32 %v976_v40  ;;  %vm912_vm9 = vcmp.eq.f32.partialorder %v2694_v2, %v2889_v7 }
 0x386   : > { %v2912_v11 = vsel %vm463_vm0, %v931_v42, 2147483647  ;;  %v928_v40 = vsel %vm912_vm9, %v2407_v49, 8 }
 0x387   : > { %979 = vmin.xlane.f32.xlu0 %v2909_v43  ;;  %v2915_v37 = vpop.xlane.xlu0 %883  ;;  %v2917_v44 = vpop.xlane.xlu1 %880  ;;  %v991_v61 = vshra.s32 %v2912_v11, 16  ;;  %v2947_v53 = vsel %vm463_vm0, %v928_v40, 2147483647 }
 0x388   : > { %3817 = vst [vmem:[#allocation42_spill] sm:$0xff] %v2915_v37  ;;  %3818 = vst [vmem:[#allocation43_spill] sm:$0xff] %v2917_v44 }
 0x389   : > { %v2920_v3 = vcvt.s32.f32 %v991_v61 }
 0x38b   : > { %v2922_v55 = vpop.xlane.xlu0 %889  ;;  %994 = vmin.xlane.f32.xlu1 %v2920_v3  ;;  %v2925_v52 = vpop.xlane.xlu1 %886 }
 0x38c   : > { %3819 = vst [vmem:[#allocation44_spill] sm:$0xff] %v2922_v55  ;;  %3820 = vst [vmem:[#allocation45_spill] sm:$0xff] %v2925_v52  ;;  %vm920_vm11 = vcmp.eq.f32.partialorder %v2788_v38, %v2922_v55  ;;  %vm919_vm2 = vcmp.eq.f32.partialorder %v2798_v62, %v2925_v52  ;;  %v3828_v62 = vld [vmem:[#allocation13_spill] sm:$0xff] }
 0x38d   : > { %v936_v5 = vsel %vm920_vm11, %v2407_v49, 8  ;;  %vm916_vm11 = vcmp.eq.f32.partialorder %v2738_v0, %v2901_v9  ;;  %v1251_v0 = vsub.f32 %v2353_v21, %v2419_v54 }
 0x38e   : > { %v2972_v13 = vsel %vm463_vm0, %v936_v5, 2147483647 }
 0x38f   : > { %v2930_v42 = vpop.xlane.xlu0 %895  ;;  %v2932_v19 = vpop.xlane.xlu1 %892  ;;  %v1066_v58 = vshra.s32 %v2972_v13, 16  ;;  %v1270_v21 = vmul.f32 1.442695, %v1251_v0  ;;  %v1252_v0 = vsub.f32 %v2371_v30, %v3828_v62  ;;  %v3830_v30 = vld [vmem:[#allocation14_spill] sm:$0xff] }
 0x390   : > { %3821 = vst [vmem:[#allocation46_spill] sm:$0xff] %v2930_v42  ;;  %3822 = vst [vmem:[#allocation47_spill] sm:$0xff] %v2932_v19  ;;  %vm922_vm14 = vcmp.eq.f32.partialorder %v2816_v33, %v2930_v42  ;;  %vm921_vm9 = vcmp.eq.f32.partialorder %v2822_v22, %v2932_v19  ;;  %v935_v42 = vsel %vm919_vm2, %v2407_v49, 8 }
 0x391   : > { %v938_v2 = vsel %vm922_vm14, %v2407_v49, 8  ;;  %vm918_vm14 = vcmp.eq.f32.partialorder %v2764_v12, %v2915_v37  ;;  %v2975_v12 = vsel %vm463_vm0, %v929_v56, 2147483647  ;;  %v937_v15 = vsel %vm921_vm9, %v2407_v49, 8 }
 0x392   : > { %v2944_v61 = vsel %vm463_vm0, %v938_v2, 2147483647  ;;  %v946_v2 = vshra.s32 %v2947_v53, 16  ;;  %v934_v22 = vsel %vm918_vm14, %v2407_v49, 8  ;;  %v961_v45 = vshra.s32 %v2975_v12, 16 }
 0x393   : > { %v2953_v47 = vpop.xlane.xlu0 %901  ;;  %v2955_v38 = vpop.xlane.xlu1 %898  ;;  %v1096_v33 = vshra.s32 %v2944_v61, 16  ;;  %v2994_v26 = vsel %vm463_vm0, %v934_v22, 2147483647  ;;  %v2997_v48 = vsel %vm463_vm0, %v937_v15, 2147483647  ;;  %v3008_v22 = vcvt.s32.f32 %v1066_v58 }
 0x394   : > { %3823 = vst [vmem:[#allocation48_spill] sm:$0xff] %v2953_v47  ;;  %3824 = vst [vmem:[#allocation49_spill] sm:$0xff] %v2955_v38  ;;  %vm923_vm1 = vcmp.eq.f32.partialorder %v2847_v6, %v2955_v38  ;;  %v2987_v56 = vcvt.s32.f32 %v946_v2  ;;  %v3010_v15 = vcvt.s32.f32 %v961_v45  ;;  %v1081_v46 = vshra.s32 %v2997_v48, 16 }
 0x395   : > { %v939_v16 = vsel %vm923_vm1, %v2407_v49, 8  ;;  %v2965_v40 = vcvt.s32.f32 %v1096_v33  ;;  %v1268_v33 = vmul.f32 1.442695, %v1250_v18  ;;  %v3051_v52 = vsel %vm463_vm0, %v935_v42, 2147483647 }
 0x396   : > { %v2969_v14 = vsel %vm463_vm0, %v939_v16, 2147483647  ;;  %v1249_v16 = vsub.f32 %v2359_v24, %v2427_v57  ;;  %v932_v24 = vsel %vm916_vm11, %v2407_v49, 8  ;;  %v1253_v37 = vsub.f32 %v2381_v35, %v3830_v30 }
 0x397   : > { %1099 = vmin.xlane.f32.xlu0 %v2965_v40  ;;  %v1111_v6 = vshra.s32 %v2969_v14, 16  ;;  %v2985_v5 = vpop.xlane.xlu0 %907  ;;  %v3000_v18 = vpop.xlane.xlu1 %904  ;;  %1943 = vpow2.f32 %v1268_v33  ;;  %v3015_v38 = vsel %vm463_vm0, %v932_v24, 2147483647  ;;  %vm917_vm9 = vcmp.eq.f32.partialorder %v2770_v27, %v2917_v44 }
 0x398   : > { %3825 = vst [vmem:[#allocation50_spill] sm:$0xff] %v2985_v5  ;;  %3826 = vst [vmem:[#allocation51_spill] sm:$0xff] %v3000_v18  ;;  %v1266_v2 = vmul.f32 1.442695, %v1249_v16  ;;  %vm926_vm1 = vcmp.eq.f32.partialorder %v2865_v41, %v2985_v5  ;;  %v3026_v41 = vcvt.s32.f32 %v1081_v46  ;;  %v1006_v16 = vshra.s32 %v3015_v38, 16  ;;  %v3029_v24 = vpop.eup %1941  ;;  %v3829_v46 = vld [vmem:[#allocation20_spill] sm:$0xff] }
 0x399   : > { %v2989_v10 = vcvt.s32.f32 %v1111_v6  ;;  %v1036_v6 = vshra.s32 %v2994_v26, 16  ;;  %v942_v33 = vsel %vm926_vm1, %v2407_v49, 8  ;;  %v1296_v55 = vsel %vm463_vm0, %v3029_v24, 0.0 }
 0x39a   : > { %1945 = vpow2.f32 %v1266_v2  ;;  %v3032_v5 = vsel %vm463_vm0, %v942_v33, 2147483647  ;;  %v1259_v2 = vsub.f32 %v2357_v23, %v3829_v46  ;;  %v1272_v23 = vmul.f32 1.442695, %v1252_v0 }
 0x39b   : > { %949 = vmin.xlane.f32.xlu0 %v2987_v56  ;;  %1114 = vmin.xlane.f32.xlu1 %v2989_v10  ;;  %v3022_v45 = vpop.xlane.xlu1 %910  ;;  %v3024_v58 = vcvt.s32.f32 %v1036_v6  ;;  %1947 = vpow2.f32 %v1270_v21  ;;  %v3043_v6 = vcvt.s32.f32 %v1006_v16  ;;  %v1156_v33 = vshra.s32 %v3032_v5, 16  ;;  %v3831_v21 = vld [vmem:[#allocation22_spill] sm:$0xff] }
 0x39c   : > { %3827 = vst [vmem:[#allocation52_spill] sm:$0xff] %v3022_v45  ;;  %vm927_vm14 = vcmp.eq.f32.partialorder %v2885_v59, %v3022_v45  ;;  %v1261_v16 = vsub.f32 %v2383_v36, %v3831_v21  ;;  %vm924_vm11 = vcmp.eq.f32.partialorder %v2841_v4, %v2953_v47  ;;  %v1286_v42 = vmul.f32 1.442695, %v1259_v2  ;;  %v3832_v4 = vld [vmem:[#allocation15_spill] sm:$0xff]  ;;  %v3833_v47 = vld [vmem:[#allocation24_spill] sm:$0xff] }
 0x39d   : > { %v943_v59 = vsel %vm927_vm14, %v2407_v49, 8  ;;  %v3063_v45 = vcvt.s32.f32 %v1156_v33  ;;  %v1051_v35 = vshra.s32 %v3051_v52, 16  ;;  %v1274_v36 = vmul.f32 1.442695, %v1253_v37 }
 0x39e   : > { %v933_v21 = vsel %vm917_vm9, %v2407_v49, 8  ;;  %v940_v27 = vsel %vm924_vm11, %v2407_v49, 8  ;;  %1949 = vpow2.f32 %v1272_v23  ;;  %v1254_v2 = vsub.f32 %v2367_v28, %v3832_v4 }
 0x39f   : > { %1069 = vmin.xlane.f32.xlu0 %v3008_v22  ;;  %964 = vmin.xlane.f32.xlu1 %v3010_v15  ;;  %v1290_v33 = vmul.f32 1.442695, %v1261_v16  ;;  %1951 = vpow2.f32 %v1286_v42  ;;  %v3080_v30 = vcvt.s32.f32 %v1051_v35  ;;  %v3086_v62 = vsel %vm463_vm0, %v940_v27, 2147483647 }
 0x3a0   : > { %1953 = vpow2.f32 %v1274_v36  ;;  %v1276_v28 = vmul.f32 1.442695, %v1254_v2  ;;  %v1126_v27 = vshra.s32 %v3086_v62, 16  ;;  %v3835_v36 = vld [vmem:[#allocation17_spill] sm:$0xff]  ;;  %vm925_vm1 = vcmp.eq.f32.partialorder %v2871_v60, %v3000_v18  ;;  %v3837_v18 = vld [vmem:[#allocation19_spill] sm:$0xff] }
 0x3a1   : > { %v3046_v19 = vpop.eup %1943  ;;  %1955 = vpow2.f32 %v1290_v33  ;;  %v1256_v2 = vsub.f32 %v2351_v20, %v3835_v36  ;;  %v941_v36 = vsel %vm925_vm1, %v2407_v49, 8 }
 0x3a2   : > { %v1302_v46 = vsel %vm463_vm0, %v3046_v19, 0.0  ;;  %1957 = vpow2.f32 %v1276_v28 }
 0x3a3   : > { %1039 = vmin.xlane.f32.xlu0 %v3024_v58  ;;  %1084 = vmin.xlane.f32.xlu1 %v3026_v41  ;;  %v1280_v20 = vmul.f32 1.442695, %v1256_v2 }
 0x3a4   : > { %v3071_v0 = vpop.eup %1945 }
 0x3a5   : > { %v1299_v44 = vsel %vm463_vm0, %v3071_v0, 0.0  ;;  %v3091_v23 = vpop.eup %1947 }
 0x3a7   : > { %1009 = vmin.xlane.f32.xlu0 %v3043_v6  ;;  %1297 = vadd.xlane.f32.xlu1 %v1296_v55  ;;  %v3069_v55 = vsel %vm463_vm0, %v943_v59, 2147483647  ;;  %v1263_v59 = vsub.f32 %v2379_v34, %v3833_v47  ;;  %v3834_v34 = vld [vmem:[#allocation16_spill] sm:$0xff] }
 0x3a8   : > { %v1171_v37 = vshra.s32 %v3069_v55, 16  ;;  %v1255_v16 = vsub.f32 %v2375_v32, %v3834_v34  ;;  %v3105_v32 = vcvt.s32.f32 %v1126_v27  ;;  %v3137_v34 = vsel %vm463_vm0, %v941_v36, 2147483647 }
 0x3a9   : > { %v1294_v42 = vmul.f32 1.442695, %v1263_v59  ;;  %v3109_v59 = vpop.eup %1949 }
 0x3aa   : > { %v3096_v35 = vcvt.s32.f32 %v1171_v37  ;;  %v3111_v37 = vpop.eup %1951  ;;  %v1308_v27 = vsel %vm463_vm0, %v3109_v59, 0.0 }
 0x3ab   : > { %1159 = vmin.xlane.f32.xlu0 %v3063_v45  ;;  %1303 = vadd.xlane.f32.xlu1 %v1302_v46  ;;  %v3089_v46 = vsel %vm463_vm0, %v933_v21, 2147483647  ;;  %v1305_v21 = vsel %vm463_vm0, %v3091_v23, 0.0  ;;  %1959 = vpow2.f32 %v1294_v42  ;;  %v3117_v28 = vpop.eup %1953 }
 0x3ac   : > { %v1021_v47 = vshra.s32 %v3089_v46, 16 }
 0x3ae   : > { %v3107_v33 = vcvt.s32.f32 %v1021_v47  ;;  %v3121_v47 = vpop.eup %1955 }
 0x3af   : > { %1300 = vadd.xlane.f32.xlu0 %v1299_v44  ;;  %1054 = vmin.xlane.f32.xlu1 %v3080_v30  ;;  %v1278_v44 = vmul.f32 1.442695, %v1255_v16  ;;  %v3836_v16 = vld [vmem:[#allocation18_spill] sm:$0xff]  ;;  %v3130_v2 = vpop.eup %1957 }
 0x3b0   : > { %v1257_v42 = vsub.f32 %v2361_v25, %v3836_v16  ;;  %v1311_v25 = vsel %vm463_vm0, %v3117_v28, 0.0  ;;  %v1335_v16 = vsel %vm463_vm0, %v3121_v47, 0.0 }
 0x3b1   : > { %1961 = vpow2.f32 %v1278_v44  ;;  %v1258_v44 = vsub.f32 %v2345_v17, %v3837_v18 }
 0x3b2   : > { %1963 = vpow2.f32 %v1280_v20  ;;  %v1282_v60 = vmul.f32 1.442695, %v1257_v42  ;;  %v3839_v42 = vld [vmem:[#allocation21_spill] sm:$0xff] }
 0x3b3   : > { %1306 = vadd.xlane.f32.xlu0 %v1305_v21  ;;  %1174 = vmin.xlane.f32.xlu1 %v3096_v35  ;;  %v1329_v21 = vsel %vm463_vm0, %v3111_v37, 0.0  ;;  %v1284_v20 = vmul.f32 1.442695, %v1258_v44  ;;  %v1260_v17 = vsub.f32 %v2373_v31, %v3839_v42 }
 0x3b4   : > { %1965 = vpow2.f32 %v1282_v60 }
 0x3b5   : > { %v3139_v4 = vpop.eup %1959  ;;  %1967 = vpow2.f32 %v1284_v20  ;;  %v1288_v36 = vmul.f32 1.442695, %v1260_v17 }
 0x3b6   : > { %3838 = vst [vmem:[#allocation53_spill] sm:$0xff] %v3139_v4  ;;  %v1341_v49 = vsel %vm463_vm0, %v3139_v4, 0.0  ;;  %v945_v4 = vand.u32 65535, %v2947_v53 }
 0x3b7   : > { %1129 = vmin.xlane.f32.xlu0 %v3105_v32  ;;  %1024 = vmin.xlane.f32.xlu1 %v3107_v33  ;;  %1969 = vpow2.f32 %v1288_v36 }
 0x3bb   : > { %1309 = vadd.xlane.f32.xlu0 %v1308_v27  ;;  %1330 = vadd.xlane.f32.xlu1 %v1329_v21  ;;  %v1141_v27 = vshra.s32 %v3137_v34, 16  ;;  %v1314_v21 = vsel %vm463_vm0, %v3130_v2, 0.0  ;;  %v3148_v18 = vpop.eup %1961 }
 0x3bc   : > { %v1317_v31 = vsel %vm463_vm0, %v3148_v18, 0.0 }
 0x3bd   : > { %v3152_v44 = vcvt.s32.f32 %v1141_v27 }
 0x3bf   : > { %1312 = vadd.xlane.f32.xlu0 %v1311_v25  ;;  %1336 = vadd.xlane.f32.xlu1 %v1335_v16  ;;  %v3840_v16 = vld [vmem:[#allocation23_spill] sm:$0xff]  ;;  %v3156_v25 = vpop.eup %1963 }
 0x3c0   : > { %v1262_v60 = vsub.f32 %v2369_v29, %v3840_v16  ;;  %v3161_v20 = vpop.eup %1965 }
 0x3c1   : > { %v1323_v29 = vsel %vm463_vm0, %v3161_v20, 0.0  ;;  %v3165_v17 = vpop.eup %1967 }
 0x3c2   : > { %v1292_v42 = vmul.f32 1.442695, %v1262_v60  ;;  %v1326_v27 = vsel %vm463_vm0, %v3165_v17, 0.0 }
 0x3c3   : > { %1315 = vadd.xlane.f32.xlu0 %v1314_v21  ;;  %1342 = vadd.xlane.f32.xlu1 %v1341_v49  ;;  %v1320_v49 = vsel %vm463_vm0, %v3156_v25, 0.0  ;;  %v3169_v21 = vpop.eup %1969 }
 0x3c4   : > { %1971 = vpow2.f32 %v1292_v42  ;;  %v1332_v36 = vsel %vm463_vm0, %v3169_v21, 0.0 }
 0x3c7   : > { %1318 = vadd.xlane.f32.xlu0 %v1317_v31  ;;  %1144 = vmin.xlane.f32.xlu1 %v3152_v44  ;;  %v975_v31 = vand.u32 65535, %v2899_v63 }
 0x3cb   : > { %1321 = vadd.xlane.f32.xlu0 %v1320_v49 }
 0x3ce   : > { %v3173_v60 = vpop.eup %1971 }
 0x3cf   : > { %1324 = vadd.xlane.f32.xlu0 %v1323_v29  ;;  %3841 = vst [vmem:[#allocation54_spill] sm:$0xff] %v3173_v60  ;;  %v1338_v42 = vsel %vm463_vm0, %v3173_v60, 0.0  ;;  %v977_v29 = vcvt.s32.f32 %v975_v31 }
 0x3d3   : > { %1327 = vadd.xlane.f32.xlu0 %v1326_v27  ;;  %v1095_v27 = vand.u32 65535, %v2944_v61 }
 0x3d5   : > { %v1097_v60 = vcvt.s32.f32 %v1095_v27 }
 0x3d7   : > { %1333 = vadd.xlane.f32.xlu0 %v1332_v36 }
 0x3db   : > { %1339 = vadd.xlane.f32.xlu0 %v1338_v42  ;;  %v990_v42 = vand.u32 65535, %v2912_v11 }
 0x3dd   : > { %v992_v31 = vcvt.s32.f32 %v990_v42 }
 0x414   : > { %v3178_v49 = vpop.xlane.xlu0 %979 }
 0x415   : > { %vm981_vm2 = vcmp.eq.f32.partialorder %v2909_v43, %v3178_v49  ;;  %v1065_v43 = vand.u32 65535, %v2972_v13 }
 0x416   : > { %v982_v16 = vsel %vm981_vm2, %v977_v29, inf  ;;  %v1110_v29 = vand.u32 65535, %v2969_v14  ;;  %v960_v14 = vand.u32 65535, %v2975_v12 }
 0x417   : > { %983 = vmin.xlane.f32.xlu0 %v982_v16  ;;  %v947_v16 = vcvt.s32.f32 %v945_v4  ;;  %v1067_v4 = vcvt.s32.f32 %v1065_v43 }
 0x418   : > { %v3184_v9 = vpop.xlane.xlu1 %994  ;;  %v1112_v27 = vcvt.s32.f32 %v1110_v29  ;;  %v962_v12 = vcvt.s32.f32 %v960_v14 }
 0x419   : > { %vm996_vm9 = vcmp.eq.f32.partialorder %v2920_v3, %v3184_v9  ;;  %v1035_v3 = vand.u32 65535, %v2994_v26  ;;  %v1005_v26 = vand.u32 65535, %v3015_v38 }
 0x41b   : > { %v1007_v29 = vcvt.s32.f32 %v1005_v26  ;;  %v1050_v26 = vand.u32 65535, %v3051_v52 }
 0x424   : > { %v3186_v36 = vpop.xlane.xlu0 %1099 }
 0x425   : > { %vm1101_vm14 = vcmp.eq.f32.partialorder %v2965_v40, %v3186_v36  ;;  %v997_v40 = vsel %vm996_vm9, %v992_v31, inf }
 0x426   : > { %v1102_v63 = vsel %vm1101_vm14, %v1097_v60, inf }
 0x427   : > { %1103 = vmin.xlane.f32.xlu1 %v1102_v63 }
 0x428   : > { %v3194_v61 = vpop.xlane.xlu0 %949  ;;  %v3196_v53 = vpop.xlane.xlu1 %1114 }
 0x429   : > { %vm951_vm11 = vcmp.eq.f32.partialorder %v2987_v56, %v3194_v61  ;;  %vm1116_vm1 = vcmp.eq.f32.partialorder %v2989_v10, %v3196_v53  ;;  %v1080_v10 = vand.u32 65535, %v2997_v48  ;;  %v1155_v48 = vand.u32 65535, %v3032_v5 }
 0x42a   : > { %v952_v11 = vsel %vm951_vm11, %v947_v16, inf  ;;  %v1117_v42 = vsel %vm1116_vm1, %v1112_v27, inf  ;;  %v1037_v16 = vcvt.s32.f32 %v1035_v3 }
 0x42b   : > { %953 = vmin.xlane.f32.xlu0 %v952_v11  ;;  %998 = vmin.xlane.f32.xlu1 %v997_v40  ;;  %v1082_v11 = vcvt.s32.f32 %v1080_v10 }
 0x42c   : > { %v3204_v13 = vpop.xlane.xlu0 %1069  ;;  %v3206_v60 = vpop.xlane.xlu1 %964 }
 0x42d   : > { %vm1071_vm2 = vcmp.eq.f32.partialorder %v3008_v22, %v3204_v13  ;;  %vm966_vm14 = vcmp.eq.f32.partialorder %v3010_v15, %v3206_v60 }
 0x42e   : > { %v1072_v56 = vsel %vm1071_vm2, %v1067_v4, inf  ;;  %v967_v31 = vsel %vm966_vm14, %v962_v12, inf }
 0x42f   : > { %1073 = vmin.xlane.f32.xlu0 %v1072_v56  ;;  %1118 = vmin.xlane.f32.xlu1 %v1117_v42 }
 0x430   : > { %v3215_v63 = vpop.xlane.xlu0 %1039  ;;  %v3217_v43 = vpop.xlane.xlu1 %1084 }
 0x431   : > { %vm1041_vm9 = vcmp.eq.f32.partialorder %v3024_v58, %v3215_v63  ;;  %vm1086_vm11 = vcmp.eq.f32.partialorder %v3026_v41, %v3217_v43  ;;  %v1157_v41 = vcvt.s32.f32 %v1155_v48 }
 0x432   : > { %v1042_v22 = vsel %vm1041_vm9, %v1037_v16, inf  ;;  %v1087_v3 = vsel %vm1086_vm11, %v1082_v11, inf }
 0x433   : > { %1043 = vmin.xlane.f32.xlu0 %v1042_v22  ;;  %968 = vmin.xlane.f32.xlu1 %v967_v31 }
 0x434   : > { %v3224_v15 = vpop.xlane.xlu0 %1009  ;;  %v1298_v38 = vpop.xlane.xlu1 %1297 }
 0x435   : > { %vm1011_vm1 = vcmp.eq.f32.partialorder %v3043_v6, %v3224_v15  ;;  %1973 = vrcp.f32 %v1298_v38  ;;  %v1125_v6 = vand.u32 65535, %v3086_v62  ;;  %v1170_v38 = vand.u32 65535, %v3069_v55 }
 0x436   : > { %v1012_v40 = vsel %vm1011_vm1, %v1007_v29, inf }
 0x437   : > { %1013 = vmin.xlane.f32.xlu0 %v1012_v40  ;;  %1088 = vmin.xlane.f32.xlu1 %v1087_v3  ;;  %v1052_v3 = vcvt.s32.f32 %v1050_v26 }
 0x438   : > { %v3228_v58 = vpop.xlane.xlu0 %1159  ;;  %v1304_v4 = vpop.xlane.xlu1 %1303 }
 0x439   : > { %vm1161_vm2 = vcmp.eq.f32.partialorder %v3063_v45, %v3228_v58  ;;  %1975 = vrcp.f32 %v1304_v4  ;;  %v1127_v45 = vcvt.s32.f32 %v1125_v6  ;;  %v1172_v6 = vcvt.s32.f32 %v1170_v38 }
 0x43a   : > { %v1162_v5 = vsel %vm1161_vm2, %v1157_v41, inf }
 0x43b   : > { %1163 = vmin.xlane.f32.xlu1 %v1162_v5 }
 0x43c   : > { %v1301_v27 = vpop.xlane.xlu0 %1300  ;;  %v3232_v14 = vpop.xlane.xlu1 %1054 }
 0x43d   : > { %1977 = vrcp.f32 %v1301_v27  ;;  %vm1056_vm9 = vcmp.eq.f32.partialorder %v3080_v30, %v3232_v14  ;;  %v1020_v30 = vand.u32 65535, %v3089_v46 }
 0x43e   : > { %v1057_v4 = vsel %vm1056_vm9, %v1052_v3, inf }
 0x43f   : > { %v1974_v10 = vpop.eup %1973 }
 0x440   : > { %v1307_v56 = vpop.xlane.xlu0 %1306  ;;  %v3235_v42 = vpop.xlane.xlu1 %1174  ;;  %v1345_v31 = vmul.f32 %v1974_v10, %v3029_v24 }
 0x441   : > { %1979 = vrcp.f32 %v1307_v56  ;;  %vm1176_vm11 = vcmp.eq.f32.partialorder %v3096_v35, %v3235_v42  ;;  %v1140_v35 = vand.u32 65535, %v3137_v34 }
 0x442   : > { %v1177_v26 = vsel %vm1176_vm11, %v1172_v6, inf }
 0x443   : > { %v1976_v22 = vpop.eup %1975 }
 0x444   : > { %v3238_v16 = vpop.xlane.xlu0 %1129  ;;  %v3240_v12 = vpop.xlane.xlu1 %1024  ;;  %v1349_v52 = vmul.f32 %v1976_v22, %v3046_v19 }
 0x445   : > { %vm1131_vm14 = vcmp.eq.f32.partialorder %v3105_v32, %v3238_v16  ;;  %v1475_v32 = vsel %vm463_vm0, %v1345_v31, 0.0  ;;  %vm1026_vm1 = vcmp.eq.f32.partialorder %v3107_v33, %v3240_v12  ;;  %v1022_v31 = vcvt.s32.f32 %v1020_v30 }
 0x446   : > { %v1132_v48 = vsel %vm1131_vm14, %v1127_v45, inf  ;;  %v1478_v19 = vsel %vm463_vm0, %v1349_v52, 0.0  ;;  %vm1376_vm14 = vcmask 7168  }
 0x447   : > { %v1978_v62 = vpop.eup %1977  ;;  %1133 = vmin.xlane.f32.xlu1 %v1132_v48 }
 0x448   : > { %v1347_v29 = vmul.f32 %v1978_v62, %v3071_v0  ;;  %v1310_v11 = vpop.xlane.xlu0 %1309  ;;  %v1331_v40 = vpop.xlane.xlu1 %1330 }
 0x449   : > { %1981 = vrcp.f32 %v1310_v11 }
 0x44a   : > { %v1476_v24 = vsel %vm463_vm0, %v1347_v29, 0.0  ;;  %v1142_v29 = vcvt.s32.f32 %v1140_v35 }
 0x44b   : > { %v1980_v41 = vpop.eup %1979  ;;  %v1477_v5 = vadd.f32 %v1476_v24, %v1475_v32  ;;  %1058 = vmin.xlane.f32.xlu1 %v1057_v4 }
 0x44c   : > { %v1351_v55 = vmul.f32 %v1980_v41, %v3091_v23  ;;  %v1313_v0 = vpop.xlane.xlu0 %1312  ;;  %v1337_v27 = vpop.xlane.xlu1 %1336  ;;  %v1027_v23 = vsel %vm1026_vm1, %v1022_v31, inf }
 0x44d   : > { %v1479_v56 = vadd.f32 %v1478_v19, %v1477_v5  ;;  %1983 = vrcp.f32 %v1313_v0 }
 0x44e   : > { %v1480_v10 = vsel %vm463_vm0, %v1351_v55, 0.0 }
 0x44f   : > { %v1481_v45 = vadd.f32 %v1480_v10, %v1479_v56  ;;  %1178 = vmin.xlane.f32.xlu1 %v1177_v26 }
 0x450   : > { %v1316_v46 = vpop.xlane.xlu0 %1315  ;;  %v1343_v22 = vpop.xlane.xlu1 %1342 }
 0x451   : > { %1985 = vrcp.f32 %v1316_v46  ;;  %v1378_v46 = vsel %vm1376_vm14, %v2427_v57, %v2893_v8 }
 0x453   : > { %v1982_v48 = vpop.eup %1981  ;;  %1028 = vmin.xlane.f32.xlu1 %v1027_v23 }
 0x454   : > { %v1353_v62 = vmul.f32 %v1982_v48, %v3109_v59  ;;  %v1319_v38 = vpop.xlane.xlu0 %1318  ;;  %v3262_v52 = vpop.xlane.xlu1 %1144 }
 0x455   : > { %1987 = vrcp.f32 %v1319_v38  ;;  %vm1146_vm2 = vcmp.eq.f32.partialorder %v3152_v44, %v3262_v52 }
 0x456   : > { %v1482_v33 = vsel %vm463_vm0, %v1353_v62, 0.0  ;;  %v1147_v34 = vsel %vm1146_vm2, %v1142_v29, inf  ;;  %v1380_v29 = vsel %vm1376_vm14, %v2419_v54, %v2903_v1  ;;  %v3844_v54 = vld [vmem:[#allocation53_spill] sm:$0xff] }
 0x457   : > { %v1984_v11 = vpop.eup %1983  ;;  %v1483_v3 = vadd.f32 %v1482_v33, %v1481_v45  ;;  %1148 = vmin.xlane.f32.xlu1 %v1147_v34 }
 0x458   : > { %v1355_v32 = vmul.f32 %v1984_v11, %v3117_v28  ;;  %v1322_v24 = vpop.xlane.xlu0 %1321 }
 0x459   : > { %1989 = vrcp.f32 %v1322_v24  ;;  %v3843_v24 = vld [vmem:[#allocation13_spill] sm:$0xff] }
 0x45a   : > { %v1484_v59 = vsel %vm463_vm0, %v1355_v32, 0.0  ;;  %v3842_v32 = vld [vmem:[#allocation41_spill] sm:$0xff] }
 0x45b   : > { %v1986_v4 = vpop.eup %1985  ;;  %v1485_v41 = vadd.f32 %v1484_v59, %v1483_v3  ;;  %v1381_v59 = vsel %vm1376_vm14, %v3843_v24, %v3842_v32 }
 0x45c   : > { %v1357_v5 = vmul.f32 %v1986_v4, %v3130_v2  ;;  %v1325_v30 = vpop.xlane.xlu0 %1324  ;;  %v1377_v2 = vsel %vm1376_vm14, %v2411_v51, %v2889_v7 }
 0x45d   : > { %1991 = vrcp.f32 %v1325_v30 }
 0x45e   : > { %v1486_v44 = vsel %vm463_vm0, %v1357_v5, 0.0  ;;  %1993 = vrcp.f32 %v1331_v40 }
 0x45f   : > { %v1988_v19 = vpop.eup %1987  ;;  %v1487_v55 = vadd.f32 %v1486_v44, %v1485_v41  ;;  %v3845_v41 = vld [vmem:[#allocation54_spill] sm:$0xff]  ;;  %v3846_v44 = vld [vmem:[#allocation43_spill] sm:$0xff] }
 0x460   : > { %v1359_v0 = vmul.f32 %v1988_v19, %v3148_v18  ;;  %v1328_v6 = vpop.xlane.xlu0 %1327  ;;  %v3847_v19 = vld [vmem:[#allocation14_spill] sm:$0xff] }
 0x461   : > { %1995 = vrcp.f32 %v1328_v6 }
 0x462   : > { %v1488_v28 = vsel %vm463_vm0, %v1359_v0, 0.0  ;;  %1997 = vrcp.f32 %v1337_v27 }
 0x463   : > { %v1990_v56 = vpop.eup %1989  ;;  %v1489_v10 = vadd.f32 %v1488_v28, %v1487_v55  ;;  %v1382_v55 = vsel %vm1376_vm14, %v3847_v19, %v3846_v44  ;;  %v3848_v28 = vld [vmem:[#allocation42_spill] sm:$0xff]  ;;  %v956_v19 = vcvt.f32.s32 %v3194_v61 }
 0x464   : > { %v1361_v26 = vmul.f32 %v1990_v56, %v3156_v25  ;;  %1393 = vxpose.xlu0.b32.start [1/16] (narrow) %v1377_v2, 8  ;;  %v1334_v45 = vpop.xlane.xlu0 %1333  ;;  %v1379_v25 = vsel %vm1376_vm14, %v2409_v50, %v2891_v39  ;;  %v3849_v56 = vld [vmem:[#allocation15_spill] sm:$0xff]  ;;  %v3850_v2 = vld [vmem:[#allocation45_spill] sm:$0xff] }
 0x465   : > { %1999 = vrcp.f32 %v1334_v45 }
 0x466   : > { %v1490_v40 = vsel %vm463_vm0, %v1361_v26, 0.0  ;;  %2001 = vrcp.f32 %v1343_v22  ;;  %v3851_v26 = vld [vmem:[#allocation16_spill] sm:$0xff] }
 0x467   : > { %v1992_v18 = vpop.eup %1991  ;;  %v1491_v35 = vadd.f32 %v1490_v40, %v1489_v10  ;;  %v1383_v10 = vsel %vm1376_vm14, %v3849_v56, %v3848_v28  ;;  %v1384_v45 = vsel %vm1376_vm14, %v3851_v26, %v3850_v2  ;;  %v3852_v40 = vld [vmem:[#allocation44_spill] sm:$0xff]  ;;  %v1121_v56 = vcvt.f32.s32 %v3196_v53  ;;  %v3871_v53 = vld [vmem:[#allocation25_spill] sm:$0xff] }
 0x468   : > { %v1363_v27 = vmul.f32 %v1992_v18, %v3161_v20  ;;  %v1340_v31 = vpop.xlane.xlu0 %1339  ;;  %1394 = vxpose.xlu0.b32.cont [2/16] (narrow) %v1378_v46, 8  ;;  %v1994_v23 = vpop.eup %1993  ;;  %v3853_v18 = vld [vmem:[#allocation17_spill] sm:$0xff]  ;;  %v3854_v46 = vld [vmem:[#allocation47_spill] sm:$0xff] }
 0x469   : > { %2003 = vrcp.f32 %v1340_v31  ;;  %v1367_v22 = vmul.f32 %v1994_v23, %v3111_v37  ;;  %v3856_v23 = vld [vmem:[#allocation46_spill] sm:$0xff] }
 0x46a   : > { %v1492_v51 = vsel %vm463_vm0, %v1363_v27, 0.0  ;;  %v3855_v27 = vld [vmem:[#allocation18_spill] sm:$0xff] }
 0x46b   : > { %v1996_v7 = vpop.eup %1995  ;;  %v1493_v57 = vadd.f32 %v1492_v51, %v1491_v35  ;;  %v1496_v33 = vsel %vm463_vm0, %v1367_v22, 0.0  ;;  %v1385_v35 = vsel %vm1376_vm14, %v3853_v18, %v3852_v40  ;;  %v1386_v31 = vsel %vm1376_vm14, %v3855_v27, %v3854_v46  ;;  %v3857_v51 = vld [vmem:[#allocation19_spill] sm:$0xff]  ;;  %v3859_v22 = vld [vmem:[#allocation20_spill] sm:$0xff]  ;;  %v3870_v40 = vld [vmem:[#allocation34_spill] sm:$0xff] }
 0x46c   : > { %v1365_v48 = vmul.f32 %v1996_v7, %v3165_v17  ;;  %1395 = vxpose.xlu0.b32.cont [3/16] (narrow) %v1379_v25, 8  ;;  %v1998_v62 = vpop.eup %1997  ;;  %v1387_v7 = vsel %vm1376_vm14, %v3857_v51, %v3856_v23  ;;  %v3858_v25 = vld [vmem:[#allocation49_spill] sm:$0xff]  ;;  %v1122_v51 = vshll.u32 %v1121_v56, 16  ;;  %v1166_v56 = vcvt.f32.s32 %v3228_v58 }
 0x46d   : > { %v1371_v34 = vmul.f32 %v1998_v62, %v3121_v47  ;;  %v3860_v62 = vld [vmem:[#allocation48_spill] sm:$0xff] }
 0x46e   : > { %v1494_v8 = vsel %vm463_vm0, %v1365_v48, 0.0  ;;  %v1388_v48 = vsel %vm1376_vm14, %v3859_v22, %v3858_v25  ;;  %v971_v25 = vcvt.f32.s32 %v3206_v60 }
 0x46f   : > { %v2000_v20 = vpop.eup %1999  ;;  %v1495_v38 = vadd.f32 %v1494_v8, %v1493_v57  ;;  %v1500_v4 = vsel %vm463_vm0, %v1371_v34, 0.0  ;;  %v3861_v57 = vld [vmem:[#allocation21_spill] sm:$0xff]  ;;  %v3865_v34 = vld [vmem:[#allocation23_spill] sm:$0xff] }
 0x470   : > { %v1369_v50 = vmul.f32 %v2000_v20, %v3169_v21  ;;  %1396 = vxpose.xlu0.b32.cont [4/16] (narrow) %v1380_v29, 8  ;;  %v2002_v39 = vpop.eup %2001  ;;  %v1389_v8 = vsel %vm1376_vm14, %v3861_v57, %v3860_v62  ;;  %v3862_v20 = vld [vmem:[#allocation51_spill] sm:$0xff]  ;;  %v1046_v62 = vcvt.f32.s32 %v3215_v63 }
 0x471   : > { %v1497_v37 = vadd.f32 %v1496_v33, %v1495_v38  ;;  %v1375_v1 = vmul.f32 %v2002_v39, %v3844_v54  ;;  %v3863_v38 = vld [vmem:[#allocation22_spill] sm:$0xff]  ;;  %v986_v39 = vcvt.f32.s32 %v3178_v49  ;;  %v2166_v54 = vmov 0.0   ;;  %v3873_v63 = vld [vmem:[#allocation27_spill] sm:$0xff] }
 0x472   : > { %v1498_v17 = vsel %vm463_vm0, %v1369_v50, 0.0  ;;  %v1390_v29 = vsel %vm1376_vm14, %v3863_v38, %v3862_v20  ;;  %v3864_v33 = vld [vmem:[#allocation50_spill] sm:$0xff]  ;;  %v1771_v61 = vsel %vm794_vm12, 1.0, %v2166_v54  ;;  %v1764_v23 = vsel %vm787_vm7, 1.0, %v2166_v54 }
 0x473   : > { %v2004_v11 = vpop.eup %2003  ;;  %v1499_v3 = vadd.f32 %v1498_v17, %v1497_v37  ;;  %v1504_v0 = vsel %vm463_vm0, %v1375_v1, 0.0  ;;  %v1391_v50 = vsel %vm1376_vm14, %v3865_v34, %v3864_v33  ;;  %v3866_v37 = vld [vmem:[#allocation52_spill] sm:$0xff]  ;;  %v987_v32 = vshll.u32 %v986_v39, 16  ;;  %v3869_v1 = vld [vmem:[#allocation26_spill] sm:$0xff] }
 0x474   : > { %v1373_v5 = vmul.f32 %v2004_v11, %v3845_v41  ;;  %1397 = vxpose.xlu0.b32.cont [5/16] (narrow) %v1381_v59, 8  ;;  %v3867_v17 = vld [vmem:[#allocation24_spill] sm:$0xff]  ;;  %v1763_v41 = vsel %vm786_vm4, 1.0, %v2166_v54 }
 0x475   : > { %v1501_v47 = vadd.f32 %v1500_v4, %v1499_v3  ;;  %v1392_v11 = vsel %vm1376_vm14, %v3867_v17, %v3866_v37  ;;  %v3868_v4 = vld [vmem:[#allocation12_spill] sm:$0xff]  ;;  %v1769_v37 = vsel %vm792_vm10, 1.0, %v2166_v54  ;;  %v1091_v17 = vcvt.f32.s32 %v3217_v43  ;;  %v3875_v43 = vld [vmem:[#allocation37_spill] sm:$0xff] }
 0x476   : > { %v1502_v21 = vsel %vm463_vm0, %v1373_v5, 0.0  ;;  %v3874_v39 = vld [vmem:[#allocation32_spill] sm:$0xff] }
 0x477   : > { %v1503_v30 = vadd.f32 %v1502_v21, %v1501_v47  ;;  %v1106_v47 = vcvt.f32.s32 %v3186_v36  ;;  %v1001_v21 = vcvt.f32.s32 %v3184_v9 }
 0x478   : > { %1398 = vxpose.xlu0.b32.cont [6/16] (narrow) %v1382_v55, 8 }
 0x479   : > { %v3307_v6 = vadd.f32 %v1504_v0, %v1503_v30  ;;  %v1107_v44 = vshll.u32 %v1106_v47, 16  ;;  %v1002_v28 = vshll.u32 %v1001_v21, 16  ;;  %v972_v47 = vshll.u32 %v971_v25, 16  ;;  %v3877_v25 = vld [vmem:[#allocation28_spill] sm:$0xff] }
 0x47c   : > { %1399 = vxpose.xlu0.b32.cont [7/16] (narrow) %v1383_v10, 8  ;;  %v1076_v10 = vcvt.f32.s32 %v3204_v13  ;;  %v1761_v13 = vsel %vm784_vm3, 1.0, %v2166_v54 }
 0x480   : > { %1400 = vxpose.xlu0.b32.cont [8/16] (narrow) %v1384_v45, 8  ;;  %v957_v45 = vshll.u32 %v956_v19, 16 }
 0x484   : > { %1401 = vxpose.xlu0.b32.cont [9/16] (narrow) %v1385_v35, 8 }
 0x488   : > { %1402 = vxpose.xlu0.b32.cont [10/16] (narrow) %v1386_v31, 8  ;;  %v3872_v31 = vld [vmem:[#allocation29_spill] sm:$0xff] }
 0x48c   : > { %1403 = vxpose.xlu0.b32.cont [11/16] (narrow) %v1387_v7, 8  ;;  %v1077_v7 = vshll.u32 %v1076_v10, 16 }
 0x490   : > { %1404 = vxpose.xlu0.b32.cont [12/16] (narrow) %v1388_v48, 8 }
 0x494   : > { %1405 = vxpose.xlu0.b32.cont [13/16] (narrow) %v1389_v8, 8 }
 0x498   : > { %1406 = vxpose.xlu0.b32.cont [14/16] (narrow) %v1390_v29, 8 }
 0x49c   : > { %1407 = vxpose.xlu0.b32.cont [15/16] (narrow) %v1391_v50, 8  ;;  %v1762_v50 = vsel %vm785_vm5, 1.0, %v2166_v54 }
 0x4a0   : > { %1408 = vxpose.xlu0.b32.end [16/16] (narrow) %v1392_v11, 8 }
 0x4a4   : > { %v984_v3 = vpop.xlane.xlu0 %983 }
 0x4a5   : > { %v985_v24 = vcvt.f32.s32 %v984_v3 }
 0x4a7   : > { %v3340_v59 = vadd.s32 %v987_v32, %v985_v24  ;;  %v1047_v24 = vshll.u32 %v1046_v62, 16  ;;  %v1770_v62 = vsel %vm793_vm13, 1.0, %v2166_v54 }
 0x4a9   : > { %vm1186_vm9 = vcmp.eq.s32.totalorder %v3868_v4, %v3340_v59 }
 0x4aa   : > { %v1779_v49 = vsel %vm1186_vm9, 1.0, %v2166_v54 }
 0x4ab   : > { %v3349_v5 = vadd.f32 %v1779_v49, %v1763_v41  ;;  %v1016_v41 = vcvt.f32.s32 %v3224_v15 }
 0x4b4   : > { %v1104_v30 = vpop.xlane.xlu1 %1103 }
 0x4b5   : > { %v1105_v55 = vcvt.f32.s32 %v1104_v30 }
 0x4b7   : > { %v3354_v0 = vadd.s32 %v1107_v44, %v1105_v55  ;;  %v1772_v44 = vsel %vm795_vm15, 1.0, %v2166_v54 }
 0x4b8   : > { %v954_v2 = vpop.xlane.xlu0 %953  ;;  %v999_v26 = vpop.xlane.xlu1 %998 }
 0x4b9   : > { %vm1194_vm4 = vcmp.eq.s32.totalorder %v3868_v4, %v3354_v0  ;;  %v955_v36 = vcvt.f32.s32 %v954_v2  ;;  %v1000_v9 = vcvt.f32.s32 %v999_v26 }
 0x4ba   : > { %v1787_v18 = vsel %vm1194_vm4, 1.0, %v2166_v54 }
 0x4bb   : > { %v3369_v35 = vadd.f32 %v1787_v18, %v1771_v61  ;;  %v958_v46 = vadd.s32 %v957_v45, %v955_v36  ;;  %v3371_v27 = vadd.s32 %v1002_v28, %v1000_v9  ;;  %v1092_v28 = vshll.u32 %v1091_v17, 16  ;;  %v3876_v18 = vld [vmem:[#allocation30_spill] sm:$0xff] }
 0x4bc   : > { %v1074_v22 = vpop.xlane.xlu0 %1073  ;;  %v1119_v48 = vpop.xlane.xlu1 %1118  ;;  %v1017_v36 = vshll.u32 %v1016_v41, 16 }
 0x4bd   : > { %vm1184_vm3 = vcmp.eq.s32.totalorder %v3868_v4, %v958_v46  ;;  %vm1187_vm12 = vcmp.eq.s32.totalorder %v3868_v4, %v3371_v27  ;;  %v1075_v57 = vcvt.f32.s32 %v1074_v22  ;;  %v1120_v38 = vcvt.f32.s32 %v1119_v48  ;;  %v3878_v48 = vld [vmem:[#allocation35_spill] sm:$0xff] }
 0x4be   : > { %v1777_v8 = vsel %vm1184_vm3, 1.0, %v2166_v54  ;;  %v1780_v20 = vsel %vm1187_vm12, 1.0, %v2166_v54  ;;  %v1426_v29 = vsel %vm1376_vm14, %v3871_v53, %v958_v46  ;;  %v1767_v53 = vsel %vm790_vm8, 1.0, %v2166_v54 }
 0x4bf   : > { %v1232_v33 = vadd.f32 %v1777_v8, %v1761_v13  ;;  %v1235_v60 = vadd.f32 %v1780_v20, %v1764_v23  ;;  %v3386_v34 = vadd.s32 %v1077_v7, %v1075_v57  ;;  %1442 = vxpose.xlu1.b32.start [1/16] (narrow) %v1426_v29, 8  ;;  %v3397_v11 = vadd.s32 %v1122_v51, %v1120_v38 }
 0x4c0   : > { %v1044_v3 = vpop.xlane.xlu0 %1043  ;;  %v969_v32 = vpop.xlane.xlu1 %968  ;;  %v1765_v22 = vsel %vm788_vm6, 1.0, %v2166_v54  ;;  %v1167_v57 = vshll.u32 %v1166_v56, 16  ;;  %v1428_v29 = vsel %vm1376_vm14, %v3869_v1, %v3340_v59  ;;  %v3879_v59 = vld [vmem:[#allocation38_spill] sm:$0xff] }
 0x4c1   : > { %vm1192_vm7 = vcmp.eq.s32.totalorder %v3868_v4, %v3386_v34  ;;  %v1045_v49 = vcvt.f32.s32 %v1044_v3  ;;  %vm1195_vm5 = vcmp.eq.s32.totalorder %v3868_v4, %v3397_v11  ;;  %v970_v30 = vcvt.f32.s32 %v969_v32 }
 0x4c2   : > { %v1785_v21 = vsel %vm1192_vm7, 1.0, %v2166_v54  ;;  %v1788_v15 = vsel %vm1195_vm5, 1.0, %v2166_v54  ;;  %vm3880_vm13 = vcmp.eq.s32.totalorder %v3868_v4, %v3879_v59 }
 0x4c3   : > { %v3409_v19 = vadd.f32 %v1785_v21, %v1769_v37  ;;  %v3412_v55 = vadd.s32 %v1047_v24, %v1045_v49  ;;  %v3415_v10 = vadd.f32 %v1788_v15, %v1772_v44  ;;  %v973_v2 = vadd.s32 %v972_v47, %v970_v30 }
 0x4c4   : > { %v1014_v26 = vpop.xlane.xlu0 %1013  ;;  %v1089_v45 = vpop.xlane.xlu1 %1088  ;;  %v1515_v49 = vsel %vm463_vm0, %v3349_v5, 0.0  ;;  %v1775_v1 = vsel %vm3880_vm13, 1.0, %v2166_v54  ;;  %v1429_v30 = vsel %vm1376_vm14, %v3872_v31, %v3371_v27 }
 0x4c5   : > { %vm1190_vm10 = vcmp.eq.s32.totalorder %v3868_v4, %v3412_v55  ;;  %v1015_v9 = vcvt.f32.s32 %v1014_v26  ;;  %v1090_v61 = vcvt.f32.s32 %v1089_v45  ;;  %vm1185_vm15 = vcmp.eq.s32.totalorder %v3868_v4, %v973_v2 }
 0x4c6   : > { %v1783_v13 = vsel %vm1190_vm10, 1.0, %v2166_v54  ;;  %v1427_v58 = vsel %vm1376_vm14, %v3873_v63, %v973_v2  ;;  %v1778_v23 = vsel %vm1185_vm15, 1.0, %v2166_v54  ;;  %v1512_v63 = vsel %vm463_vm0, %v1232_v33, 0.0 }
 0x4c7   : > { %v3427_v46 = vadd.f32 %v1783_v13, %v1767_v53  ;;  %v1018_v51 = vadd.s32 %v1017_v36, %v1015_v9  ;;  %v3430_v7 = vadd.s32 %v1092_v28, %v1090_v61  ;;  %1443 = vxpose.xlu1.b32.cont [2/16] (narrow) %v1427_v58, 8  ;;  %v1233_v8 = vadd.f32 %v1778_v23, %v1762_v50  ;;  %v3881_v53 = vld [vmem:[#allocation36_spill] sm:$0xff] }
 0x4c8   : > { %v1164_v20 = vpop.xlane.xlu1 %1163  ;;  %v1517_v33 = vsel %vm463_vm0, %v1235_v60, 0.0  ;;  %v1136_v28 = vcvt.f32.s32 %v3238_v16  ;;  %v1061_v26 = vcvt.f32.s32 %v3232_v14  ;;  %v1181_v61 = vcvt.f32.s32 %v3235_v42 }
 0x4c9   : > { %vm1188_vm8 = vcmp.eq.s32.totalorder %v3868_v4, %v1018_v51  ;;  %vm1193_vm11 = vcmp.eq.s32.totalorder %v3868_v4, %v3430_v7  ;;  %v1165_v38 = vcvt.f32.s32 %v1164_v20  ;;  %v1513_v37 = vsel %vm463_vm0, %v1233_v8, 0.0 }
 0x4ca   : > { %v1781_v17 = vsel %vm1188_vm8, 1.0, %v2166_v54  ;;  %v1786_v3 = vsel %vm1193_vm11, 1.0, %v2166_v54  ;;  %v1514_v50 = vadd.f32 %v1513_v37, %v1512_v63  ;;  %v1430_v2 = vsel %vm1376_vm14, %v3877_v25, %v1018_v51  ;;  %v3885_v37 = vld [vmem:[#allocation40_spill] sm:$0xff] }
 0x4cb   : > { %v1236_v32 = vadd.f32 %v1781_v17, %v1765_v22  ;;  %v3450_v24 = vadd.f32 %v1786_v3, %v1770_v62  ;;  %v3452_v41 = vadd.s32 %v1167_v57, %v1165_v38  ;;  %1444 = vxpose.xlu1.b32.cont [3/16] (narrow) %v1428_v29, 8  ;;  %v1137_v45 = vshll.u32 %v1136_v28, 16  ;;  %v3883_v62 = vld [vmem:[#allocation33_spill] sm:$0xff] }
 0x4cc   : > { %v1516_v47 = vadd.f32 %v1515_v49, %v1514_v50  ;;  %v1062_v9 = vshll.u32 %v1061_v26, 16  ;;  %vm3882_vm2 = vcmp.eq.s32.totalorder %v3868_v4, %v3881_v53  ;;  %v1182_v51 = vshll.u32 %v1181_v61, 16 }
 0x4cd   : > { %vm1198_vm6 = vcmp.eq.s32.totalorder %v3868_v4, %v3452_v41  ;;  %v1519_v5 = vsel %vm463_vm0, %v1236_v32, 0.0  ;;  %v1773_v13 = vsel %vm3882_vm2, 1.0, %v2166_v54  ;;  %v1031_v25 = vcvt.f32.s32 %v3240_v12 }
 0x4ce   : > { %v1791_v21 = vsel %vm1198_vm6, 1.0, %v2166_v54  ;;  %v1518_v44 = vadd.f32 %v1517_v33, %v1516_v47  ;;  %vm3884_vm4 = vcmp.eq.s32.totalorder %v3868_v4, %v3883_v62  ;;  %vm3886_vm12 = vcmp.eq.s32.totalorder %v3868_v4, %v3885_v37  ;;  %v3887_v33 = vld [vmem:[#allocation31_spill] sm:$0xff] }
 0x4cf   : > { %v3467_v15 = vadd.f32 %v1791_v21, %v1775_v1  ;;  %1445 = vxpose.xlu1.b32.cont [4/16] (narrow) %v1429_v30, 8  ;;  %v1768_v57 = vsel %vm3884_vm4, 1.0, %v2166_v54  ;;  %v1032_v12 = vshll.u32 %v1031_v25, 16  ;;  %v1776_v17 = vsel %vm3886_vm12, 1.0, %v2166_v54 }
 0x4d0   : > { %v3471_v56 = vadd.f32 %v1519_v5, %v1518_v44  ;;  %v1151_v1 = vcvt.f32.s32 %v3262_v52  ;;  %vm3888_vm5 = vcmp.eq.s32.totalorder %v3868_v4, %v3887_v33 }
 0x4d1   : > { %v1766_v30 = vsel %vm3888_vm5, 1.0, %v2166_v54 }
 0x4d3   : > { %1446 = vxpose.xlu1.b32.cont [5/16] (narrow) %v1430_v2, 8 }
 0x4d4   : > { %v1134_v60 = vpop.xlane.xlu1 %1133 }
 0x4d5   : > { %v1135_v27 = vcvt.f32.s32 %v1134_v60 }
 0x4d7   : > { %v3476_v31 = vadd.s32 %v1137_v45, %v1135_v27 }
 0x4d8   : > { %v1059_v36 = vpop.xlane.xlu1 %1058 }
 0x4d9   : > { %vm1196_vm1 = vcmp.eq.s32.totalorder %v3868_v4, %v3476_v31  ;;  %v1060_v16 = vcvt.f32.s32 %v1059_v36 }
 0x4da   : > { %v1789_v58 = vsel %vm1196_vm1, 1.0, %v2166_v54 }
 0x4db   : > { %v3486_v14 = vadd.f32 %v1789_v58, %v1773_v13  ;;  %v3488_v23 = vadd.s32 %v1062_v9, %v1060_v16 }
 0x4dc   : > { %v1179_v42 = vpop.xlane.xlu1 %1178 }
 0x4dd   : > { %vm1191_vm9 = vcmp.eq.s32.totalorder %v3868_v4, %v3488_v23  ;;  %v1180_v22 = vcvt.f32.s32 %v1179_v42 }
 0x4de   : > { %v1784_v8 = vsel %vm1191_vm9, 1.0, %v2166_v54 }
 0x4df   : > { %v1239_v20 = vadd.f32 %v1784_v8, %v1768_v57  ;;  %v3501_v38 = vadd.s32 %v1182_v51, %v1180_v22 }
 0x4e0   : > { %v1029_v29 = vpop.xlane.xlu1 %1028 }
 0x4e1   : > { %vm1199_vm3 = vcmp.eq.s32.totalorder %v3868_v4, %v3501_v38  ;;  %v1030_v63 = vcvt.f32.s32 %v1029_v29 }
 0x4e2   : > { %v1792_v3 = vsel %vm1199_vm3, 1.0, %v2166_v54 }
 0x4e3   : > { %v3516_v50 = vadd.f32 %v1792_v3, %v1776_v17  ;;  %v1033_v32 = vadd.s32 %v1032_v12, %v1030_v63 }
 0x4e4   : > { %v1149_v49 = vpop.xlane.xlu1 %1148  ;;  %v1409_v47 = vpop.trf.xlu0 }
 0x4e5   : > { %vm1189_vm7 = vcmp.eq.s32.totalorder %v3868_v4, %v1033_v32  ;;  %v1431_v21 = vsel %vm1376_vm14, %v3887_v33, %v1033_v32  ;;  %1425 = vst [vmem:[%s219_s11] sm:$0x3] %v1409_v47 }
 0x4e6   : > { %v1782_v44 = vsel %vm1189_vm7, 1.0, %v2166_v54  ;;  %1447 = vxpose.xlu1.b32.cont [6/16] (narrow) %v1431_v21, 8 }
 0x4e7   : > { %2048 = shalt.err (!%p2045_p2)
}
 0x4e8   : > { %s2049_s14 = scalar_lea.hbm %s3522_s5, 32  ;;  %s2053_s10 = scalar_lea.hbm %s3700_s2, 64 }
 0x4e9   : > { %p2050_p4 = scmp.ne.s32.totalorder %s3522_s5, %s2049_s14  ;;  %p2054_p9 = scmp.lt.u32.totalorder %s3522_s5, %s3700_s2 }
 0x4ea   : > { %p2055_p1 = scmp.lt.u32.totalorder %s2053_s10, %s2049_s14  ;;  %p2057_p6 = scmp.lt.u32.totalorder %s2049_s14, %s3522_s5 }
 0x4eb   : > { %p2051_p5 = pnand %p2050_p4, %p3889_p11 }
 0x4ec   : > { %p2056_p3 = por %p2055_p1, %p2054_p9 }
 0x4ed   : > { %p2052_p7 = pneg %p2051_p5 }
 0x4ee   : > { %p2058_p12 = por %p2057_p6, %p2056_p3 }
 0x4f0   : > { %p2059_p13 = pnand %p2058_p12, %p2052_p7 }
 0x4f2   : > { %2062 = shalt.err (!%p2059_p13)
}
 0x4f3   : > { %1868 = dma.vmem_to_hbm [thread:$0]  (%p3889_p11), %s3514_s12, 32, %s3522_s5, %s1554_s6   ;;  %v1237_v52 = vadd.f32 %v1782_v44, %v1766_v30  ;;  %v1150_v5 = vcvt.f32.s32 %v1149_v49  ;;  %v1152_v28 = vshll.u32 %v1151_v1, 16  ;;  %v1432_v60 = vsel %vm1376_vm14, %v3876_v18, %v3412_v55 }
 0x4f4   : > { %1448 = vxpose.xlu1.b32.cont [7/16] (narrow) %v1432_v60, 8  ;;  %v1523_v45 = vsel %vm463_vm0, %v3427_v46, 0.0  ;;  %v1525_v9 = vsel %vm463_vm0, %v1239_v20, 0.0  ;;  %v1433_v61 = vsel %vm1376_vm14, %v3883_v62, %v3488_v23  ;;  %v1527_v13 = vsel %vm463_vm0, %v3409_v19, 0.0  ;;  %v3890_v19 = vld [vmem:[#allocation39_spill] sm:$0xff]  ;;  %s233_s12 = scalar_lea.vmem [#allocation8], %s3491_s25  ;;  %s3622_s22 = scalar_lea.hbm %s3701_s3, %s3505_s30 }
 0x4f5   : > { %v1521_v2 = vsel %vm463_vm0, %v1237_v52, 0.0  ;;  %v1153_v27 = vadd.s32 %v1152_v28, %v1150_v5  ;;  %v1529_v18 = vsel %vm463_vm0, %v3450_v24, 0.0  ;;  %v1434_v46 = vsel %vm1376_vm14, %v3874_v39, %v3386_v34  ;;  %s226_s26 = scalar_lea.vmem [#allocation6], %s3491_s25  ;;  %s1558_s6 = sand.u32 1, %s2216_s19  }
 0x4f6   : > { %v1522_v26 = vadd.f32 %v1521_v2, %v3471_v56  ;;  %v1531_v23 = vsel %vm463_vm0, %v3369_v35, 0.0  ;;  %vm3891_vm15 = vcmp.eq.s32.totalorder %v3868_v4, %v3890_v19  ;;  %v1533_v24 = vsel %vm463_vm0, %v3415_v10, 0.0  ;;  %s1590_s5 = sshll.u32 %s226_s26, 4  ;;  %s1603_s7 = sshll.u32 %s233_s12, 4  ;;  %s3616_s5 = int_to_ptr.vmem [resolvable:$true] %s1590_s5  ;;  %s3630_s7 = int_to_ptr.vmem [resolvable:$true] %s1603_s7 }
 0x4f7   : > { %vm1197_vm10 = vcmp.eq.s32.totalorder %v3868_v4, %v1153_v27  ;;  %v1774_v42 = vsel %vm3891_vm15, 1.0, %v2166_v54  ;;  %v1435_v34 = vsel %vm1376_vm14, %v3878_v48, %v3430_v7  ;;  %v1506_v39 = vrot.slane %v3307_v6, 4  ;;  %s3628_s8 = scalar_lea.hbm %s3702_s4, %s3505_s30  ;;  %s3632_s19 = scalar_lea.sflag [#allocation7], %s1558_s6 }
 0x4f8   : > { %v1524_v36 = vadd.f32 %v1523_v45, %v1522_v26  ;;  %1449 = vxpose.xlu1.b32.cont [8/16] (narrow) %v1433_v61, 8  ;;  %v1790_v58 = vsel %vm1197_vm10, 1.0, %v2166_v54  ;;  %v1535_v35 = vsel %vm463_vm0, %v3486_v14, 0.0  ;;  %v1436_v54 = vsel %vm1376_vm14, %v3870_v40, %v3354_v0  ;;  %s2063_s25 = scalar_lea.vmem %s3616_s5, 32  ;;  %s2168_s10 = smov [#allocation6]  }
 0x4f9   : > { %v1245_v25 = vadd.f32 %v1790_v58, %v1774_v42  ;;  %v1507_v10 = vadd.f32 %v1506_v39, %v3307_v6  ;;  %v1539_v7 = vsel %vm463_vm0, %v3467_v15, 0.0  ;;  %v1541_v8 = vsel %vm463_vm0, %v3516_v50, 0.0  ;;  %p2064_p8 = scmp.ne.s32.totalorder %s3616_s5, %s2063_s25  ;;  %s2067_s11 = sshll.u32 %s2168_s10, 4  ;;  %s2068_s11 = int_to_ptr.vmem [resolvable:$false] %s2067_s11 }
 0x4fa   : > { %v1526_v16 = vadd.f32 %v1525_v9, %v1524_v36  ;;  %v1437_v14 = vsel %vm1376_vm14, %v3875_v43, %v3397_v11  ;;  %v1438_v6 = vsel %vm1376_vm14, %v3881_v53, %v3476_v31  ;;  %v1439_v63 = vsel %vm1376_vm14, %v3890_v19, %v1153_v27  ;;  %s2069_s29 = scalar_lea.vmem %s2068_s11, 64  ;;  %p2070_p2 = scmp.lt.s32.totalorder %s3616_s5, %s2068_s11 }
 0x4fb   : > { %v1537_v4 = vsel %vm463_vm0, %v1245_v25, 0.0  ;;  %v1508_v29 = vrot.slane %v1507_v10, 2  ;;  %v1440_v3 = vsel %vm1376_vm14, %v3879_v59, %v3452_v41  ;;  %vm1549_vm8 = vcmask 1040384   ;;  %p2065_p10 = pnand %p2064_p8, %p3889_p11  ;;  %p2071_p4 = scmp.lt.s32.totalorder %s2069_s29, %s2063_s25 }
 0x4fc   : > { %v1528_v55 = vadd.f32 %v1527_v13, %v1526_v16  ;;  %1450 = vxpose.xlu1.b32.cont [9/16] (narrow) %v1434_v46, 8  ;;  %v1441_v32 = vsel %vm1376_vm14, %v3885_v37, %v3501_v38 }
 0x4fd   : > { %v1509_v40 = vadd.f32 %v1508_v29, %v1507_v10  ;;  %p2066_p0 = pneg %p2065_p10  ;;  %p2072_p5 = por %p2071_p4, %p2070_p2 }
 0x4fe   : > { %v1530_v56 = vadd.f32 %v1529_v18, %v1528_v55 }
 0x4ff   : > { %v1510_v11 = vrot.slane %v1509_v40, 1  ;;  %p2073_p7 = pnand %p2072_p5, %p2066_p0 }
 0x500   : > { %v1532_v51 = vadd.f32 %v1531_v23, %v1530_v56  ;;  %1451 = vxpose.xlu1.b32.cont [10/16] (narrow) %v1435_v34, 8 }
 0x501   : > { %v1511_v31 = vadd.f32 %v1510_v11, %v1509_v40 }
 0x502   : > { %v1534_v22 = vadd.f32 %v1533_v24, %v1532_v51 }
 0x504   : > { %v1536_v62 = vadd.f32 %v1535_v35, %v1534_v22  ;;  %1452 = vxpose.xlu1.b32.cont [11/16] (narrow) %v1436_v54, 8 }
 0x506   : > { %v1538_v57 = vadd.f32 %v1537_v4, %v1536_v62 }
 0x508   : > { %v1540_v48 = vadd.f32 %v1539_v7, %v1538_v57  ;;  %1453 = vxpose.xlu1.b32.cont [12/16] (narrow) %v1437_v14, 8 }
 0x50a   : > { %v1542_v20 = vadd.f32 %v1541_v8, %v1540_v48 }
 0x50c   : > { %v1543_v12 = vrot.slane %v1542_v20, 4  ;;  %1454 = vxpose.xlu1.b32.cont [13/16] (narrow) %v1438_v6, 8 }
 0x50e   : > { %v1544_v0 = vadd.f32 %v1543_v12, %v1542_v20 }
 0x510   : > { %v1545_v15 = vrot.slane %v1544_v0, 2  ;;  %1455 = vxpose.xlu1.b32.cont [14/16] (narrow) %v1439_v63, 8 }
 0x512   : > { %v1546_v17 = vadd.f32 %v1545_v15, %v1544_v0 }
 0x514   : > { %v1547_v43 = vrot.slane %v1546_v17, 1  ;;  %1456 = vxpose.xlu1.b32.cont [15/16] (narrow) %v1440_v3, 8 }
 0x516   : > { %v1548_v53 = vadd.f32 %v1547_v43, %v1546_v17 }
 0x518   : > { %v1550_v50 = vsel %vm1549_vm8, %v1511_v31, %v1548_v53  ;;  %1457 = vxpose.xlu1.b32.end [16/16] (narrow) %v1441_v32, 8 }
 0x519   : > { %v1551_v49 = vsel %vm463_vm0, %v1550_v50, 0.0 }
 0x51a   : > { %1552 = vst [vmem:[%s233_s12] sm:$0x3] %v1551_v49 }
 0x55c   : > { %v1458_v41 = vpop.trf.xlu1 }
 0x55d   : > { %1474 = vst [vmem:[%s226_s26] sm:$0x3] %v1458_v41 }
 0x55e   : > { %2076 = shalt.err (!%p2073_p7)
}
 0x55f   : > { %s2077_s30 = scalar_lea.hbm %s3622_s22, 32  ;;  %s2081_s6 = scalar_lea.hbm %s3701_s3, 64 }
 0x560   : > { %p2078_p9 = scmp.ne.s32.totalorder %s3622_s22, %s2077_s30  ;;  %p2082_p6 = scmp.lt.u32.totalorder %s3622_s22, %s3701_s3 }
 0x561   : > { %p2083_p12 = scmp.lt.u32.totalorder %s2081_s6, %s2077_s30  ;;  %p2085_p8 = scmp.lt.u32.totalorder %s2077_s30, %s3622_s22 }
 0x562   : > { %p2079_p1 = pnand %p2078_p9, %p3889_p11 }
 0x563   : > { %p2084_p13 = por %p2083_p12, %p2082_p6 }
 0x564   : > { %p2080_p3 = pneg %p2079_p1 }
 0x565   : > { %p2086_p10 = por %p2085_p8, %p2084_p13 }
 0x567   : > { %p2087_p0 = pnand %p2086_p10, %p2080_p3 }
 0x569   : > { %2090 = shalt.err (!%p2087_p0)
}
 0x56a   : > { %1869 = dma.vmem_to_hbm [thread:$0]  (%p3889_p11), %s3616_s5, 32, %s3622_s22, %s3632_s19  }
 0x56b   : > { %s2091_s14 = scalar_lea.vmem %s3630_s7, 32  ;;  %s2169_s23 = smov [#allocation8]  }
 0x56c   : > { %p2092_p2 = scmp.ne.s32.totalorder %s3630_s7, %s2091_s14  ;;  %s2095_s25 = sshll.u32 %s2169_s23, 4  ;;  %s2096_s25 = int_to_ptr.vmem [resolvable:$false] %s2095_s25 }
 0x56d   : > { %s2097_s10 = scalar_lea.vmem %s2096_s25, 64  ;;  %p2098_p7 = scmp.lt.s32.totalorder %s3630_s7, %s2096_s25 }
 0x56e   : > { %p2093_p4 = pnand %p2092_p2, %p3889_p11  ;;  %p2099_p9 = scmp.lt.s32.totalorder %s2097_s10, %s2091_s14 }
 0x570   : > { %p2094_p5 = pneg %p2093_p4  ;;  %p2100_p1 = por %p2099_p9, %p2098_p7 }
 0x572   : > { %p2101_p3 = pnand %p2100_p1, %p2094_p5 }
 0x574   : > { %2104 = shalt.err (!%p2101_p3)
}
 0x575   : > { %s2105_s5 = scalar_lea.hbm %s3628_s8, 32  ;;  %s2109_s29 = scalar_lea.hbm %s3702_s4, 64 }
 0x576   : > { %p2106_p6 = scmp.ne.s32.totalorder %s3628_s8, %s2105_s5  ;;  %p2110_p8 = scmp.lt.u32.totalorder %s3628_s8, %s3702_s4 }
 0x577   : > { %p2111_p10 = scmp.lt.u32.totalorder %s2109_s29, %s2105_s5  ;;  %p2113_p2 = scmp.lt.u32.totalorder %s2105_s5, %s3628_s8 }
 0x578   : > { %p2107_p12 = pnand %p2106_p6, %p3889_p11 }
 0x579   : > { %p2112_p0 = por %p2111_p10, %p2110_p8 }
 0x57a   : > { %p2108_p13 = pneg %p2107_p12 }
 0x57b   : > { %p2114_p4 = por %p2113_p2, %p2112_p0 }
 0x57d   : > { %p2115_p5 = pnand %p2114_p4, %p2108_p13 }
 0x57f   : > { %2118 = shalt.err (!%p2115_p5)
}
 0x580   : > { %1870 = dma.vmem_to_hbm [thread:$0]  (%p3889_p11), %s3630_s7, 32, %s3628_s8, %s3632_s19  }
 0x581 PF: > { %s1615_s26 = sand.u32 1, %s2149_s15   ;;  %p3892_p7 = scmp.ne.s32.totalorder %s3785_s28, 0 }
 0x582   : > { %p3893_p9 = scmp.ge.s32.totalorder %s2161_s18, 2  ;;  %s1616_s6 = scalar_lea.sflag [#allocation4], %s1615_s26 }
 0x584   : > { %p1879_p1 = pnand %p3893_p9, %p3892_p7 }
 0x586   : > { %2140 = dma.done.wait (!%p1879_p1), %s1616_s6, 32  }
 0x587   : > { %2142 = vsyncadd (!%p1879_p1), %s1616_s6, 4294967264  ;;  %s1624_s9 = sand.u32 1, %s1734_s20  }
 0x588   : > { %s1625_s13 = scalar_lea.sflag [#allocation7], %s1624_s9 }
 0x589   : > { %2144 = dma.done.wait (!%p1879_p1), %s1625_s13, 64  }
 0x58a   : > { %2146 = vsyncadd (!%p1879_p1), %s1625_s13, 4294967232  ;;  %p21_p11 = scmp.ge.s32.totalorder %s2220_s21, 4   ;;  %s3894_s15 = smov %s2153_s16 }
 0x58b   : > { %s3895_s16 = smov %s2157_s17  ;;  %s3896_s17 = smov %s2232_s24 }
 0x58c   : > { %s3897_s18 = smov %s2220_s21  ;;  %23 = sbr.rel (!%p21_p11) target bundleno = 7 (0x7), region = 105 }
 0x593   :  { %1639 = vsyncpa [#allocation3], 1 }
 0x594   :  { %1641 = vsyncpa [#allocation3 + $0x1], 1 }
 0x595   :  { %1642 = vsyncpa [#allocation4], 1 }
 0x596   :  { %1644 = vsyncpa [#allocation4 + $0x1], 1 }
 0x597   :  { %1645 = vsyncpa [#allocation7], 1 }
 0x598   :  { %1647 = vsyncpa [#allocation7 + $0x1], 1 }

// kernel: tpu_custom_call.1
= control target key start
LH: loop header
LB: loop body
LE: loop exit
PB: predicated region body
PF: predicated region fallthrough
CT: control target
= control target key end

     0   :  { %10 = vsyncpa [#allocation3], 0  ;;  %s3698_s0 = inlined_call_operand.hbm [shape: bf16[256,128], index: 0, kind: input, shape index: {}]   ;;  %s3699_s1 = inlined_call_operand.vmem [shape: bf16[128,8], index: 1, kind: input, shape index: {}]   ;;  %s3700_s2 = inlined_call_operand.hbm [shape: f32[2,2,128], index: 2, kind: output, shape index: {0}]   ;;  %s3701_s3 = inlined_call_operand.hbm [shape: s32[2,2,128], index: 3, kind: output, shape index: {1}]   ;;  %s3702_s4 = inlined_call_operand.hbm [shape: f32[2,2,128], index: 4, kind: output, shape index: {2}]  }
   0x1   :  { %12 = vsyncpa [#allocation3 + $0x1], 0 }
   0x2   :  { %13 = vsyncpa [#allocation4], 0 }
   0x3   :  { %15 = vsyncpa [#allocation4 + $0x1], 0 }
   0x4   :  { %16 = vsyncpa [#allocation7], 0 }
   0x5   :  { %18 = vsyncpa [#allocation7 + $0x1], 0  ;;  %s2195_s15 = smov 0   ;;  %s2197_s16 = smov 0  }
   0x6   :  { %s2199_s17 = smov 0   ;;  %s2201_s18 = smov 0  }
   0x7 LB: > { %s2216_s19 = sadd.s32 4294967295, %s2161_s18   ;;  %s1734_s20 = sadd.s32 4294967294, %s2161_s18   ;;  %s2161_s18 = sphi %s2201_s18, %s3897_s18   ;;  %s2157_s17 = sphi %s2199_s17, %s3896_s17   ;;  %s2153_s16 = sphi %s2197_s16, %s3895_s16   ;;  %s2149_s15 = sphi %s2195_s15, %s3894_s15  }
   0x8   : > { %s2220_s21 = sadd.s32 1, %s2161_s18   ;;  %s31_s22 = sadd.s32 1, %s2157_s17 }
   0x9   : > { %s28_s23 = ssub.s32 %s2161_s18, %s2220_s21  ;;  %p38_p0 = scmp.ne.s32.totalorder %s2157_s17, %s2153_s16 }
   0xa   : > { %p29_p1 = scmp.eq.s32.totalorder %s28_s23, 0  ;;  %p39_p2 = scmp.eq.s32.totalorder %s2161_s18, 0 }
   0xb   : > { %p44_p3 = scmp.ne.s32.totalorder %s2153_s16, %s2149_s15  ;;  %p45_p4 = scmp.eq.s32.totalorder %s2216_s19, 0 }
   0xc   : > { %s2232_s24 = scalar_select %p29_p1, %s2157_s17, %s31_s22  }
   0xd   : > { %p2234_p5 = por %p39_p2, %p38_p0  ;;  %p2238_p6 = por %p45_p4, %p44_p3 }
   0xe   : > { %p89_p7 = scmp.eq.s32.totalorder %s2216_s19, 1  ;;  %p95_p8 = scmp.eq.s32.totalorder %s1734_s20, 1 }
   0xf   : > { %p1888_p10 = scmp.lt.s32.totalorder %s2161_s18, 2  ;;  %s170_s29 = sand.u32 1, %s2157_s17  }
  0x10   : > { %p2247_p11 = por %p89_p7, %p38_p0  ;;  %p2251_p12 = por %p95_p8, %p44_p3 }
  0x11   : > { %s1801_s30 = sshll.u32 %s2161_s18, 10  ;;  %s1737_s5 = sshll.u32 %s170_s29, 6 }
  0x12   : > { %s3784_s27 = scalar_select %p2247_p11, 1, 0 }
  0x13   : > { %s3785_s28 = scalar_select %p2251_p12, 1, 0 }
  0x14   : > { %s2260_s8 = scalar_lea.hbm %s3698_s0, %s1801_s30  ;;  %s174_s9 = scalar_lea.vmem [#allocation2], %s1737_s5 }
  0x15   : > { %s181_s10 = sshll.u32 %s174_s9, 4  ;;  %p2264_p13 = pnand %p1888_p10, %p2234_p5  ;;  %s2268_s10 = int_to_ptr.vmem [resolvable:$true] %s181_s10 }
  0x16   : > { %s2270_s12 = scalar_lea.sflag [#allocation3], %s170_s29  ;;  %s2005_s13 = scalar_lea.hbm %s2260_s8, 1024 }
  0x17   : > { %p2006_p0 = scmp.ne.s32.totalorder %s2260_s8, %s2005_s13  ;;  %p2007_p1 = pneg %p2264_p13 }
  0x18   : > { %s2010_s23 = scalar_lea.hbm %s3698_s0, 2048  ;;  %p2011_p4 = scmp.lt.u32.totalorder %s2260_s8, %s3698_s0 }
  0x19   : > { %p2008_p2 = pnand %p2007_p1, %p2006_p0  ;;  %p2012_p5 = scmp.lt.u32.totalorder %s2010_s23, %s2005_s13 }
  0x1a   : > { %p2014_p8 = scmp.lt.u32.totalorder %s2005_s13, %s2260_s8 }
  0x1b   : > { %p2009_p3 = pneg %p2008_p2  ;;  %p2013_p7 = por %p2012_p5, %p2011_p4 }
  0x1d   : > { %p2015_p10 = por %p2014_p8, %p2013_p7 }
  0x1f   : > { %p2016_p9 = pnand %p2015_p10, %p2009_p3 }
  0x21   : > { %2019 = shalt.err (!%p2016_p9)
}
  0x22   : > { %s2020_s29 = scalar_lea.vmem %s2268_s10, 1024  ;;  %s2163_s5 = smov [#allocation2]  }
  0x23   : > { %p2021_p0 = scmp.ne.s32.totalorder %s2268_s10, %s2020_s29  ;;  %s2025_s6 = sshll.u32 %s2163_s5, 4  ;;  %s2026_s6 = int_to_ptr.vmem [resolvable:$false] %s2025_s6 }
  0x24   : > { %s2027_s7 = scalar_lea.vmem %s2026_s6, 2048  ;;  %p2028_p11 = scmp.lt.s32.totalorder %s2268_s10, %s2026_s6 }
  0x25   : > { %p2023_p2 = pnand %p2021_p0, %p2007_p1  ;;  %p2029_p4 = scmp.lt.s32.totalorder %s2027_s7, %s2020_s29 }
  0x27   : > { %p2024_p12 = pneg %p2023_p2  ;;  %p2030_p5 = por %p2029_p4, %p2028_p11 }
  0x29   : > { %p2031_p7 = pnand %p2030_p5, %p2024_p12 }
  0x2b   : > { %2034 = shalt.err (!%p2031_p7)
}
  0x2c   : > { %s2164_s9 = smov 64   ;;  %s2165_s13 = smov 4  }
  0x2d   : > { %1877 = dma.hbm_to_vmem [thread:$0]  (!%p2264_p13), %s2260_s8, 1024, %s2268_s10, %s2270_s12, %s2164_s9, %s2164_s9, %s2165_s13  }
  0x2e   : > { %p1740_p9 = scmp.ge.s32.totalorder %s2161_s18, 1  ;;  %p189_p1 = scmp.lt.s32.totalorder %s2161_s18, 3 }
  0x30   : > { %p190_p3 = pnand %p1740_p9, %p189_p1 }
  0x32   : > { %193 = sbr.rel (%p190_p3) target bundleno = 1409 (0x581), region = 28 }
  0x39   : > { %s2301_s14 = sand.u32 1, %s2153_s16  }
  0x3a   : > { %s1741_s22 = sshll.u32 %s2301_s14, 6  ;;  %s196_s23 = scalar_lea.sflag [#allocation3], %s2301_s14 }
  0x3b   : > { %s2305_s25 = scalar_lea.vmem [#allocation2], %s1741_s22 }
  0x3c   : > { %2136 = dma.done.wait (%p2238_p6), %s196_s23, 1024  }
  0x3d   : > { %2138 = vsyncadd (%p2238_p6), %s196_s23, 4294966272  ;;  %v1925_v0 = vld [vmem:[%s3699_s1] sm:$0xff]   ;;  %v1926_v1 = vld [vmem:[%s3699_s1 + $0x8] sm:$0xff]   ;;  %vm463_vm0 = vcmask 64512   ;;  %v461_v48 = vlaneseq  ;;  %s3505_s30 = sshll.u32 %s2216_s19, 5  ;;  %s1554_s6 = scalar_lea.sflag [#allocation4], %s2301_s14 }
  0x3e   : > { %1818 = vmatprep.subr.bf16.mxu0 %v1925_v0  ;;  %1850 = vmatprep.subr.bf16.mxu1 %v1925_v0  ;;  %v1927_v2 = vld [vmem:[%s3699_s1 + $0x10] sm:$0xff]   ;;  %v1928_v3 = vld [vmem:[%s3699_s1 + $0x18] sm:$0xff]   ;;  %v1933_v4 = vld [vmem:[%s2305_s25] sm:$0xff]   ;;  %s3522_s5 = scalar_lea.hbm %s3700_s2, %s3505_s30  ;;  %p3889_p11 = scmp.ne.s32.totalorder %s3784_s27, 0 }
  0x3f   : > { %1819 = vmatpush3.bf16.msra.mxu0 %v1925_v0  ;;  %1858 = vmatpush3.bf16.msra.mxu1 %v1925_v0  ;;  %v1929_v5 = vld [vmem:[%s3699_s1 + $0x20] sm:$0xff]   ;;  %v1930_v7 = vld [vmem:[%s3699_s1 + $0x28] sm:$0xff]   ;;  %v1931_v8 = vld [vmem:[%s3699_s1 + $0x30] sm:$0xff]   ;;  %v2407_v49 = vand.u32 127, %v461_v48  ;;  %s2167_s9 = smov [#allocation5]  }
  0x40   : > { %1820 = vmatprep.subr.bf16.mxu0 %v1926_v1  ;;  %1851 = vmatprep.subr.bf16.mxu1 %v1926_v1  ;;  %v1937_v6 = vld [vmem:[%s2305_s25 + $0x20] sm:$0xff]   ;;  %v1932_v9 = vld [vmem:[%s3699_s1 + $0x38] sm:$0xff]   ;;  %v1934_v10 = vld [vmem:[%s2305_s25 + $0x8] sm:$0xff]   ;;  %s2039_s13 = sshll.u32 %s2167_s9, 4  ;;  %s2040_s13 = int_to_ptr.vmem [resolvable:$false] %s2039_s13 }
  0x41   : > { %1834 = vmatprep.mubr.bf16.mxu0 %v1933_v4  ;;  %1842 = vmatprep.mubr.bf16.mxu1 %v1937_v6  ;;  %v1938_v11 = vld [vmem:[%s2305_s25 + $0x28] sm:$0xff]   ;;  %v1935_v12 = vld [vmem:[%s2305_s25 + $0x10] sm:$0xff]   ;;  %v1936_v14 = vld [vmem:[%s2305_s25 + $0x18] sm:$0xff]   ;;  %3787 = vst [vmem:[#allocation12_spill] sm:$0xff] %v2407_v49  ;;  %s2041_s22 = scalar_lea.vmem %s2040_s13, 64 }
  0x42   : > { %v1939_v13 = vld [vmem:[%s2305_s25 + $0x30] sm:$0xff]   ;;  %v1940_v15 = vld [vmem:[%s2305_s25 + $0x38] sm:$0xff]   ;;  %s3491_s25 = sshll.u32 %s2301_s14, 1 }
  0x43   : > { %1821 = vmatpush3.bf16.msra.mxu0 %v1926_v1  ;;  %1859 = vmatpush3.bf16.msra.mxu1 %v1926_v1  ;;  %s219_s11 = scalar_lea.vmem [#allocation5], %s3491_s25 }
  0x44   : > { %1822 = vmatprep.subr.bf16.mxu0 %v1927_v2  ;;  %1852 = vmatprep.subr.bf16.mxu1 %v1927_v2  ;;  %s1577_s12 = sshll.u32 %s219_s11, 4  ;;  %s3514_s12 = int_to_ptr.vmem [resolvable:$true] %s1577_s12 }
  0x45   : > { %s2035_s7 = scalar_lea.vmem %s3514_s12, 32  ;;  %p2042_p8 = scmp.lt.s32.totalorder %s3514_s12, %s2040_s13 }
  0x46   : > { %p2036_p6 = scmp.ne.s32.totalorder %s3514_s12, %s2035_s7  ;;  %p2043_p10 = scmp.lt.s32.totalorder %s2041_s22, %s2035_s7 }
  0x47   : > { %1823 = vmatpush3.bf16.msra.mxu0 %v1927_v2  ;;  %1860 = vmatpush3.bf16.msra.mxu1 %v1927_v2 }
  0x48   : > { %1824 = vmatprep.subr.bf16.mxu0 %v1928_v3  ;;  %1853 = vmatprep.subr.bf16.mxu1 %v1928_v3  ;;  %p2037_p12 = pnand %p2036_p6, %p3889_p11  ;;  %p2044_p0 = por %p2043_p10, %p2042_p8 }
  0x4a   : > { %p2038_p13 = pneg %p2037_p12 }
  0x4b   : > { %1825 = vmatpush3.bf16.msra.mxu0 %v1928_v3  ;;  %1861 = vmatpush3.bf16.msra.mxu1 %v1928_v3 }
  0x4c   : > { %1826 = vmatprep.subr.bf16.mxu0 %v1929_v5  ;;  %1854 = vmatprep.subr.bf16.mxu1 %v1929_v5  ;;  %p2045_p2 = pnand %p2044_p0, %p2038_p13 }
  0x4f   : > { %1827 = vmatpush3.bf16.msra.mxu0 %v1929_v5  ;;  %1862 = vmatpush3.bf16.msra.mxu1 %v1929_v5 }
  0x50   : > { %1828 = vmatprep.subr.bf16.mxu0 %v1930_v7  ;;  %1855 = vmatprep.subr.bf16.mxu1 %v1930_v7 }
  0x53   : > { %1829 = vmatpush3.bf16.msra.mxu0 %v1930_v7  ;;  %1863 = vmatpush3.bf16.msra.mxu1 %v1930_v7 }
  0x54   : > { %1830 = vmatprep.subr.bf16.mxu0 %v1931_v8  ;;  %1856 = vmatprep.subr.bf16.mxu1 %v1931_v8 }
  0x57   : > { %1831 = vmatpush3.bf16.msra.mxu0 %v1931_v8  ;;  %1864 = vmatpush3.bf16.msra.mxu1 %v1931_v8 }
  0x58   : > { %1832 = vmatprep.subr.bf16.mxu0 %v1932_v9  ;;  %1857 = vmatprep.subr.bf16.mxu1 %v1932_v9 }
  0x5b   : > { %1833 = vmatpush3.bf16.msra.mxu0 %v1932_v9  ;;  %1865 = vmatpush3.bf16.msra.mxu1 %v1932_v9 }
  0x5e   : > { %1835 = vmatmul.mubr.bf16.vlgmr.msra.gmra.mrb[0].mxu0 %v1934_v10  ;;  %1843 = vmatmul.mubr.bf16.vlgmr.msra.gmra.mrb[0].mxu1 %v1938_v11 }
  0x5f   : > { %1838 = vmatprep.mubr.bf16.mxu0 %v1935_v12  ;;  %1846 = vmatprep.mubr.bf16.mxu1 %v1939_v13 }
  0x66   : > { %1839 = vmatmul.mubr.bf16.gmra.mrb[4].mxu0 %v1936_v14  ;;  %1847 = vmatmul.mubr.bf16.gmra.mrb[4].mxu1 %v1940_v15 }
 0x131   : > { %v2343_v16 = vpop.f32.mrb[0].mxu0  ;;  %v2345_v17 = vpop.f32.mrb[0].mxu1 }
 0x132   : > { %v2347_v18 = vpop.f32.mrb[1].mxu0  ;;  %v470_v19 = vsel %vm463_vm0, %v2343_v16, -inf  ;;  %v2351_v20 = vpop.f32.mrb[1].mxu1  ;;  %v494_v42 = vsel %vm463_vm0, %v2345_v17, -inf }
 0x133   : > { %471 = vmax.xlane.f32.xlu1 %v470_v19  ;;  %v2353_v21 = vpop.f32.mrb[2].mxu0  ;;  %v464_v22 = vsel %vm463_vm0, %v2347_v18, -inf  ;;  %v2357_v23 = vpop.f32.mrb[2].mxu1  ;;  %v488_v40 = vsel %vm463_vm0, %v2351_v20, -inf }
 0x134   : > { %465 = vmax.xlane.f32.xlu0 %v464_v22  ;;  %v2359_v24 = vpop.f32.mrb[3].mxu0  ;;  %v2361_v25 = vpop.f32.mrb[3].mxu1  ;;  %v473_v26 = vsel %vm463_vm0, %v2353_v21, -inf  ;;  %v497_v43 = vsel %vm463_vm0, %v2357_v23, -inf }
 0x135   : > { %v467_v27 = vsel %vm463_vm0, %v2359_v24, -inf  ;;  %v491_v41 = vsel %vm463_vm0, %v2361_v25, -inf }
 0x137   : > { %474 = vmax.xlane.f32.xlu1 %v473_v26 }
 0x138   : > { %468 = vmax.xlane.f32.xlu0 %v467_v27 }
 0x139   : > { %v2367_v28 = vpop.f32.mrb[4].mxu0  ;;  %v2369_v29 = vpop.f32.mrb[4].mxu1 }
 0x13a   : > { %v2371_v30 = vpop.f32.mrb[5].mxu0  ;;  %v2373_v31 = vpop.f32.mrb[5].mxu1  ;;  %v482_v38 = vsel %vm463_vm0, %v2367_v28, -inf  ;;  %v506_v46 = vsel %vm463_vm0, %v2369_v29, -inf }
 0x13b   : > { %v2375_v32 = vpop.f32.mrb[6].mxu0  ;;  %v476_v33 = vsel %vm463_vm0, %v2371_v30, -inf  ;;  %v2379_v34 = vpop.f32.mrb[6].mxu1  ;;  %v500_v44 = vsel %vm463_vm0, %v2373_v31, -inf }
 0x13c   : > { %477 = vmax.xlane.f32.xlu0 %v476_v33  ;;  %v2381_v35 = vpop.f32.mrb[7].mxu0  ;;  %v2383_v36 = vpop.f32.mrb[7].mxu1  ;;  %v485_v39 = vsel %vm463_vm0, %v2375_v32, -inf  ;;  %v509_v47 = vsel %vm463_vm0, %v2379_v34, -inf }
 0x13d   : > { %v479_v37 = vsel %vm463_vm0, %v2381_v35, -inf  ;;  %v503_v45 = vsel %vm463_vm0, %v2383_v36, -inf }
 0x13e   : > { %480 = vmax.xlane.f32.xlu1 %v479_v37 }
 0x140   : > { %483 = vmax.xlane.f32.xlu0 %v482_v38 }
 0x142   : > { %486 = vmax.xlane.f32.xlu1 %v485_v39 }
 0x144   : > { %489 = vmax.xlane.f32.xlu0 %v488_v40 }
 0x146   : > { %492 = vmax.xlane.f32.xlu1 %v491_v41 }
 0x148   : > { %495 = vmax.xlane.f32.xlu0 %v494_v42 }
 0x14a   : > { %498 = vmax.xlane.f32.xlu1 %v497_v43 }
 0x14c   : > { %501 = vmax.xlane.f32.xlu0 %v500_v44 }
 0x14e   : > { %504 = vmax.xlane.f32.xlu1 %v503_v45 }
 0x150   : > { %507 = vmax.xlane.f32.xlu0 %v506_v46 }
 0x152   : > { %510 = vmax.xlane.f32.xlu1 %v509_v47 }
 0x1c0   : > { %v2409_v50 = vpop.xlane.xlu1 %471 }
 0x1c1   : > { %v2411_v51 = vpop.xlane.xlu0 %465  ;;  %vm514_vm1 = vcmp.eq.f32.partialorder %v2343_v16, %v2409_v50 }
 0x1c2   : > { %vm512_vm2 = vcmp.eq.f32.partialorder %v2347_v18, %v2411_v51  ;;  %v530_v52 = vsel %vm514_vm1, %v2407_v49, 8 }
 0x1c3   : > { %v528_v53 = vsel %vm512_vm2, %v2407_v49, 8  ;;  %v2425_v56 = vsel %vm463_vm0, %v530_v52, 2147483647 }
 0x1c4   : > { %v2419_v54 = vpop.xlane.xlu1 %474  ;;  %v2422_v55 = vsel %vm463_vm0, %v528_v53, 2147483647  ;;  %v576_v60 = vshra.s32 %v2425_v56, 16 }
 0x1c5   : > { %v2427_v57 = vpop.xlane.xlu0 %468  ;;  %v546_v58 = vshra.s32 %v2422_v55, 16  ;;  %vm515_vm3 = vcmp.eq.f32.partialorder %v2353_v21, %v2419_v54 }
 0x1c6   : > { %vm513_vm4 = vcmp.eq.f32.partialorder %v2359_v24, %v2427_v57  ;;  %v531_v62 = vsel %vm515_vm3, %v2407_v49, 8  ;;  %v2453_v4 = vcvt.s32.f32 %v576_v60 }
 0x1c7   : > { %v2434_v59 = vcvt.s32.f32 %v546_v58  ;;  %v529_v61 = vsel %vm513_vm4, %v2407_v49, 8  ;;  %v2443_v0 = vsel %vm463_vm0, %v531_v62, 2147483647 }
 0x1c8   : > { %v2440_v63 = vsel %vm463_vm0, %v529_v61, 2147483647  ;;  %v591_v7 = vshra.s32 %v2443_v0, 16 }
 0x1c9   : > { %549 = vmin.xlane.f32.xlu0 %v2434_v59  ;;  %v2446_v1 = vpop.xlane.xlu0 %477  ;;  %v561_v2 = vshra.s32 %v2440_v63, 16 }
 0x1ca   : > { %3788 = vst [vmem:[#allocation13_spill] sm:$0xff] %v2446_v1  ;;  %vm516_vm5 = vcmp.eq.f32.partialorder %v2371_v30, %v2446_v1  ;;  %v2476_v14 = vcvt.s32.f32 %v591_v7  ;;  %v590_v1 = vand.u32 65535, %v2443_v0 }
 0x1cb   : > { %v2451_v3 = vpop.xlane.xlu1 %480  ;;  %v2455_v5 = vcvt.s32.f32 %v561_v2  ;;  %v532_v6 = vsel %vm516_vm5, %v2407_v49, 8 }
 0x1cc   : > { %3789 = vst [vmem:[#allocation14_spill] sm:$0xff] %v2451_v3  ;;  %v2460_v8 = vsel %vm463_vm0, %v532_v6, 2147483647  ;;  %vm517_vm6 = vcmp.eq.f32.partialorder %v2381_v35, %v2451_v3 }
 0x1cd   : > { %579 = vmin.xlane.f32.xlu0 %v2453_v4  ;;  %v2465_v9 = vpop.xlane.xlu0 %483  ;;  %564 = vmin.xlane.f32.xlu1 %v2455_v5  ;;  %v606_v10 = vshra.s32 %v2460_v8, 16  ;;  %v533_v11 = vsel %vm517_vm6, %v2407_v49, 8 }
 0x1ce   : > { %3790 = vst [vmem:[#allocation15_spill] sm:$0xff] %v2465_v9  ;;  %vm518_vm7 = vcmp.eq.f32.partialorder %v2367_v28, %v2465_v9  ;;  %v2480_v19 = vsel %vm463_vm0, %v533_v11, 2147483647 }
 0x1cf   : > { %v2472_v12 = vpop.xlane.xlu1 %486  ;;  %v2474_v13 = vcvt.s32.f32 %v606_v10  ;;  %v534_v15 = vsel %vm518_vm7, %v2407_v49, 8  ;;  %v621_v33 = vshra.s32 %v2480_v19, 16  ;;  %v620_v0 = vand.u32 65535, %v2480_v19 }
 0x1d0   : > { %3791 = vst [vmem:[#allocation16_spill] sm:$0xff] %v2472_v12  ;;  %v2483_v22 = vsel %vm463_vm0, %v534_v15, 2147483647  ;;  %vm519_vm8 = vcmp.eq.f32.partialorder %v2375_v32, %v2472_v12  ;;  %v545_v12 = vand.u32 65535, %v2422_v55  ;;  %v605_v55 = vand.u32 65535, %v2460_v8 }
 0x1d1   : > { %609 = vmin.xlane.f32.xlu0 %v2474_v13  ;;  %v2486_v26 = vpop.xlane.xlu0 %489  ;;  %594 = vmin.xlane.f32.xlu1 %v2476_v14  ;;  %v636_v27 = vshra.s32 %v2483_v22, 16  ;;  %v2499_v39 = vcvt.s32.f32 %v621_v33  ;;  %v535_v41 = vsel %vm519_vm8, %v2407_v49, 8  ;;  %v635_v8 = vand.u32 65535, %v2483_v22 }
 0x1d2   : > { %3792 = vst [vmem:[#allocation17_spill] sm:$0xff] %v2486_v26  ;;  %vm520_vm9 = vcmp.eq.f32.partialorder %v2351_v20, %v2486_v26  ;;  %v2512_v45 = vsel %vm463_vm0, %v535_v41, 2147483647 }
 0x1d3   : > { %v2495_v37 = vpop.xlane.xlu1 %492  ;;  %v2497_v38 = vcvt.s32.f32 %v636_v27  ;;  %v536_v40 = vsel %vm520_vm9, %v2407_v49, 8  ;;  %v651_v46 = vshra.s32 %v2512_v45, 16 }
 0x1d4   : > { %3793 = vst [vmem:[#allocation18_spill] sm:$0xff] %v2495_v37  ;;  %v2504_v42 = vsel %vm463_vm0, %v536_v40, 2147483647  ;;  %vm521_vm10 = vcmp.eq.f32.partialorder %v2361_v25, %v2495_v37 }
 0x1d5   : > { %639 = vmin.xlane.f32.xlu0 %v2497_v38  ;;  %v2507_v43 = vpop.xlane.xlu0 %495  ;;  %624 = vmin.xlane.f32.xlu1 %v2499_v39  ;;  %v666_v44 = vshra.s32 %v2504_v42, 16  ;;  %v537_v52 = vsel %vm521_vm10, %v2407_v49, 8  ;;  %v2524_v53 = vcvt.s32.f32 %v651_v46  ;;  %v665_v22 = vand.u32 65535, %v2504_v42 }
 0x1d6   : > { %3794 = vst [vmem:[#allocation19_spill] sm:$0xff] %v2507_v43  ;;  %vm522_vm11 = vcmp.eq.f32.partialorder %v2345_v17, %v2507_v43  ;;  %v2531_v61 = vsel %vm463_vm0, %v537_v52, 2147483647 }
 0x1d7   : > { %v2517_v47 = vpop.xlane.xlu1 %498  ;;  %v2519_v48 = vcvt.s32.f32 %v666_v44  ;;  %v538_v60 = vsel %vm522_vm11, %v2407_v49, 8  ;;  %v681_v7 = vshra.s32 %v2531_v61, 16 }
 0x1d8   : > { %3795 = vst [vmem:[#allocation20_spill] sm:$0xff] %v2517_v47  ;;  %vm523_vm12 = vcmp.eq.f32.partialorder %v2357_v23, %v2517_v47  ;;  %v2537_v62 = vsel %vm463_vm0, %v538_v60, 2147483647 }
 0x1d9   : > { %669 = vmin.xlane.f32.xlu0 %v2519_v48  ;;  %v2527_v58 = vpop.xlane.xlu0 %501  ;;  %654 = vmin.xlane.f32.xlu1 %v2524_v53  ;;  %v696_v6 = vshra.s32 %v2537_v62, 16  ;;  %v539_v10 = vsel %vm523_vm12, %v2407_v49, 8  ;;  %v2551_v33 = vcvt.s32.f32 %v681_v7 }
 0x1da   : > { %3796 = vst [vmem:[#allocation21_spill] sm:$0xff] %v2527_v58  ;;  %vm524_vm13 = vcmp.eq.f32.partialorder %v2373_v31, %v2527_v58  ;;  %v2557_v41 = vsel %vm463_vm0, %v539_v10, 2147483647 }
 0x1db   : > { %v2539_v2 = vpop.xlane.xlu1 %504  ;;  %v540_v11 = vsel %vm524_vm13, %v2407_v49, 8  ;;  %v2547_v15 = vcvt.s32.f32 %v696_v6  ;;  %v711_v52 = vshra.s32 %v2557_v41, 16 }
 0x1dc   : > { %3797 = vst [vmem:[#allocation22_spill] sm:$0xff] %v2539_v2  ;;  %v2554_v40 = vsel %vm463_vm0, %v540_v11, 2147483647  ;;  %vm525_vm15 = vcmp.eq.f32.partialorder %v2383_v36, %v2539_v2 }
 0x1dd   : > { %v2549_v27 = vpop.xlane.xlu0 %507  ;;  %v726_v44 = vshra.s32 %v2554_v40, 16  ;;  %699 = vmin.xlane.f32.xlu0 %v2547_v15  ;;  %684 = vmin.xlane.f32.xlu1 %v2551_v33  ;;  %v2571_v6 = vcvt.s32.f32 %v711_v52  ;;  %v541_v10 = vsel %vm525_vm15, %v2407_v49, 8 }
 0x1de   : > { %3798 = vst [vmem:[#allocation23_spill] sm:$0xff] %v2549_v27  ;;  %vm526_vm14 = vcmp.eq.f32.partialorder %v2369_v29, %v2549_v27  ;;  %v2581_v58 = vsel %vm463_vm0, %v541_v10, 2147483647 }
 0x1df   : > { %v2562_v46 = vpop.xlane.xlu1 %510  ;;  %v2569_v60 = vcvt.s32.f32 %v726_v44  ;;  %v542_v7 = vsel %vm526_vm14, %v2407_v49, 8  ;;  %v741_v52 = vshra.s32 %v2581_v58, 16 }
 0x1e0   : > { %3799 = vst [vmem:[#allocation24_spill] sm:$0xff] %v2562_v46  ;;  %vm527_vm1 = vcmp.eq.f32.partialorder %v2379_v34, %v2562_v46  ;;  %v2578_v11 = vsel %vm463_vm0, %v542_v7, 2147483647 }
 0x1e1   : > { %729 = vmin.xlane.f32.xlu0 %v2569_v60  ;;  %714 = vmin.xlane.f32.xlu1 %v2571_v6  ;;  %v756_v44 = vshra.s32 %v2578_v11, 16  ;;  %v543_v27 = vsel %vm527_vm1, %v2407_v49, 8  ;;  %v2593_v7 = vcvt.s32.f32 %v741_v52  ;;  %v560_v52 = vand.u32 65535, %v2440_v63 }
 0x1e2   : > { %v2589_v43 = vsel %vm463_vm0, %v543_v27, 2147483647  ;;  %v547_v27 = vcvt.s32.f32 %v545_v12  ;;  %v607_v12 = vcvt.s32.f32 %v605_v55  ;;  %v667_v55 = vcvt.s32.f32 %v665_v22 }
 0x1e3   : > { %v2591_v37 = vcvt.s32.f32 %v756_v44  ;;  %v771_v10 = vshra.s32 %v2589_v43, 16  ;;  %v575_v44 = vand.u32 65535, %v2425_v56  ;;  %v562_v47 = vcvt.s32.f32 %v560_v52 }
 0x1e5   : > { %759 = vmin.xlane.f32.xlu0 %v2591_v37  ;;  %744 = vmin.xlane.f32.xlu1 %v2593_v7  ;;  %v2598_v26 = vcvt.s32.f32 %v771_v10  ;;  %v577_v3 = vcvt.s32.f32 %v575_v44  ;;  %v637_v44 = vcvt.s32.f32 %v635_v8 }
 0x1e9   : > { %774 = vmin.xlane.f32.xlu1 %v2598_v26 }
 0x256   : > { %v2602_v46 = vpop.xlane.xlu0 %549 }
 0x257   : > { %vm551_vm2 = vcmp.eq.f32.partialorder %v2434_v59, %v2602_v46 }
 0x258   : > { %v552_v9 = vsel %vm551_vm2, %v547_v27, inf  ;;  %v592_v27 = vcvt.s32.f32 %v590_v1  ;;  %v622_v1 = vcvt.s32.f32 %v620_v0 }
 0x259   : > { %553 = vmin.xlane.f32.xlu0 %v552_v9 }
 0x25a   : > { %v2608_v2 = vpop.xlane.xlu0 %579  ;;  %v2610_v10 = vpop.xlane.xlu1 %564 }
 0x25b   : > { %vm581_vm3 = vcmp.eq.f32.partialorder %v2453_v4, %v2608_v2  ;;  %vm566_vm4 = vcmp.eq.f32.partialorder %v2455_v5, %v2610_v10 }
 0x25c   : > { %v582_v56 = vsel %vm581_vm3, %v577_v3, inf  ;;  %v567_v59 = vsel %vm566_vm4, %v562_v47, inf }
 0x25d   : > { %583 = vmin.xlane.f32.xlu0 %v582_v56  ;;  %568 = vmin.xlane.f32.xlu1 %v567_v59 }
 0x25e   : > { %v2618_v63 = vpop.xlane.xlu0 %609  ;;  %v2620_v9 = vpop.xlane.xlu1 %594 }
 0x25f   : > { %vm611_vm5 = vcmp.eq.f32.partialorder %v2474_v13, %v2618_v63  ;;  %vm596_vm6 = vcmp.eq.f32.partialorder %v2476_v14, %v2620_v9  ;;  %v650_v13 = vand.u32 65535, %v2512_v45 }
 0x260   : > { %v612_v3 = vsel %vm611_vm5, %v607_v12, inf  ;;  %v597_v4 = vsel %vm596_vm6, %v592_v27, inf }
 0x261   : > { %613 = vmin.xlane.f32.xlu0 %v612_v3  ;;  %598 = vmin.xlane.f32.xlu1 %v597_v4  ;;  %v652_v42 = vcvt.s32.f32 %v650_v13  ;;  %v710_v3 = vand.u32 65535, %v2557_v41  ;;  %v740_v41 = vand.u32 65535, %v2581_v58 }
 0x262   : > { %v2628_v5 = vpop.xlane.xlu0 %639  ;;  %v2630_v47 = vpop.xlane.xlu1 %624 }
 0x263   : > { %vm641_vm7 = vcmp.eq.f32.partialorder %v2497_v38, %v2628_v5  ;;  %vm626_vm8 = vcmp.eq.f32.partialorder %v2499_v39, %v2630_v47  ;;  %v695_v38 = vand.u32 65535, %v2537_v62  ;;  %v680_v39 = vand.u32 65535, %v2531_v61 }
 0x264   : > { %v642_v14 = vsel %vm641_vm7, %v637_v44, inf  ;;  %v627_v19 = vsel %vm626_vm8, %v622_v1, inf  ;;  %v712_v1 = vcvt.s32.f32 %v710_v3 }
 0x265   : > { %643 = vmin.xlane.f32.xlu0 %v642_v14  ;;  %628 = vmin.xlane.f32.xlu1 %v627_v19  ;;  %v697_v8 = vcvt.s32.f32 %v695_v38  ;;  %v682_v0 = vcvt.s32.f32 %v680_v39  ;;  %v742_v19 = vcvt.s32.f32 %v740_v41  ;;  %v631_v41 = vcvt.f32.s32 %v2630_v47 }
 0x266   : > { %v2638_v52 = vpop.xlane.xlu0 %669  ;;  %v2640_v56 = vpop.xlane.xlu1 %654 }
 0x267   : > { %vm671_vm9 = vcmp.eq.f32.partialorder %v2519_v48, %v2638_v52  ;;  %vm656_vm10 = vcmp.eq.f32.partialorder %v2524_v53, %v2640_v56  ;;  %v725_v48 = vand.u32 65535, %v2554_v40  ;;  %v755_v40 = vand.u32 65535, %v2578_v11 }
 0x268   : > { %v672_v59 = vsel %vm671_vm9, %v667_v55, inf  ;;  %v657_v45 = vsel %vm656_vm10, %v652_v42, inf  ;;  %v770_v11 = vand.u32 65535, %v2589_v43  ;;  %v556_v43 = vcvt.f32.s32 %v2602_v46 }
 0x269   : > { %673 = vmin.xlane.f32.xlu0 %v672_v59  ;;  %658 = vmin.xlane.f32.xlu1 %v657_v45  ;;  %v727_v44 = vcvt.s32.f32 %v725_v48  ;;  %v757_v14 = vcvt.s32.f32 %v755_v40  ;;  %v586_v59 = vcvt.f32.s32 %v2608_v2  ;;  %v601_v48 = vcvt.f32.s32 %v2620_v9 }
 0x26a   : > { %v2648_v12 = vpop.xlane.xlu0 %699  ;;  %v2650_v27 = vpop.xlane.xlu1 %684  ;;  %v772_v55 = vcvt.s32.f32 %v770_v11  ;;  %v557_v38 = vshll.u32 %v556_v43, 16  ;;  %v646_v40 = vcvt.f32.s32 %v2628_v5  ;;  %v632_v43 = vshll.u32 %v631_v41, 16 }
 0x26b   : > { %vm701_vm11 = vcmp.eq.f32.partialorder %v2547_v15, %v2648_v12  ;;  %vm686_vm12 = vcmp.eq.f32.partialorder %v2551_v33, %v2650_v27 }
 0x26c   : > { %v702_v53 = vsel %vm701_vm11, %v697_v8, inf  ;;  %v687_v61 = vsel %vm686_vm12, %v682_v0, inf  ;;  %v587_v8 = vshll.u32 %v586_v59, 16  ;;  %v616_v0 = vcvt.f32.s32 %v2618_v63 }
 0x26d   : > { %703 = vmin.xlane.f32.xlu0 %v702_v53  ;;  %688 = vmin.xlane.f32.xlu1 %v687_v61  ;;  %v676_v59 = vcvt.f32.s32 %v2638_v52 }
 0x26e   : > { %v2658_v62 = vpop.xlane.xlu0 %729  ;;  %v2660_v4 = vpop.xlane.xlu1 %714  ;;  %v617_v9 = vshll.u32 %v616_v0, 16 }
 0x26f   : > { %vm731_vm13 = vcmp.eq.f32.partialorder %v2569_v60, %v2658_v62  ;;  %vm716_vm14 = vcmp.eq.f32.partialorder %v2571_v6, %v2660_v4 }
 0x270   : > { %v732_v15 = vsel %vm731_vm13, %v727_v44, inf  ;;  %v717_v33 = vsel %vm716_vm14, %v712_v1, inf  ;;  %v602_v1 = vshll.u32 %v601_v48, 16 }
 0x271   : > { %733 = vmin.xlane.f32.xlu0 %v732_v15  ;;  %718 = vmin.xlane.f32.xlu1 %v717_v33 }
 0x272   : > { %v2668_v22 = vpop.xlane.xlu0 %759  ;;  %v2670_v13 = vpop.xlane.xlu1 %744 }
 0x273   : > { %vm761_vm15 = vcmp.eq.f32.partialorder %v2591_v37, %v2668_v22  ;;  %vm746_vm1 = vcmp.eq.f32.partialorder %v2593_v7, %v2670_v13  ;;  %v571_v7 = vcvt.f32.s32 %v2610_v10 }
 0x274   : > { %v762_v58 = vsel %vm761_vm15, %v757_v14, inf  ;;  %v747_v60 = vsel %vm746_vm1, %v742_v19, inf }
 0x275   : > { %763 = vmin.xlane.f32.xlu0 %v762_v58  ;;  %748 = vmin.xlane.f32.xlu1 %v747_v60  ;;  %v572_v53 = vshll.u32 %v571_v7, 16 }
 0x276   : > { %v2677_v6 = vpop.xlane.xlu1 %774 }
 0x277   : > { %vm776_vm2 = vcmp.eq.f32.partialorder %v2598_v26, %v2677_v6 }
 0x278   : > { %v777_v42 = vsel %vm776_vm2, %v772_v55, inf }
 0x279   : > { %778 = vmin.xlane.f32.xlu1 %v777_v42  ;;  %v647_v42 = vshll.u32 %v646_v40, 16 }
 0x2e6   : > { %v554_v37 = vpop.xlane.xlu0 %553 }
 0x2e7   : > { %v555_v39 = vcvt.f32.s32 %v554_v37 }
 0x2e9   : > { %v2684_v45 = vadd.s32 %v557_v38, %v555_v39 }
 0x2ea   : > { %v584_v3 = vpop.xlane.xlu0 %583  ;;  %v569_v26 = vpop.xlane.xlu1 %568 }
 0x2eb   : > { %3800 = vst [vmem:[#allocation25_spill] sm:$0xff] %v2684_v45  ;;  %v585_v61 = vcvt.f32.s32 %v584_v3  ;;  %v570_v44 = vcvt.f32.s32 %v569_v26  ;;  %vm784_vm3 = vcmp.eq.s32.totalorder %v2407_v49, %v2684_v45 }
 0x2ec   : > { %v2694_v2 = vsel %vm784_vm3, -inf, %v2347_v18 }
 0x2ed   : > { %v2696_v46 = vadd.s32 %v587_v8, %v585_v61  ;;  %v2698_v10 = vadd.s32 %v572_v53, %v570_v44  ;;  %v864_v63 = vsel %vm463_vm0, %v2694_v2, -inf  ;;  %v661_v8 = vcvt.f32.s32 %v2640_v56 }
 0x2ee   : > { %865 = vmax.xlane.f32.xlu0 %v864_v63  ;;  %v614_v15 = vpop.xlane.xlu0 %613  ;;  %v599_v33 = vpop.xlane.xlu1 %598  ;;  %v677_v53 = vshll.u32 %v676_v59, 16  ;;  %v706_v61 = vcvt.f32.s32 %v2648_v12  ;;  %v691_v63 = vcvt.f32.s32 %v2650_v27 }
 0x2ef   : > { %3801 = vst [vmem:[#allocation26_spill] sm:$0xff] %v2696_v46  ;;  %3802 = vst [vmem:[#allocation27_spill] sm:$0xff] %v2698_v10  ;;  %v615_v14 = vcvt.f32.s32 %v614_v15  ;;  %v600_v19 = vcvt.f32.s32 %v599_v33  ;;  %vm786_vm4 = vcmp.eq.s32.totalorder %v2407_v49, %v2696_v46  ;;  %vm785_vm5 = vcmp.eq.s32.totalorder %v2407_v49, %v2698_v10 }
 0x2f0   : > { %v2712_v11 = vsel %vm786_vm4, -inf, %v2343_v16  ;;  %v2718_v5 = vsel %vm785_vm5, -inf, %v2359_v24  ;;  %v662_v40 = vshll.u32 %v661_v8, 16 }
 0x2f1   : > { %v2720_v47 = vadd.s32 %v617_v9, %v615_v14  ;;  %v2722_v58 = vadd.s32 %v602_v1, %v600_v19  ;;  %v870_v60 = vsel %vm463_vm0, %v2712_v11, -inf  ;;  %v867_v55 = vsel %vm463_vm0, %v2718_v5, -inf }
 0x2f2   : > { %871 = vmax.xlane.f32.xlu0 %v870_v60  ;;  %v644_v37 = vpop.xlane.xlu0 %643  ;;  %868 = vmax.xlane.f32.xlu1 %v867_v55  ;;  %v629_v38 = vpop.xlane.xlu1 %628  ;;  %v707_v60 = vshll.u32 %v706_v61, 16  ;;  %v692_v55 = vshll.u32 %v691_v63, 16  ;;  %v751_v63 = vcvt.f32.s32 %v2670_v13 }
 0x2f3   : > { %3803 = vst [vmem:[#allocation28_spill] sm:$0xff] %v2720_v47  ;;  %3804 = vst [vmem:[#allocation29_spill] sm:$0xff] %v2722_v58  ;;  %v645_v7 = vcvt.f32.s32 %v644_v37  ;;  %v630_v39 = vcvt.f32.s32 %v629_v38  ;;  %vm788_vm6 = vcmp.eq.s32.totalorder %v2407_v49, %v2720_v47  ;;  %vm787_vm7 = vcmp.eq.s32.totalorder %v2407_v49, %v2722_v58 }
 0x2f4   : > { %v2738_v0 = vsel %vm788_vm6, -inf, %v2371_v30  ;;  %v2744_v52 = vsel %vm787_vm7, -inf, %v2353_v21 }
 0x2f5   : > { %v2746_v48 = vadd.s32 %v647_v42, %v645_v7  ;;  %v2748_v3 = vadd.s32 %v632_v43, %v630_v39  ;;  %v876_v26 = vsel %vm463_vm0, %v2738_v0, -inf  ;;  %v873_v56 = vsel %vm463_vm0, %v2744_v52, -inf }
 0x2f6   : > { %877 = vmax.xlane.f32.xlu0 %v876_v26  ;;  %v674_v44 = vpop.xlane.xlu0 %673  ;;  %874 = vmax.xlane.f32.xlu1 %v873_v56  ;;  %v659_v1 = vpop.xlane.xlu1 %658  ;;  %v736_v42 = vcvt.f32.s32 %v2658_v62  ;;  %v721_v43 = vcvt.f32.s32 %v2660_v4 }
 0x2f7   : > { %3805 = vst [vmem:[#allocation30_spill] sm:$0xff] %v2746_v48  ;;  %3806 = vst [vmem:[#allocation31_spill] sm:$0xff] %v2748_v3  ;;  %v675_v9 = vcvt.f32.s32 %v674_v44  ;;  %vm790_vm8 = vcmp.eq.s32.totalorder %v2407_v49, %v2746_v48  ;;  %vm3728_vm9 = vcmp.eq.s32.totalorder %v2407_v49, %v2748_v3  ;;  %v660_v41 = vcvt.f32.s32 %v659_v1 }
 0x2f8   : > { %v2764_v12 = vsel %vm790_vm8, -inf, %v2367_v28  ;;  %v2770_v27 = vsel %vm3728_vm9, -inf, %v2381_v35  ;;  %v722_v61 = vshll.u32 %v721_v43, 16  ;;  %v766_v44 = vcvt.f32.s32 %v2668_v22 }
 0x2f9   : > { %v2772_v15 = vadd.s32 %v677_v53, %v675_v9  ;;  %v882_v33 = vsel %vm463_vm0, %v2764_v12, -inf  ;;  %v879_v14 = vsel %vm463_vm0, %v2770_v27, -inf  ;;  %v2778_v19 = vadd.s32 %v662_v40, %v660_v41 }
 0x2fa   : > { %883 = vmax.xlane.f32.xlu0 %v882_v33  ;;  %880 = vmax.xlane.f32.xlu1 %v879_v14  ;;  %v704_v59 = vpop.xlane.xlu0 %703  ;;  %v689_v37 = vpop.xlane.xlu1 %688  ;;  %v737_v53 = vshll.u32 %v736_v42, 16  ;;  %v767_v42 = vshll.u32 %v766_v44, 16  ;;  %v752_v43 = vshll.u32 %v751_v63, 16 }
 0x2fb   : > { %3807 = vst [vmem:[#allocation32_spill] sm:$0xff] %v2772_v15  ;;  %3808 = vst [vmem:[#allocation33_spill] sm:$0xff] %v2778_v19  ;;  %vm792_vm10 = vcmp.eq.s32.totalorder %v2407_v49, %v2772_v15  ;;  %vm3741_vm11 = vcmp.eq.s32.totalorder %v2407_v49, %v2778_v19  ;;  %v705_v7 = vcvt.f32.s32 %v704_v59  ;;  %v690_v39 = vcvt.f32.s32 %v689_v37 }
 0x2fc   : > { %v2788_v38 = vsel %vm792_vm10, -inf, %v2351_v20  ;;  %v2798_v62 = vsel %vm3741_vm11, -inf, %v2375_v32  ;;  %v781_v59 = vcvt.f32.s32 %v2677_v6 }
 0x2fd   : > { %v888_v8 = vsel %vm463_vm0, %v2788_v38, -inf  ;;  %v885_v4 = vsel %vm463_vm0, %v2798_v62, -inf  ;;  %v2802_v26 = vadd.s32 %v707_v60, %v705_v7  ;;  %v2804_v56 = vadd.s32 %v692_v55, %v690_v39 }
 0x2fe   : > { %889 = vmax.xlane.f32.xlu0 %v888_v8  ;;  %886 = vmax.xlane.f32.xlu1 %v885_v4  ;;  %v734_v9 = vpop.xlane.xlu0 %733  ;;  %v719_v1 = vpop.xlane.xlu1 %718 }
 0x2ff   : > { %3809 = vst [vmem:[#allocation34_spill] sm:$0xff] %v2802_v26  ;;  %3810 = vst [vmem:[#allocation35_spill] sm:$0xff] %v2804_v56  ;;  %v735_v40 = vcvt.f32.s32 %v734_v9  ;;  %v720_v41 = vcvt.f32.s32 %v719_v1  ;;  %vm794_vm12 = vcmp.eq.s32.totalorder %v2407_v49, %v2802_v26  ;;  %vm793_vm13 = vcmp.eq.s32.totalorder %v2407_v49, %v2804_v56 }
 0x300   : > { %v2816_v33 = vsel %vm794_vm12, -inf, %v2345_v17  ;;  %v2822_v22 = vsel %vm793_vm13, -inf, %v2361_v25  ;;  %v782_v1 = vshll.u32 %v781_v59, 16 }
 0x301   : > { %v2824_v13 = vadd.s32 %v737_v53, %v735_v40  ;;  %v2826_v14 = vadd.s32 %v722_v61, %v720_v41  ;;  %v894_v60 = vsel %vm463_vm0, %v2816_v33, -inf  ;;  %v891_v55 = vsel %vm463_vm0, %v2822_v22, -inf }
 0x302   : > { %895 = vmax.xlane.f32.xlu0 %v894_v60  ;;  %v764_v37 = vpop.xlane.xlu0 %763  ;;  %892 = vmax.xlane.f32.xlu1 %v891_v55  ;;  %v749_v7 = vpop.xlane.xlu1 %748 }
 0x303   : > { %3811 = vst [vmem:[#allocation36_spill] sm:$0xff] %v2824_v13  ;;  %3812 = vst [vmem:[#allocation37_spill] sm:$0xff] %v2826_v14  ;;  %v765_v39 = vcvt.f32.s32 %v764_v37  ;;  %v750_v8 = vcvt.f32.s32 %v749_v7  ;;  %vm3742_vm14 = vcmp.eq.s32.totalorder %v2407_v49, %v2824_v13  ;;  %vm795_vm15 = vcmp.eq.s32.totalorder %v2407_v49, %v2826_v14 }
 0x304   : > { %v2841_v4 = vsel %vm3742_vm14, -inf, %v2373_v31  ;;  %v2847_v6 = vsel %vm795_vm15, -inf, %v2357_v23  ;;  %v1248_v13 = vsub.f32 %v2347_v18, %v2411_v51  ;;  %v1250_v18 = vsub.f32 %v2343_v16, %v2409_v50 }
 0x305   : > { %v2849_v53 = vadd.s32 %v767_v42, %v765_v39  ;;  %v2851_v61 = vadd.s32 %v752_v43, %v750_v8  ;;  %v900_v44 = vsel %vm463_vm0, %v2841_v4, -inf  ;;  %v897_v63 = vsel %vm463_vm0, %v2847_v6, -inf }
 0x306   : > { %901 = vmax.xlane.f32.xlu0 %v900_v44  ;;  %898 = vmax.xlane.f32.xlu1 %v897_v63  ;;  %v779_v9 = vpop.xlane.xlu1 %778  ;;  %v1264_v48 = vmul.f32 1.442695, %v1248_v13 }
 0x307   : > { %3813 = vst [vmem:[#allocation38_spill] sm:$0xff] %v2849_v53  ;;  %3814 = vst [vmem:[#allocation39_spill] sm:$0xff] %v2851_v61  ;;  %v780_v40 = vcvt.f32.s32 %v779_v9  ;;  %vm3751_vm1 = vcmp.eq.s32.totalorder %v2407_v49, %v2849_v53  ;;  %vm3729_vm2 = vcmp.eq.s32.totalorder %v2407_v49, %v2851_v61 }
 0x308   : > { %v2865_v41 = vsel %vm3751_vm1, -inf, %v2369_v29  ;;  %v2871_v60 = vsel %vm3729_vm2, -inf, %v2383_v36  ;;  %1941 = vpow2.f32 %v1264_v48 }
 0x309   : > { %v2873_v55 = vadd.s32 %v782_v1, %v780_v40  ;;  %v906_v42 = vsel %vm463_vm0, %v2865_v41, -inf  ;;  %v903_v43 = vsel %vm463_vm0, %v2871_v60, -inf }
 0x30a   : > { %907 = vmax.xlane.f32.xlu0 %v906_v42  ;;  %904 = vmax.xlane.f32.xlu1 %v903_v43 }
 0x30b   : > { %3815 = vst [vmem:[#allocation40_spill] sm:$0xff] %v2873_v55  ;;  %vm3730_vm9 = vcmp.eq.s32.totalorder %v2407_v49, %v2873_v55 }
 0x30c   : > { %v2885_v59 = vsel %vm3730_vm9, -inf, %v2379_v34 }
 0x30d   : > { %v909_v37 = vsel %vm463_vm0, %v2885_v59, -inf }
 0x30e   : > { %910 = vmax.xlane.f32.xlu1 %v909_v37 }
 0x37b   : > { %v2889_v7 = vpop.xlane.xlu0 %865 }
 0x37f   : > { %v2891_v39 = vpop.xlane.xlu0 %871  ;;  %v2893_v8 = vpop.xlane.xlu1 %868 }
 0x380   : > { %vm914_vm2 = vcmp.eq.f32.partialorder %v2712_v11, %v2891_v39 }
 0x381   : > { %v930_v44 = vsel %vm914_vm2, %v2407_v49, 8  ;;  %vm913_vm2 = vcmp.eq.f32.partialorder %v2718_v5, %v2893_v8 }
 0x382   : > { %v2899_v63 = vsel %vm463_vm0, %v930_v44, 2147483647  ;;  %v929_v56 = vsel %vm913_vm2, %v2407_v49, 8 }
 0x383   : > { %v2901_v9 = vpop.xlane.xlu0 %877  ;;  %v2903_v1 = vpop.xlane.xlu1 %874  ;;  %v976_v40 = vshra.s32 %v2899_v63, 16 }
 0x384   : > { %3816 = vst [vmem:[#allocation41_spill] sm:$0xff] %v2901_v9  ;;  %vm915_vm9 = vcmp.eq.f32.partialorder %v2744_v52, %v2903_v1 }
 0x385   : > { %v931_v42 = vsel %vm915_vm9, %v2407_v49, 8  ;;  %v2909_v43 = vcvt.s32.f32 %v976_v40  ;;  %vm912_vm9 = vcmp.eq.f32.partialorder %v2694_v2, %v2889_v7 }
 0x386   : > { %v2912_v11 = vsel %vm463_vm0, %v931_v42, 2147483647  ;;  %v928_v40 = vsel %vm912_vm9, %v2407_v49, 8 }
 0x387   : > { %979 = vmin.xlane.f32.xlu0 %v2909_v43  ;;  %v2915_v37 = vpop.xlane.xlu0 %883  ;;  %v2917_v44 = vpop.xlane.xlu1 %880  ;;  %v991_v61 = vshra.s32 %v2912_v11, 16  ;;  %v2947_v53 = vsel %vm463_vm0, %v928_v40, 2147483647 }
 0x388   : > { %3817 = vst [vmem:[#allocation42_spill] sm:$0xff] %v2915_v37  ;;  %3818 = vst [vmem:[#allocation43_spill] sm:$0xff] %v2917_v44 }
 0x389   : > { %v2920_v3 = vcvt.s32.f32 %v991_v61 }
 0x38b   : > { %v2922_v55 = vpop.xlane.xlu0 %889  ;;  %994 = vmin.xlane.f32.xlu1 %v2920_v3  ;;  %v2925_v52 = vpop.xlane.xlu1 %886 }
 0x38c   : > { %3819 = vst [vmem:[#allocation44_spill] sm:$0xff] %v2922_v55  ;;  %3820 = vst [vmem:[#allocation45_spill] sm:$0xff] %v2925_v52  ;;  %vm920_vm11 = vcmp.eq.f32.partialorder %v2788_v38, %v2922_v55  ;;  %vm919_vm2 = vcmp.eq.f32.partialorder %v2798_v62, %v2925_v52  ;;  %v3828_v62 = vld [vmem:[#allocation13_spill] sm:$0xff] }
 0x38d   : > { %v936_v5 = vsel %vm920_vm11, %v2407_v49, 8  ;;  %vm916_vm11 = vcmp.eq.f32.partialorder %v2738_v0, %v2901_v9  ;;  %v1251_v0 = vsub.f32 %v2353_v21, %v2419_v54 }
 0x38e   : > { %v2972_v13 = vsel %vm463_vm0, %v936_v5, 2147483647 }
 0x38f   : > { %v2930_v42 = vpop.xlane.xlu0 %895  ;;  %v2932_v19 = vpop.xlane.xlu1 %892  ;;  %v1066_v58 = vshra.s32 %v2972_v13, 16  ;;  %v1270_v21 = vmul.f32 1.442695, %v1251_v0  ;;  %v1252_v0 = vsub.f32 %v2371_v30, %v3828_v62  ;;  %v3830_v30 = vld [vmem:[#allocation14_spill] sm:$0xff] }
 0x390   : > { %3821 = vst [vmem:[#allocation46_spill] sm:$0xff] %v2930_v42  ;;  %3822 = vst [vmem:[#allocation47_spill] sm:$0xff] %v2932_v19  ;;  %vm922_vm14 = vcmp.eq.f32.partialorder %v2816_v33, %v2930_v42  ;;  %vm921_vm9 = vcmp.eq.f32.partialorder %v2822_v22, %v2932_v19  ;;  %v935_v42 = vsel %vm919_vm2, %v2407_v49, 8 }
 0x391   : > { %v938_v2 = vsel %vm922_vm14, %v2407_v49, 8  ;;  %vm918_vm14 = vcmp.eq.f32.partialorder %v2764_v12, %v2915_v37  ;;  %v2975_v12 = vsel %vm463_vm0, %v929_v56, 2147483647  ;;  %v937_v15 = vsel %vm921_vm9, %v2407_v49, 8 }
 0x392   : > { %v2944_v61 = vsel %vm463_vm0, %v938_v2, 2147483647  ;;  %v946_v2 = vshra.s32 %v2947_v53, 16  ;;  %v934_v22 = vsel %vm918_vm14, %v2407_v49, 8  ;;  %v961_v45 = vshra.s32 %v2975_v12, 16 }
 0x393   : > { %v2953_v47 = vpop.xlane.xlu0 %901  ;;  %v2955_v38 = vpop.xlane.xlu1 %898  ;;  %v1096_v33 = vshra.s32 %v2944_v61, 16  ;;  %v2994_v26 = vsel %vm463_vm0, %v934_v22, 2147483647  ;;  %v2997_v48 = vsel %vm463_vm0, %v937_v15, 2147483647  ;;  %v3008_v22 = vcvt.s32.f32 %v1066_v58 }
 0x394   : > { %3823 = vst [vmem:[#allocation48_spill] sm:$0xff] %v2953_v47  ;;  %3824 = vst [vmem:[#allocation49_spill] sm:$0xff] %v2955_v38  ;;  %vm923_vm1 = vcmp.eq.f32.partialorder %v2847_v6, %v2955_v38  ;;  %v2987_v56 = vcvt.s32.f32 %v946_v2  ;;  %v3010_v15 = vcvt.s32.f32 %v961_v45  ;;  %v1081_v46 = vshra.s32 %v2997_v48, 16 }
 0x395   : > { %v939_v16 = vsel %vm923_vm1, %v2407_v49, 8  ;;  %v2965_v40 = vcvt.s32.f32 %v1096_v33  ;;  %v1268_v33 = vmul.f32 1.442695, %v1250_v18  ;;  %v3051_v52 = vsel %vm463_vm0, %v935_v42, 2147483647 }
 0x396   : > { %v2969_v14 = vsel %vm463_vm0, %v939_v16, 2147483647  ;;  %v1249_v16 = vsub.f32 %v2359_v24, %v2427_v57  ;;  %v932_v24 = vsel %vm916_vm11, %v2407_v49, 8  ;;  %v1253_v37 = vsub.f32 %v2381_v35, %v3830_v30 }
 0x397   : > { %1099 = vmin.xlane.f32.xlu0 %v2965_v40  ;;  %v1111_v6 = vshra.s32 %v2969_v14, 16  ;;  %v2985_v5 = vpop.xlane.xlu0 %907  ;;  %v3000_v18 = vpop.xlane.xlu1 %904  ;;  %1943 = vpow2.f32 %v1268_v33  ;;  %v3015_v38 = vsel %vm463_vm0, %v932_v24, 2147483647  ;;  %vm917_vm9 = vcmp.eq.f32.partialorder %v2770_v27, %v2917_v44 }
 0x398   : > { %3825 = vst [vmem:[#allocation50_spill] sm:$0xff] %v2985_v5  ;;  %3826 = vst [vmem:[#allocation51_spill] sm:$0xff] %v3000_v18  ;;  %v1266_v2 = vmul.f32 1.442695, %v1249_v16  ;;  %vm926_vm1 = vcmp.eq.f32.partialorder %v2865_v41, %v2985_v5  ;;  %v3026_v41 = vcvt.s32.f32 %v1081_v46  ;;  %v1006_v16 = vshra.s32 %v3015_v38, 16  ;;  %v3029_v24 = vpop.eup %1941  ;;  %v3829_v46 = vld [vmem:[#allocation20_spill] sm:$0xff] }
 0x399   : > { %v2989_v10 = vcvt.s32.f32 %v1111_v6  ;;  %v1036_v6 = vshra.s32 %v2994_v26, 16  ;;  %v942_v33 = vsel %vm926_vm1, %v2407_v49, 8  ;;  %v1296_v55 = vsel %vm463_vm0, %v3029_v24, 0.0 }
 0x39a   : > { %1945 = vpow2.f32 %v1266_v2  ;;  %v3032_v5 = vsel %vm463_vm0, %v942_v33, 2147483647  ;;  %v1259_v2 = vsub.f32 %v2357_v23, %v3829_v46  ;;  %v1272_v23 = vmul.f32 1.442695, %v1252_v0 }
 0x39b   : > { %949 = vmin.xlane.f32.xlu0 %v2987_v56  ;;  %1114 = vmin.xlane.f32.xlu1 %v2989_v10  ;;  %v3022_v45 = vpop.xlane.xlu1 %910  ;;  %v3024_v58 = vcvt.s32.f32 %v1036_v6  ;;  %1947 = vpow2.f32 %v1270_v21  ;;  %v3043_v6 = vcvt.s32.f32 %v1006_v16  ;;  %v1156_v33 = vshra.s32 %v3032_v5, 16  ;;  %v3831_v21 = vld [vmem:[#allocation22_spill] sm:$0xff] }
 0x39c   : > { %3827 = vst [vmem:[#allocation52_spill] sm:$0xff] %v3022_v45  ;;  %vm927_vm14 = vcmp.eq.f32.partialorder %v2885_v59, %v3022_v45  ;;  %v1261_v16 = vsub.f32 %v2383_v36, %v3831_v21  ;;  %vm924_vm11 = vcmp.eq.f32.partialorder %v2841_v4, %v2953_v47  ;;  %v1286_v42 = vmul.f32 1.442695, %v1259_v2  ;;  %v3832_v4 = vld [vmem:[#allocation15_spill] sm:$0xff]  ;;  %v3833_v47 = vld [vmem:[#allocation24_spill] sm:$0xff] }
 0x39d   : > { %v943_v59 = vsel %vm927_vm14, %v2407_v49, 8  ;;  %v3063_v45 = vcvt.s32.f32 %v1156_v33  ;;  %v1051_v35 = vshra.s32 %v3051_v52, 16  ;;  %v1274_v36 = vmul.f32 1.442695, %v1253_v37 }
 0x39e   : > { %v933_v21 = vsel %vm917_vm9, %v2407_v49, 8  ;;  %v940_v27 = vsel %vm924_vm11, %v2407_v49, 8  ;;  %1949 = vpow2.f32 %v1272_v23  ;;  %v1254_v2 = vsub.f32 %v2367_v28, %v3832_v4 }
 0x39f   : > { %1069 = vmin.xlane.f32.xlu0 %v3008_v22  ;;  %964 = vmin.xlane.f32.xlu1 %v3010_v15  ;;  %v1290_v33 = vmul.f32 1.442695, %v1261_v16  ;;  %1951 = vpow2.f32 %v1286_v42  ;;  %v3080_v30 = vcvt.s32.f32 %v1051_v35  ;;  %v3086_v62 = vsel %vm463_vm0, %v940_v27, 2147483647 }
 0x3a0   : > { %1953 = vpow2.f32 %v1274_v36  ;;  %v1276_v28 = vmul.f32 1.442695, %v1254_v2  ;;  %v1126_v27 = vshra.s32 %v3086_v62, 16  ;;  %v3835_v36 = vld [vmem:[#allocation17_spill] sm:$0xff]  ;;  %vm925_vm1 = vcmp.eq.f32.partialorder %v2871_v60, %v3000_v18  ;;  %v3837_v18 = vld [vmem:[#allocation19_spill] sm:$0xff] }
 0x3a1   : > { %v3046_v19 = vpop.eup %1943  ;;  %1955 = vpow2.f32 %v1290_v33  ;;  %v1256_v2 = vsub.f32 %v2351_v20, %v3835_v36  ;;  %v941_v36 = vsel %vm925_vm1, %v2407_v49, 8 }
 0x3a2   : > { %v1302_v46 = vsel %vm463_vm0, %v3046_v19, 0.0  ;;  %1957 = vpow2.f32 %v1276_v28 }
 0x3a3   : > { %1039 = vmin.xlane.f32.xlu0 %v3024_v58  ;;  %1084 = vmin.xlane.f32.xlu1 %v3026_v41  ;;  %v1280_v20 = vmul.f32 1.442695, %v1256_v2 }
 0x3a4   : > { %v3071_v0 = vpop.eup %1945 }
 0x3a5   : > { %v1299_v44 = vsel %vm463_vm0, %v3071_v0, 0.0  ;;  %v3091_v23 = vpop.eup %1947 }
 0x3a7   : > { %1009 = vmin.xlane.f32.xlu0 %v3043_v6  ;;  %1297 = vadd.xlane.f32.xlu1 %v1296_v55  ;;  %v3069_v55 = vsel %vm463_vm0, %v943_v59, 2147483647  ;;  %v1263_v59 = vsub.f32 %v2379_v34, %v3833_v47  ;;  %v3834_v34 = vld [vmem:[#allocation16_spill] sm:$0xff] }
 0x3a8   : > { %v1171_v37 = vshra.s32 %v3069_v55, 16  ;;  %v1255_v16 = vsub.f32 %v2375_v32, %v3834_v34  ;;  %v3105_v32 = vcvt.s32.f32 %v1126_v27  ;;  %v3137_v34 = vsel %vm463_vm0, %v941_v36, 2147483647 }
 0x3a9   : > { %v1294_v42 = vmul.f32 1.442695, %v1263_v59  ;;  %v3109_v59 = vpop.eup %1949 }
 0x3aa   : > { %v3096_v35 = vcvt.s32.f32 %v1171_v37  ;;  %v3111_v37 = vpop.eup %1951  ;;  %v1308_v27 = vsel %vm463_vm0, %v3109_v59, 0.0 }
 0x3ab   : > { %1159 = vmin.xlane.f32.xlu0 %v3063_v45  ;;  %1303 = vadd.xlane.f32.xlu1 %v1302_v46  ;;  %v3089_v46 = vsel %vm463_vm0, %v933_v21, 2147483647  ;;  %v1305_v21 = vsel %vm463_vm0, %v3091_v23, 0.0  ;;  %1959 = vpow2.f32 %v1294_v42  ;;  %v3117_v28 = vpop.eup %1953 }
 0x3ac   : > { %v1021_v47 = vshra.s32 %v3089_v46, 16 }
 0x3ae   : > { %v3107_v33 = vcvt.s32.f32 %v1021_v47  ;;  %v3121_v47 = vpop.eup %1955 }
 0x3af   : > { %1300 = vadd.xlane.f32.xlu0 %v1299_v44  ;;  %1054 = vmin.xlane.f32.xlu1 %v3080_v30  ;;  %v1278_v44 = vmul.f32 1.442695, %v1255_v16  ;;  %v3836_v16 = vld [vmem:[#allocation18_spill] sm:$0xff]  ;;  %v3130_v2 = vpop.eup %1957 }
 0x3b0   : > { %v1257_v42 = vsub.f32 %v2361_v25, %v3836_v16  ;;  %v1311_v25 = vsel %vm463_vm0, %v3117_v28, 0.0  ;;  %v1335_v16 = vsel %vm463_vm0, %v3121_v47, 0.0 }
 0x3b1   : > { %1961 = vpow2.f32 %v1278_v44  ;;  %v1258_v44 = vsub.f32 %v2345_v17, %v3837_v18 }
 0x3b2   : > { %1963 = vpow2.f32 %v1280_v20  ;;  %v1282_v60 = vmul.f32 1.442695, %v1257_v42  ;;  %v3839_v42 = vld [vmem:[#allocation21_spill] sm:$0xff] }
 0x3b3   : > { %1306 = vadd.xlane.f32.xlu0 %v1305_v21  ;;  %1174 = vmin.xlane.f32.xlu1 %v3096_v35  ;;  %v1329_v21 = vsel %vm463_vm0, %v3111_v37, 0.0  ;;  %v1284_v20 = vmul.f32 1.442695, %v1258_v44  ;;  %v1260_v17 = vsub.f32 %v2373_v31, %v3839_v42 }
 0x3b4   : > { %1965 = vpow2.f32 %v1282_v60 }
 0x3b5   : > { %v3139_v4 = vpop.eup %1959  ;;  %1967 = vpow2.f32 %v1284_v20  ;;  %v1288_v36 = vmul.f32 1.442695, %v1260_v17 }
 0x3b6   : > { %3838 = vst [vmem:[#allocation53_spill] sm:$0xff] %v3139_v4  ;;  %v1341_v49 = vsel %vm463_vm0, %v3139_v4, 0.0  ;;  %v945_v4 = vand.u32 65535, %v2947_v53 }
 0x3b7   : > { %1129 = vmin.xlane.f32.xlu0 %v3105_v32  ;;  %1024 = vmin.xlane.f32.xlu1 %v3107_v33  ;;  %1969 = vpow2.f32 %v1288_v36 }
 0x3bb   : > { %1309 = vadd.xlane.f32.xlu0 %v1308_v27  ;;  %1330 = vadd.xlane.f32.xlu1 %v1329_v21  ;;  %v1141_v27 = vshra.s32 %v3137_v34, 16  ;;  %v1314_v21 = vsel %vm463_vm0, %v3130_v2, 0.0  ;;  %v3148_v18 = vpop.eup %1961 }
 0x3bc   : > { %v1317_v31 = vsel %vm463_vm0, %v3148_v18, 0.0 }
 0x3bd   : > { %v3152_v44 = vcvt.s32.f32 %v1141_v27 }
 0x3bf   : > { %1312 = vadd.xlane.f32.xlu0 %v1311_v25  ;;  %1336 = vadd.xlane.f32.xlu1 %v1335_v16  ;;  %v3840_v16 = vld [vmem:[#allocation23_spill] sm:$0xff]  ;;  %v3156_v25 = vpop.eup %1963 }
 0x3c0   : > { %v1262_v60 = vsub.f32 %v2369_v29, %v3840_v16  ;;  %v3161_v20 = vpop.eup %1965 }
 0x3c1   : > { %v1323_v29 = vsel %vm463_vm0, %v3161_v20, 0.0  ;;  %v3165_v17 = vpop.eup %1967 }
 0x3c2   : > { %v1292_v42 = vmul.f32 1.442695, %v1262_v60  ;;  %v1326_v27 = vsel %vm463_vm0, %v3165_v17, 0.0 }
 0x3c3   : > { %1315 = vadd.xlane.f32.xlu0 %v1314_v21  ;;  %1342 = vadd.xlane.f32.xlu1 %v1341_v49  ;;  %v1320_v49 = vsel %vm463_vm0, %v3156_v25, 0.0  ;;  %v3169_v21 = vpop.eup %1969 }
 0x3c4   : > { %1971 = vpow2.f32 %v1292_v42  ;;  %v1332_v36 = vsel %vm463_vm0, %v3169_v21, 0.0 }
 0x3c7   : > { %1318 = vadd.xlane.f32.xlu0 %v1317_v31  ;;  %1144 = vmin.xlane.f32.xlu1 %v3152_v44  ;;  %v975_v31 = vand.u32 65535, %v2899_v63 }
 0x3cb   : > { %1321 = vadd.xlane.f32.xlu0 %v1320_v49 }
 0x3ce   : > { %v3173_v60 = vpop.eup %1971 }
 0x3cf   : > { %1324 = vadd.xlane.f32.xlu0 %v1323_v29  ;;  %3841 = vst [vmem:[#allocation54_spill] sm:$0xff] %v3173_v60  ;;  %v1338_v42 = vsel %vm463_vm0, %v3173_v60, 0.0  ;;  %v977_v29 = vcvt.s32.f32 %v975_v31 }
 0x3d3   : > { %1327 = vadd.xlane.f32.xlu0 %v1326_v27  ;;  %v1095_v27 = vand.u32 65535, %v2944_v61 }
 0x3d5   : > { %v1097_v60 = vcvt.s32.f32 %v1095_v27 }
 0x3d7   : > { %1333 = vadd.xlane.f32.xlu0 %v1332_v36 }
 0x3db   : > { %1339 = vadd.xlane.f32.xlu0 %v1338_v42  ;;  %v990_v42 = vand.u32 65535, %v2912_v11 }
 0x3dd   : > { %v992_v31 = vcvt.s32.f32 %v990_v42 }
 0x414   : > { %v3178_v49 = vpop.xlane.xlu0 %979 }
 0x415   : > { %vm981_vm2 = vcmp.eq.f32.partialorder %v2909_v43, %v3178_v49  ;;  %v1065_v43 = vand.u32 65535, %v2972_v13 }
 0x416   : > { %v982_v16 = vsel %vm981_vm2, %v977_v29, inf  ;;  %v1110_v29 = vand.u32 65535, %v2969_v14  ;;  %v960_v14 = vand.u32 65535, %v2975_v12 }
 0x417   : > { %983 = vmin.xlane.f32.xlu0 %v982_v16  ;;  %v947_v16 = vcvt.s32.f32 %v945_v4  ;;  %v1067_v4 = vcvt.s32.f32 %v1065_v43 }
 0x418   : > { %v3184_v9 = vpop.xlane.xlu1 %994  ;;  %v1112_v27 = vcvt.s32.f32 %v1110_v29  ;;  %v962_v12 = vcvt.s32.f32 %v960_v14 }
 0x419   : > { %vm996_vm9 = vcmp.eq.f32.partialorder %v2920_v3, %v3184_v9  ;;  %v1035_v3 = vand.u32 65535, %v2994_v26  ;;  %v1005_v26 = vand.u32 65535, %v3015_v38 }
 0x41b   : > { %v1007_v29 = vcvt.s32.f32 %v1005_v26  ;;  %v1050_v26 = vand.u32 65535, %v3051_v52 }
 0x424   : > { %v3186_v36 = vpop.xlane.xlu0 %1099 }
 0x425   : > { %vm1101_vm14 = vcmp.eq.f32.partialorder %v2965_v40, %v3186_v36  ;;  %v997_v40 = vsel %vm996_vm9, %v992_v31, inf }
 0x426   : > { %v1102_v63 = vsel %vm1101_vm14, %v1097_v60, inf }
 0x427   : > { %1103 = vmin.xlane.f32.xlu1 %v1102_v63 }
 0x428   : > { %v3194_v61 = vpop.xlane.xlu0 %949  ;;  %v3196_v53 = vpop.xlane.xlu1 %1114 }
 0x429   : > { %vm951_vm11 = vcmp.eq.f32.partialorder %v2987_v56, %v3194_v61  ;;  %vm1116_vm1 = vcmp.eq.f32.partialorder %v2989_v10, %v3196_v53  ;;  %v1080_v10 = vand.u32 65535, %v2997_v48  ;;  %v1155_v48 = vand.u32 65535, %v3032_v5 }
 0x42a   : > { %v952_v11 = vsel %vm951_vm11, %v947_v16, inf  ;;  %v1117_v42 = vsel %vm1116_vm1, %v1112_v27, inf  ;;  %v1037_v16 = vcvt.s32.f32 %v1035_v3 }
 0x42b   : > { %953 = vmin.xlane.f32.xlu0 %v952_v11  ;;  %998 = vmin.xlane.f32.xlu1 %v997_v40  ;;  %v1082_v11 = vcvt.s32.f32 %v1080_v10 }
 0x42c   : > { %v3204_v13 = vpop.xlane.xlu0 %1069  ;;  %v3206_v60 = vpop.xlane.xlu1 %964 }
 0x42d   : > { %vm1071_vm2 = vcmp.eq.f32.partialorder %v3008_v22, %v3204_v13  ;;  %vm966_vm14 = vcmp.eq.f32.partialorder %v3010_v15, %v3206_v60 }
 0x42e   : > { %v1072_v56 = vsel %vm1071_vm2, %v1067_v4, inf  ;;  %v967_v31 = vsel %vm966_vm14, %v962_v12, inf }
 0x42f   : > { %1073 = vmin.xlane.f32.xlu0 %v1072_v56  ;;  %1118 = vmin.xlane.f32.xlu1 %v1117_v42 }
 0x430   : > { %v3215_v63 = vpop.xlane.xlu0 %1039  ;;  %v3217_v43 = vpop.xlane.xlu1 %1084 }
 0x431   : > { %vm1041_vm9 = vcmp.eq.f32.partialorder %v3024_v58, %v3215_v63  ;;  %vm1086_vm11 = vcmp.eq.f32.partialorder %v3026_v41, %v3217_v43  ;;  %v1157_v41 = vcvt.s32.f32 %v1155_v48 }
 0x432   : > { %v1042_v22 = vsel %vm1041_vm9, %v1037_v16, inf  ;;  %v1087_v3 = vsel %vm1086_vm11, %v1082_v11, inf }
 0x433   : > { %1043 = vmin.xlane.f32.xlu0 %v1042_v22  ;;  %968 = vmin.xlane.f32.xlu1 %v967_v31 }
 0x434   : > { %v3224_v15 = vpop.xlane.xlu0 %1009  ;;  %v1298_v38 = vpop.xlane.xlu1 %1297 }
 0x435   : > { %vm1011_vm1 = vcmp.eq.f32.partialorder %v3043_v6, %v3224_v15  ;;  %1973 = vrcp.f32 %v1298_v38  ;;  %v1125_v6 = vand.u32 65535, %v3086_v62  ;;  %v1170_v38 = vand.u32 65535, %v3069_v55 }
 0x436   : > { %v1012_v40 = vsel %vm1011_vm1, %v1007_v29, inf }
 0x437   : > { %1013 = vmin.xlane.f32.xlu0 %v1012_v40  ;;  %1088 = vmin.xlane.f32.xlu1 %v1087_v3  ;;  %v1052_v3 = vcvt.s32.f32 %v1050_v26 }
 0x438   : > { %v3228_v58 = vpop.xlane.xlu0 %1159  ;;  %v1304_v4 = vpop.xlane.xlu1 %1303 }
 0x439   : > { %vm1161_vm2 = vcmp.eq.f32.partialorder %v3063_v45, %v3228_v58  ;;  %1975 = vrcp.f32 %v1304_v4  ;;  %v1127_v45 = vcvt.s32.f32 %v1125_v6  ;;  %v1172_v6 = vcvt.s32.f32 %v1170_v38 }
 0x43a   : > { %v1162_v5 = vsel %vm1161_vm2, %v1157_v41, inf }
 0x43b   : > { %1163 = vmin.xlane.f32.xlu1 %v1162_v5 }
 0x43c   : > { %v1301_v27 = vpop.xlane.xlu0 %1300  ;;  %v3232_v14 = vpop.xlane.xlu1 %1054 }
 0x43d   : > { %1977 = vrcp.f32 %v1301_v27  ;;  %vm1056_vm9 = vcmp.eq.f32.partialorder %v3080_v30, %v3232_v14  ;;  %v1020_v30 = vand.u32 65535, %v3089_v46 }
 0x43e   : > { %v1057_v4 = vsel %vm1056_vm9, %v1052_v3, inf }
 0x43f   : > { %v1974_v10 = vpop.eup %1973 }
 0x440   : > { %v1307_v56 = vpop.xlane.xlu0 %1306  ;;  %v3235_v42 = vpop.xlane.xlu1 %1174  ;;  %v1345_v31 = vmul.f32 %v1974_v10, %v3029_v24 }
 0x441   : > { %1979 = vrcp.f32 %v1307_v56  ;;  %vm1176_vm11 = vcmp.eq.f32.partialorder %v3096_v35, %v3235_v42  ;;  %v1140_v35 = vand.u32 65535, %v3137_v34 }
 0x442   : > { %v1177_v26 = vsel %vm1176_vm11, %v1172_v6, inf }
 0x443   : > { %v1976_v22 = vpop.eup %1975 }
 0x444   : > { %v3238_v16 = vpop.xlane.xlu0 %1129  ;;  %v3240_v12 = vpop.xlane.xlu1 %1024  ;;  %v1349_v52 = vmul.f32 %v1976_v22, %v3046_v19 }
 0x445   : > { %vm1131_vm14 = vcmp.eq.f32.partialorder %v3105_v32, %v3238_v16  ;;  %v1475_v32 = vsel %vm463_vm0, %v1345_v31, 0.0  ;;  %vm1026_vm1 = vcmp.eq.f32.partialorder %v3107_v33, %v3240_v12  ;;  %v1022_v31 = vcvt.s32.f32 %v1020_v30 }
 0x446   : > { %v1132_v48 = vsel %vm1131_vm14, %v1127_v45, inf  ;;  %v1478_v19 = vsel %vm463_vm0, %v1349_v52, 0.0  ;;  %vm1376_vm14 = vcmask 7168  }
 0x447   : > { %v1978_v62 = vpop.eup %1977  ;;  %1133 = vmin.xlane.f32.xlu1 %v1132_v48 }
 0x448   : > { %v1347_v29 = vmul.f32 %v1978_v62, %v3071_v0  ;;  %v1310_v11 = vpop.xlane.xlu0 %1309  ;;  %v1331_v40 = vpop.xlane.xlu1 %1330 }
 0x449   : > { %1981 = vrcp.f32 %v1310_v11 }
 0x44a   : > { %v1476_v24 = vsel %vm463_vm0, %v1347_v29, 0.0  ;;  %v1142_v29 = vcvt.s32.f32 %v1140_v35 }
 0x44b   : > { %v1980_v41 = vpop.eup %1979  ;;  %v1477_v5 = vadd.f32 %v1476_v24, %v1475_v32  ;;  %1058 = vmin.xlane.f32.xlu1 %v1057_v4 }
 0x44c   : > { %v1351_v55 = vmul.f32 %v1980_v41, %v3091_v23  ;;  %v1313_v0 = vpop.xlane.xlu0 %1312  ;;  %v1337_v27 = vpop.xlane.xlu1 %1336  ;;  %v1027_v23 = vsel %vm1026_vm1, %v1022_v31, inf }
 0x44d   : > { %v1479_v56 = vadd.f32 %v1478_v19, %v1477_v5  ;;  %1983 = vrcp.f32 %v1313_v0 }
 0x44e   : > { %v1480_v10 = vsel %vm463_vm0, %v1351_v55, 0.0 }
 0x44f   : > { %v1481_v45 = vadd.f32 %v1480_v10, %v1479_v56  ;;  %1178 = vmin.xlane.f32.xlu1 %v1177_v26 }
 0x450   : > { %v1316_v46 = vpop.xlane.xlu0 %1315  ;;  %v1343_v22 = vpop.xlane.xlu1 %1342 }
 0x451   : > { %1985 = vrcp.f32 %v1316_v46  ;;  %v1378_v46 = vsel %vm1376_vm14, %v2427_v57, %v2893_v8 }
 0x453   : > { %v1982_v48 = vpop.eup %1981  ;;  %1028 = vmin.xlane.f32.xlu1 %v1027_v23 }
 0x454   : > { %v1353_v62 = vmul.f32 %v1982_v48, %v3109_v59  ;;  %v1319_v38 = vpop.xlane.xlu0 %1318  ;;  %v3262_v52 = vpop.xlane.xlu1 %1144 }
 0x455   : > { %1987 = vrcp.f32 %v1319_v38  ;;  %vm1146_vm2 = vcmp.eq.f32.partialorder %v3152_v44, %v3262_v52 }
 0x456   : > { %v1482_v33 = vsel %vm463_vm0, %v1353_v62, 0.0  ;;  %v1147_v34 = vsel %vm1146_vm2, %v1142_v29, inf  ;;  %v1380_v29 = vsel %vm1376_vm14, %v2419_v54, %v2903_v1  ;;  %v3844_v54 = vld [vmem:[#allocation53_spill] sm:$0xff] }
 0x457   : > { %v1984_v11 = vpop.eup %1983  ;;  %v1483_v3 = vadd.f32 %v1482_v33, %v1481_v45  ;;  %1148 = vmin.xlane.f32.xlu1 %v1147_v34 }
 0x458   : > { %v1355_v32 = vmul.f32 %v1984_v11, %v3117_v28  ;;  %v1322_v24 = vpop.xlane.xlu0 %1321 }
 0x459   : > { %1989 = vrcp.f32 %v1322_v24  ;;  %v3843_v24 = vld [vmem:[#allocation13_spill] sm:$0xff] }
 0x45a   : > { %v1484_v59 = vsel %vm463_vm0, %v1355_v32, 0.0  ;;  %v3842_v32 = vld [vmem:[#allocation41_spill] sm:$0xff] }
 0x45b   : > { %v1986_v4 = vpop.eup %1985  ;;  %v1485_v41 = vadd.f32 %v1484_v59, %v1483_v3  ;;  %v1381_v59 = vsel %vm1376_vm14, %v3843_v24, %v3842_v32 }
 0x45c   : > { %v1357_v5 = vmul.f32 %v1986_v4, %v3130_v2  ;;  %v1325_v30 = vpop.xlane.xlu0 %1324  ;;  %v1377_v2 = vsel %vm1376_vm14, %v2411_v51, %v2889_v7 }
 0x45d   : > { %1991 = vrcp.f32 %v1325_v30 }
 0x45e   : > { %v1486_v44 = vsel %vm463_vm0, %v1357_v5, 0.0  ;;  %1993 = vrcp.f32 %v1331_v40 }
 0x45f   : > { %v1988_v19 = vpop.eup %1987  ;;  %v1487_v55 = vadd.f32 %v1486_v44, %v1485_v41  ;;  %v3845_v41 = vld [vmem:[#allocation54_spill] sm:$0xff]  ;;  %v3846_v44 = vld [vmem:[#allocation43_spill] sm:$0xff] }
 0x460   : > { %v1359_v0 = vmul.f32 %v1988_v19, %v3148_v18  ;;  %v1328_v6 = vpop.xlane.xlu0 %1327  ;;  %v3847_v19 = vld [vmem:[#allocation14_spill] sm:$0xff] }
 0x461   : > { %1995 = vrcp.f32 %v1328_v6 }
 0x462   : > { %v1488_v28 = vsel %vm463_vm0, %v1359_v0, 0.0  ;;  %1997 = vrcp.f32 %v1337_v27 }
 0x463   : > { %v1990_v56 = vpop.eup %1989  ;;  %v1489_v10 = vadd.f32 %v1488_v28, %v1487_v55  ;;  %v1382_v55 = vsel %vm1376_vm14, %v3847_v19, %v3846_v44  ;;  %v3848_v28 = vld [vmem:[#allocation42_spill] sm:$0xff]  ;;  %v956_v19 = vcvt.f32.s32 %v3194_v61 }
 0x464   : > { %v1361_v26 = vmul.f32 %v1990_v56, %v3156_v25  ;;  %1393 = vxpose.xlu0.b32.start [1/16] (narrow) %v1377_v2, 8  ;;  %v1334_v45 = vpop.xlane.xlu0 %1333  ;;  %v1379_v25 = vsel %vm1376_vm14, %v2409_v50, %v2891_v39  ;;  %v3849_v56 = vld [vmem:[#allocation15_spill] sm:$0xff]  ;;  %v3850_v2 = vld [vmem:[#allocation45_spill] sm:$0xff] }
 0x465   : > { %1999 = vrcp.f32 %v1334_v45 }
 0x466   : > { %v1490_v40 = vsel %vm463_vm0, %v1361_v26, 0.0  ;;  %2001 = vrcp.f32 %v1343_v22  ;;  %v3851_v26 = vld [vmem:[#allocation16_spill] sm:$0xff] }
 0x467   : > { %v1992_v18 = vpop.eup %1991  ;;  %v1491_v35 = vadd.f32 %v1490_v40, %v1489_v10  ;;  %v1383_v10 = vsel %vm1376_vm14, %v3849_v56, %v3848_v28  ;;  %v1384_v45 = vsel %vm1376_vm14, %v3851_v26, %v3850_v2  ;;  %v3852_v40 = vld [vmem:[#allocation44_spill] sm:$0xff]  ;;  %v1121_v56 = vcvt.f32.s32 %v3196_v53  ;;  %v3871_v53 = vld [vmem:[#allocation25_spill] sm:$0xff] }
 0x468   : > { %v1363_v27 = vmul.f32 %v1992_v18, %v3161_v20  ;;  %v1340_v31 = vpop.xlane.xlu0 %1339  ;;  %1394 = vxpose.xlu0.b32.cont [2/16] (narrow) %v1378_v46, 8  ;;  %v1994_v23 = vpop.eup %1993  ;;  %v3853_v18 = vld [vmem:[#allocation17_spill] sm:$0xff]  ;;  %v3854_v46 = vld [vmem:[#allocation47_spill] sm:$0xff] }
 0x469   : > { %2003 = vrcp.f32 %v1340_v31  ;;  %v1367_v22 = vmul.f32 %v1994_v23, %v3111_v37  ;;  %v3856_v23 = vld [vmem:[#allocation46_spill] sm:$0xff] }
 0x46a   : > { %v1492_v51 = vsel %vm463_vm0, %v1363_v27, 0.0  ;;  %v3855_v27 = vld [vmem:[#allocation18_spill] sm:$0xff] }
 0x46b   : > { %v1996_v7 = vpop.eup %1995  ;;  %v1493_v57 = vadd.f32 %v1492_v51, %v1491_v35  ;;  %v1496_v33 = vsel %vm463_vm0, %v1367_v22, 0.0  ;;  %v1385_v35 = vsel %vm1376_vm14, %v3853_v18, %v3852_v40  ;;  %v1386_v31 = vsel %vm1376_vm14, %v3855_v27, %v3854_v46  ;;  %v3857_v51 = vld [vmem:[#allocation19_spill] sm:$0xff]  ;;  %v3859_v22 = vld [vmem:[#allocation20_spill] sm:$0xff]  ;;  %v3870_v40 = vld [vmem:[#allocation34_spill] sm:$0xff] }
 0x46c   : > { %v1365_v48 = vmul.f32 %v1996_v7, %v3165_v17  ;;  %1395 = vxpose.xlu0.b32.cont [3/16] (narrow) %v1379_v25, 8  ;;  %v1998_v62 = vpop.eup %1997  ;;  %v1387_v7 = vsel %vm1376_vm14, %v3857_v51, %v3856_v23  ;;  %v3858_v25 = vld [vmem:[#allocation49_spill] sm:$0xff]  ;;  %v1122_v51 = vshll.u32 %v1121_v56, 16  ;;  %v1166_v56 = vcvt.f32.s32 %v3228_v58 }
 0x46d   : > { %v1371_v34 = vmul.f32 %v1998_v62, %v3121_v47  ;;  %v3860_v62 = vld [vmem:[#allocation48_spill] sm:$0xff] }
 0x46e   : > { %v1494_v8 = vsel %vm463_vm0, %v1365_v48, 0.0  ;;  %v1388_v48 = vsel %vm1376_vm14, %v3859_v22, %v3858_v25  ;;  %v971_v25 = vcvt.f32.s32 %v3206_v60 }
 0x46f   : > { %v2000_v20 = vpop.eup %1999  ;;  %v1495_v38 = vadd.f32 %v1494_v8, %v1493_v57  ;;  %v1500_v4 = vsel %vm463_vm0, %v1371_v34, 0.0  ;;  %v3861_v57 = vld [vmem:[#allocation21_spill] sm:$0xff]  ;;  %v3865_v34 = vld [vmem:[#allocation23_spill] sm:$0xff] }
 0x470   : > { %v1369_v50 = vmul.f32 %v2000_v20, %v3169_v21  ;;  %1396 = vxpose.xlu0.b32.cont [4/16] (narrow) %v1380_v29, 8  ;;  %v2002_v39 = vpop.eup %2001  ;;  %v1389_v8 = vsel %vm1376_vm14, %v3861_v57, %v3860_v62  ;;  %v3862_v20 = vld [vmem:[#allocation51_spill] sm:$0xff]  ;;  %v1046_v62 = vcvt.f32.s32 %v3215_v63 }
 0x471   : > { %v1497_v37 = vadd.f32 %v1496_v33, %v1495_v38  ;;  %v1375_v1 = vmul.f32 %v2002_v39, %v3844_v54  ;;  %v3863_v38 = vld [vmem:[#allocation22_spill] sm:$0xff]  ;;  %v986_v39 = vcvt.f32.s32 %v3178_v49  ;;  %v2166_v54 = vmov 0.0   ;;  %v3873_v63 = vld [vmem:[#allocation27_spill] sm:$0xff] }
 0x472   : > { %v1498_v17 = vsel %vm463_vm0, %v1369_v50, 0.0  ;;  %v1390_v29 = vsel %vm1376_vm14, %v3863_v38, %v3862_v20  ;;  %v3864_v33 = vld [vmem:[#allocation50_spill] sm:$0xff]  ;;  %v1771_v61 = vsel %vm794_vm12, 1.0, %v2166_v54  ;;  %v1764_v23 = vsel %vm787_vm7, 1.0, %v2166_v54 }
 0x473   : > { %v2004_v11 = vpop.eup %2003  ;;  %v1499_v3 = vadd.f32 %v1498_v17, %v1497_v37  ;;  %v1504_v0 = vsel %vm463_vm0, %v1375_v1, 0.0  ;;  %v1391_v50 = vsel %vm1376_vm14, %v3865_v34, %v3864_v33  ;;  %v3866_v37 = vld [vmem:[#allocation52_spill] sm:$0xff]  ;;  %v987_v32 = vshll.u32 %v986_v39, 16  ;;  %v3869_v1 = vld [vmem:[#allocation26_spill] sm:$0xff] }
 0x474   : > { %v1373_v5 = vmul.f32 %v2004_v11, %v3845_v41  ;;  %1397 = vxpose.xlu0.b32.cont [5/16] (narrow) %v1381_v59, 8  ;;  %v3867_v17 = vld [vmem:[#allocation24_spill] sm:$0xff]  ;;  %v1763_v41 = vsel %vm786_vm4, 1.0, %v2166_v54 }
 0x475   : > { %v1501_v47 = vadd.f32 %v1500_v4, %v1499_v3  ;;  %v1392_v11 = vsel %vm1376_vm14, %v3867_v17, %v3866_v37  ;;  %v3868_v4 = vld [vmem:[#allocation12_spill] sm:$0xff]  ;;  %v1769_v37 = vsel %vm792_vm10, 1.0, %v2166_v54  ;;  %v1091_v17 = vcvt.f32.s32 %v3217_v43  ;;  %v3875_v43 = vld [vmem:[#allocation37_spill] sm:$0xff] }
 0x476   : > { %v1502_v21 = vsel %vm463_vm0, %v1373_v5, 0.0  ;;  %v3874_v39 = vld [vmem:[#allocation32_spill] sm:$0xff] }
 0x477   : > { %v1503_v30 = vadd.f32 %v1502_v21, %v1501_v47  ;;  %v1106_v47 = vcvt.f32.s32 %v3186_v36  ;;  %v1001_v21 = vcvt.f32.s32 %v3184_v9 }
 0x478   : > { %1398 = vxpose.xlu0.b32.cont [6/16] (narrow) %v1382_v55, 8 }
 0x479   : > { %v3307_v6 = vadd.f32 %v1504_v0, %v1503_v30  ;;  %v1107_v44 = vshll.u32 %v1106_v47, 16  ;;  %v1002_v28 = vshll.u32 %v1001_v21, 16  ;;  %v972_v47 = vshll.u32 %v971_v25, 16  ;;  %v3877_v25 = vld [vmem:[#allocation28_spill] sm:$0xff] }
 0x47c   : > { %1399 = vxpose.xlu0.b32.cont [7/16] (narrow) %v1383_v10, 8  ;;  %v1076_v10 = vcvt.f32.s32 %v3204_v13  ;;  %v1761_v13 = vsel %vm784_vm3, 1.0, %v2166_v54 }
 0x480   : > { %1400 = vxpose.xlu0.b32.cont [8/16] (narrow) %v1384_v45, 8  ;;  %v957_v45 = vshll.u32 %v956_v19, 16 }
 0x484   : > { %1401 = vxpose.xlu0.b32.cont [9/16] (narrow) %v1385_v35, 8 }
 0x488   : > { %1402 = vxpose.xlu0.b32.cont [10/16] (narrow) %v1386_v31, 8  ;;  %v3872_v31 = vld [vmem:[#allocation29_spill] sm:$0xff] }
 0x48c   : > { %1403 = vxpose.xlu0.b32.cont [11/16] (narrow) %v1387_v7, 8  ;;  %v1077_v7 = vshll.u32 %v1076_v10, 16 }
 0x490   : > { %1404 = vxpose.xlu0.b32.cont [12/16] (narrow) %v1388_v48, 8 }
 0x494   : > { %1405 = vxpose.xlu0.b32.cont [13/16] (narrow) %v1389_v8, 8 }
 0x498   : > { %1406 = vxpose.xlu0.b32.cont [14/16] (narrow) %v1390_v29, 8 }
 0x49c   : > { %1407 = vxpose.xlu0.b32.cont [15/16] (narrow) %v1391_v50, 8  ;;  %v1762_v50 = vsel %vm785_vm5, 1.0, %v2166_v54 }
 0x4a0   : > { %1408 = vxpose.xlu0.b32.end [16/16] (narrow) %v1392_v11, 8 }
 0x4a4   : > { %v984_v3 = vpop.xlane.xlu0 %983 }
 0x4a5   : > { %v985_v24 = vcvt.f32.s32 %v984_v3 }
 0x4a7   : > { %v3340_v59 = vadd.s32 %v987_v32, %v985_v24  ;;  %v1047_v24 = vshll.u32 %v1046_v62, 16  ;;  %v1770_v62 = vsel %vm793_vm13, 1.0, %v2166_v54 }
 0x4a9   : > { %vm1186_vm9 = vcmp.eq.s32.totalorder %v3868_v4, %v3340_v59 }
 0x4aa   : > { %v1779_v49 = vsel %vm1186_vm9, 1.0, %v2166_v54 }
 0x4ab   : > { %v3349_v5 = vadd.f32 %v1779_v49, %v1763_v41  ;;  %v1016_v41 = vcvt.f32.s32 %v3224_v15 }
 0x4b4   : > { %v1104_v30 = vpop.xlane.xlu1 %1103 }
 0x4b5   : > { %v1105_v55 = vcvt.f32.s32 %v1104_v30 }
 0x4b7   : > { %v3354_v0 = vadd.s32 %v1107_v44, %v1105_v55  ;;  %v1772_v44 = vsel %vm795_vm15, 1.0, %v2166_v54 }
 0x4b8   : > { %v954_v2 = vpop.xlane.xlu0 %953  ;;  %v999_v26 = vpop.xlane.xlu1 %998 }
 0x4b9   : > { %vm1194_vm4 = vcmp.eq.s32.totalorder %v3868_v4, %v3354_v0  ;;  %v955_v36 = vcvt.f32.s32 %v954_v2  ;;  %v1000_v9 = vcvt.f32.s32 %v999_v26 }
 0x4ba   : > { %v1787_v18 = vsel %vm1194_vm4, 1.0, %v2166_v54 }
 0x4bb   : > { %v3369_v35 = vadd.f32 %v1787_v18, %v1771_v61  ;;  %v958_v46 = vadd.s32 %v957_v45, %v955_v36  ;;  %v3371_v27 = vadd.s32 %v1002_v28, %v1000_v9  ;;  %v1092_v28 = vshll.u32 %v1091_v17, 16  ;;  %v3876_v18 = vld [vmem:[#allocation30_spill] sm:$0xff] }
 0x4bc   : > { %v1074_v22 = vpop.xlane.xlu0 %1073  ;;  %v1119_v48 = vpop.xlane.xlu1 %1118  ;;  %v1017_v36 = vshll.u32 %v1016_v41, 16 }
 0x4bd   : > { %vm1184_vm3 = vcmp.eq.s32.totalorder %v3868_v4, %v958_v46  ;;  %vm1187_vm12 = vcmp.eq.s32.totalorder %v3868_v4, %v3371_v27  ;;  %v1075_v57 = vcvt.f32.s32 %v1074_v22  ;;  %v1120_v38 = vcvt.f32.s32 %v1119_v48  ;;  %v3878_v48 = vld [vmem:[#allocation35_spill] sm:$0xff] }
 0x4be   : > { %v1777_v8 = vsel %vm1184_vm3, 1.0, %v2166_v54  ;;  %v1780_v20 = vsel %vm1187_vm12, 1.0, %v2166_v54  ;;  %v1426_v29 = vsel %vm1376_vm14, %v3871_v53, %v958_v46  ;;  %v1767_v53 = vsel %vm790_vm8, 1.0, %v2166_v54 }
 0x4bf   : > { %v1232_v33 = vadd.f32 %v1777_v8, %v1761_v13  ;;  %v1235_v60 = vadd.f32 %v1780_v20, %v1764_v23  ;;  %v3386_v34 = vadd.s32 %v1077_v7, %v1075_v57  ;;  %1442 = vxpose.xlu1.b32.start [1/16] (narrow) %v1426_v29, 8  ;;  %v3397_v11 = vadd.s32 %v1122_v51, %v1120_v38 }
 0x4c0   : > { %v1044_v3 = vpop.xlane.xlu0 %1043  ;;  %v969_v32 = vpop.xlane.xlu1 %968  ;;  %v1765_v22 = vsel %vm788_vm6, 1.0, %v2166_v54  ;;  %v1167_v57 = vshll.u32 %v1166_v56, 16  ;;  %v1428_v29 = vsel %vm1376_vm14, %v3869_v1, %v3340_v59  ;;  %v3879_v59 = vld [vmem:[#allocation38_spill] sm:$0xff] }
 0x4c1   : > { %vm1192_vm7 = vcmp.eq.s32.totalorder %v3868_v4, %v3386_v34  ;;  %v1045_v49 = vcvt.f32.s32 %v1044_v3  ;;  %vm1195_vm5 = vcmp.eq.s32.totalorder %v3868_v4, %v3397_v11  ;;  %v970_v30 = vcvt.f32.s32 %v969_v32 }
 0x4c2   : > { %v1785_v21 = vsel %vm1192_vm7, 1.0, %v2166_v54  ;;  %v1788_v15 = vsel %vm1195_vm5, 1.0, %v2166_v54  ;;  %vm3880_vm13 = vcmp.eq.s32.totalorder %v3868_v4, %v3879_v59 }
 0x4c3   : > { %v3409_v19 = vadd.f32 %v1785_v21, %v1769_v37  ;;  %v3412_v55 = vadd.s32 %v1047_v24, %v1045_v49  ;;  %v3415_v10 = vadd.f32 %v1788_v15, %v1772_v44  ;;  %v973_v2 = vadd.s32 %v972_v47, %v970_v30 }
 0x4c4   : > { %v1014_v26 = vpop.xlane.xlu0 %1013  ;;  %v1089_v45 = vpop.xlane.xlu1 %1088  ;;  %v1515_v49 = vsel %vm463_vm0, %v3349_v5, 0.0  ;;  %v1775_v1 = vsel %vm3880_vm13, 1.0, %v2166_v54  ;;  %v1429_v30 = vsel %vm1376_vm14, %v3872_v31, %v3371_v27 }
 0x4c5   : > { %vm1190_vm10 = vcmp.eq.s32.totalorder %v3868_v4, %v3412_v55  ;;  %v1015_v9 = vcvt.f32.s32 %v1014_v26  ;;  %v1090_v61 = vcvt.f32.s32 %v1089_v45  ;;  %vm1185_vm15 = vcmp.eq.s32.totalorder %v3868_v4, %v973_v2 }
 0x4c6   : > { %v1783_v13 = vsel %vm1190_vm10, 1.0, %v2166_v54  ;;  %v1427_v58 = vsel %vm1376_vm14, %v3873_v63, %v973_v2  ;;  %v1778_v23 = vsel %vm1185_vm15, 1.0, %v2166_v54  ;;  %v1512_v63 = vsel %vm463_vm0, %v1232_v33, 0.0 }
 0x4c7   : > { %v3427_v46 = vadd.f32 %v1783_v13, %v1767_v53  ;;  %v1018_v51 = vadd.s32 %v1017_v36, %v1015_v9  ;;  %v3430_v7 = vadd.s32 %v1092_v28, %v1090_v61  ;;  %1443 = vxpose.xlu1.b32.cont [2/16] (narrow) %v1427_v58, 8  ;;  %v1233_v8 = vadd.f32 %v1778_v23, %v1762_v50  ;;  %v3881_v53 = vld [vmem:[#allocation36_spill] sm:$0xff] }
 0x4c8   : > { %v1164_v20 = vpop.xlane.xlu1 %1163  ;;  %v1517_v33 = vsel %vm463_vm0, %v1235_v60, 0.0  ;;  %v1136_v28 = vcvt.f32.s32 %v3238_v16  ;;  %v1061_v26 = vcvt.f32.s32 %v3232_v14  ;;  %v1181_v61 = vcvt.f32.s32 %v3235_v42 }
 0x4c9   : > { %vm1188_vm8 = vcmp.eq.s32.totalorder %v3868_v4, %v1018_v51  ;;  %vm1193_vm11 = vcmp.eq.s32.totalorder %v3868_v4, %v3430_v7  ;;  %v1165_v38 = vcvt.f32.s32 %v1164_v20  ;;  %v1513_v37 = vsel %vm463_vm0, %v1233_v8, 0.0 }
 0x4ca   : > { %v1781_v17 = vsel %vm1188_vm8, 1.0, %v2166_v54  ;;  %v1786_v3 = vsel %vm1193_vm11, 1.0, %v2166_v54  ;;  %v1514_v50 = vadd.f32 %v1513_v37, %v1512_v63  ;;  %v1430_v2 = vsel %vm1376_vm14, %v3877_v25, %v1018_v51  ;;  %v3885_v37 = vld [vmem:[#allocation40_spill] sm:$0xff] }
 0x4cb   : > { %v1236_v32 = vadd.f32 %v1781_v17, %v1765_v22  ;;  %v3450_v24 = vadd.f32 %v1786_v3, %v1770_v62  ;;  %v3452_v41 = vadd.s32 %v1167_v57, %v1165_v38  ;;  %1444 = vxpose.xlu1.b32.cont [3/16] (narrow) %v1428_v29, 8  ;;  %v1137_v45 = vshll.u32 %v1136_v28, 16  ;;  %v3883_v62 = vld [vmem:[#allocation33_spill] sm:$0xff] }
 0x4cc   : > { %v1516_v47 = vadd.f32 %v1515_v49, %v1514_v50  ;;  %v1062_v9 = vshll.u32 %v1061_v26, 16  ;;  %vm3882_vm2 = vcmp.eq.s32.totalorder %v3868_v4, %v3881_v53  ;;  %v1182_v51 = vshll.u32 %v1181_v61, 16 }
 0x4cd   : > { %vm1198_vm6 = vcmp.eq.s32.totalorder %v3868_v4, %v3452_v41  ;;  %v1519_v5 = vsel %vm463_vm0, %v1236_v32, 0.0  ;;  %v1773_v13 = vsel %vm3882_vm2, 1.0, %v2166_v54  ;;  %v1031_v25 = vcvt.f32.s32 %v3240_v12 }
 0x4ce   : > { %v1791_v21 = vsel %vm1198_vm6, 1.0, %v2166_v54  ;;  %v1518_v44 = vadd.f32 %v1517_v33, %v1516_v47  ;;  %vm3884_vm4 = vcmp.eq.s32.totalorder %v3868_v4, %v3883_v62  ;;  %vm3886_vm12 = vcmp.eq.s32.totalorder %v3868_v4, %v3885_v37  ;;  %v3887_v33 = vld [vmem:[#allocation31_spill] sm:$0xff] }
 0x4cf   : > { %v3467_v15 = vadd.f32 %v1791_v21, %v1775_v1  ;;  %1445 = vxpose.xlu1.b32.cont [4/16] (narrow) %v1429_v30, 8  ;;  %v1768_v57 = vsel %vm3884_vm4, 1.0, %v2166_v54  ;;  %v1032_v12 = vshll.u32 %v1031_v25, 16  ;;  %v1776_v17 = vsel %vm3886_vm12, 1.0, %v2166_v54 }
 0x4d0   : > { %v3471_v56 = vadd.f32 %v1519_v5, %v1518_v44  ;;  %v1151_v1 = vcvt.f32.s32 %v3262_v52  ;;  %vm3888_vm5 = vcmp.eq.s32.totalorder %v3868_v4, %v3887_v33 }
 0x4d1   : > { %v1766_v30 = vsel %vm3888_vm5, 1.0, %v2166_v54 }
 0x4d3   : > { %1446 = vxpose.xlu1.b32.cont [5/16] (narrow) %v1430_v2, 8 }
 0x4d4   : > { %v1134_v60 = vpop.xlane.xlu1 %1133 }
 0x4d5   : > { %v1135_v27 = vcvt.f32.s32 %v1134_v60 }
 0x4d7   : > { %v3476_v31 = vadd.s32 %v1137_v45, %v1135_v27 }
 0x4d8   : > { %v1059_v36 = vpop.xlane.xlu1 %1058 }
 0x4d9   : > { %vm1196_vm1 = vcmp.eq.s32.totalorder %v3868_v4, %v3476_v31  ;;  %v1060_v16 = vcvt.f32.s32 %v1059_v36 }
 0x4da   : > { %v1789_v58 = vsel %vm1196_vm1, 1.0, %v2166_v54 }
 0x4db   : > { %v3486_v14 = vadd.f32 %v1789_v58, %v1773_v13  ;;  %v3488_v23 = vadd.s32 %v1062_v9, %v1060_v16 }
 0x4dc   : > { %v1179_v42 = vpop.xlane.xlu1 %1178 }
 0x4dd   : > { %vm1191_vm9 = vcmp.eq.s32.totalorder %v3868_v4, %v3488_v23  ;;  %v1180_v22 = vcvt.f32.s32 %v1179_v42 }
 0x4de   : > { %v1784_v8 = vsel %vm1191_vm9, 1.0, %v2166_v54 }
 0x4df   : > { %v1239_v20 = vadd.f32 %v1784_v8, %v1768_v57  ;;  %v3501_v38 = vadd.s32 %v1182_v51, %v1180_v22 }
 0x4e0   : > { %v1029_v29 = vpop.xlane.xlu1 %1028 }
 0x4e1   : > { %vm1199_vm3 = vcmp.eq.s32.totalorder %v3868_v4, %v3501_v38  ;;  %v1030_v63 = vcvt.f32.s32 %v1029_v29 }
 0x4e2   : > { %v1792_v3 = vsel %vm1199_vm3, 1.0, %v2166_v54 }
 0x4e3   : > { %v3516_v50 = vadd.f32 %v1792_v3, %v1776_v17  ;;  %v1033_v32 = vadd.s32 %v1032_v12, %v1030_v63 }
 0x4e4   : > { %v1149_v49 = vpop.xlane.xlu1 %1148  ;;  %v1409_v47 = vpop.trf.xlu0 }
 0x4e5   : > { %vm1189_vm7 = vcmp.eq.s32.totalorder %v3868_v4, %v1033_v32  ;;  %v1431_v21 = vsel %vm1376_vm14, %v3887_v33, %v1033_v32  ;;  %1425 = vst [vmem:[%s219_s11] sm:$0x3] %v1409_v47 }
 0x4e6   : > { %v1782_v44 = vsel %vm1189_vm7, 1.0, %v2166_v54  ;;  %1447 = vxpose.xlu1.b32.cont [6/16] (narrow) %v1431_v21, 8 }
 0x4e7   : > { %2048 = shalt.err (!%p2045_p2)
}
 0x4e8   : > { %s2049_s14 = scalar_lea.hbm %s3522_s5, 32  ;;  %s2053_s10 = scalar_lea.hbm %s3700_s2, 64 }
 0x4e9   : > { %p2050_p4 = scmp.ne.s32.totalorder %s3522_s5, %s2049_s14  ;;  %p2054_p9 = scmp.lt.u32.totalorder %s3522_s5, %s3700_s2 }
 0x4ea   : > { %p2055_p1 = scmp.lt.u32.totalorder %s2053_s10, %s2049_s14  ;;  %p2057_p6 = scmp.lt.u32.totalorder %s2049_s14, %s3522_s5 }
 0x4eb   : > { %p2051_p5 = pnand %p2050_p4, %p3889_p11 }
 0x4ec   : > { %p2056_p3 = por %p2055_p1, %p2054_p9 }
 0x4ed   : > { %p2052_p7 = pneg %p2051_p5 }
 0x4ee   : > { %p2058_p12 = por %p2057_p6, %p2056_p3 }
 0x4f0   : > { %p2059_p13 = pnand %p2058_p12, %p2052_p7 }
 0x4f2   : > { %2062 = shalt.err (!%p2059_p13)
}
 0x4f3   : > { %1868 = dma.vmem_to_hbm [thread:$0]  (%p3889_p11), %s3514_s12, 32, %s3522_s5, %s1554_s6   ;;  %v1237_v52 = vadd.f32 %v1782_v44, %v1766_v30  ;;  %v1150_v5 = vcvt.f32.s32 %v1149_v49  ;;  %v1152_v28 = vshll.u32 %v1151_v1, 16  ;;  %v1432_v60 = vsel %vm1376_vm14, %v3876_v18, %v3412_v55 }
 0x4f4   : > { %1448 = vxpose.xlu1.b32.cont [7/16] (narrow) %v1432_v60, 8  ;;  %v1523_v45 = vsel %vm463_vm0, %v3427_v46, 0.0  ;;  %v1525_v9 = vsel %vm463_vm0, %v1239_v20, 0.0  ;;  %v1433_v61 = vsel %vm1376_vm14, %v3883_v62, %v3488_v23  ;;  %v1527_v13 = vsel %vm463_vm0, %v3409_v19, 0.0  ;;  %v3890_v19 = vld [vmem:[#allocation39_spill] sm:$0xff]  ;;  %s233_s12 = scalar_lea.vmem [#allocation8], %s3491_s25  ;;  %s3622_s22 = scalar_lea.hbm %s3701_s3, %s3505_s30 }
 0x4f5   : > { %v1521_v2 = vsel %vm463_vm0, %v1237_v52, 0.0  ;;  %v1153_v27 = vadd.s32 %v1152_v28, %v1150_v5  ;;  %v1529_v18 = vsel %vm463_vm0, %v3450_v24, 0.0  ;;  %v1434_v46 = vsel %vm1376_vm14, %v3874_v39, %v3386_v34  ;;  %s226_s26 = scalar_lea.vmem [#allocation6], %s3491_s25  ;;  %s1558_s6 = sand.u32 1, %s2216_s19  }
 0x4f6   : > { %v1522_v26 = vadd.f32 %v1521_v2, %v3471_v56  ;;  %v1531_v23 = vsel %vm463_vm0, %v3369_v35, 0.0  ;;  %vm3891_vm15 = vcmp.eq.s32.totalorder %v3868_v4, %v3890_v19  ;;  %v1533_v24 = vsel %vm463_vm0, %v3415_v10, 0.0  ;;  %s1590_s5 = sshll.u32 %s226_s26, 4  ;;  %s1603_s7 = sshll.u32 %s233_s12, 4  ;;  %s3616_s5 = int_to_ptr.vmem [resolvable:$true] %s1590_s5  ;;  %s3630_s7 = int_to_ptr.vmem [resolvable:$true] %s1603_s7 }
 0x4f7   : > { %vm1197_vm10 = vcmp.eq.s32.totalorder %v3868_v4, %v1153_v27  ;;  %v1774_v42 = vsel %vm3891_vm15, 1.0, %v2166_v54  ;;  %v1435_v34 = vsel %vm1376_vm14, %v3878_v48, %v3430_v7  ;;  %v1506_v39 = vrot.slane %v3307_v6, 4  ;;  %s3628_s8 = scalar_lea.hbm %s3702_s4, %s3505_s30  ;;  %s3632_s19 = scalar_lea.sflag [#allocation7], %s1558_s6 }
 0x4f8   : > { %v1524_v36 = vadd.f32 %v1523_v45, %v1522_v26  ;;  %1449 = vxpose.xlu1.b32.cont [8/16] (narrow) %v1433_v61, 8  ;;  %v1790_v58 = vsel %vm1197_vm10, 1.0, %v2166_v54  ;;  %v1535_v35 = vsel %vm463_vm0, %v3486_v14, 0.0  ;;  %v1436_v54 = vsel %vm1376_vm14, %v3870_v40, %v3354_v0  ;;  %s2063_s25 = scalar_lea.vmem %s3616_s5, 32  ;;  %s2168_s10 = smov [#allocation6]  }
 0x4f9   : > { %v1245_v25 = vadd.f32 %v1790_v58, %v1774_v42  ;;  %v1507_v10 = vadd.f32 %v1506_v39, %v3307_v6  ;;  %v1539_v7 = vsel %vm463_vm0, %v3467_v15, 0.0  ;;  %v1541_v8 = vsel %vm463_vm0, %v3516_v50, 0.0  ;;  %p2064_p8 = scmp.ne.s32.totalorder %s3616_s5, %s2063_s25  ;;  %s2067_s11 = sshll.u32 %s2168_s10, 4  ;;  %s2068_s11 = int_to_ptr.vmem [resolvable:$false] %s2067_s11 }
 0x4fa   : > { %v1526_v16 = vadd.f32 %v1525_v9, %v1524_v36  ;;  %v1437_v14 = vsel %vm1376_vm14, %v3875_v43, %v3397_v11  ;;  %v1438_v6 = vsel %vm1376_vm14, %v3881_v53, %v3476_v31  ;;  %v1439_v63 = vsel %vm1376_vm14, %v3890_v19, %v1153_v27  ;;  %s2069_s29 = scalar_lea.vmem %s2068_s11, 64  ;;  %p2070_p2 = scmp.lt.s32.totalorder %s3616_s5, %s2068_s11 }
 0x4fb   : > { %v1537_v4 = vsel %vm463_vm0, %v1245_v25, 0.0  ;;  %v1508_v29 = vrot.slane %v1507_v10, 2  ;;  %v1440_v3 = vsel %vm1376_vm14, %v3879_v59, %v3452_v41  ;;  %vm1549_vm8 = vcmask 1040384   ;;  %p2065_p10 = pnand %p2064_p8, %p3889_p11  ;;  %p2071_p4 = scmp.lt.s32.totalorder %s2069_s29, %s2063_s25 }
 0x4fc   : > { %v1528_v55 = vadd.f32 %v1527_v13, %v1526_v16  ;;  %1450 = vxpose.xlu1.b32.cont [9/16] (narrow) %v1434_v46, 8  ;;  %v1441_v32 = vsel %vm1376_vm14, %v3885_v37, %v3501_v38 }
 0x4fd   : > { %v1509_v40 = vadd.f32 %v1508_v29, %v1507_v10  ;;  %p2066_p0 = pneg %p2065_p10  ;;  %p2072_p5 = por %p2071_p4, %p2070_p2 }
 0x4fe   : > { %v1530_v56 = vadd.f32 %v1529_v18, %v1528_v55 }
 0x4ff   : > { %v1510_v11 = vrot.slane %v1509_v40, 1  ;;  %p2073_p7 = pnand %p2072_p5, %p2066_p0 }
 0x500   : > { %v1532_v51 = vadd.f32 %v1531_v23, %v1530_v56  ;;  %1451 = vxpose.xlu1.b32.cont [10/16] (narrow) %v1435_v34, 8 }
 0x501   : > { %v1511_v31 = vadd.f32 %v1510_v11, %v1509_v40 }
 0x502   : > { %v1534_v22 = vadd.f32 %v1533_v24, %v1532_v51 }
 0x504   : > { %v1536_v62 = vadd.f32 %v1535_v35, %v1534_v22  ;;  %1452 = vxpose.xlu1.b32.cont [11/16] (narrow) %v1436_v54, 8 }
 0x506   : > { %v1538_v57 = vadd.f32 %v1537_v4, %v1536_v62 }
 0x508   : > { %v1540_v48 = vadd.f32 %v1539_v7, %v1538_v57  ;;  %1453 = vxpose.xlu1.b32.cont [12/16] (narrow) %v1437_v14, 8 }
 0x50a   : > { %v1542_v20 = vadd.f32 %v1541_v8, %v1540_v48 }
 0x50c   : > { %v1543_v12 = vrot.slane %v1542_v20, 4  ;;  %1454 = vxpose.xlu1.b32.cont [13/16] (narrow) %v1438_v6, 8 }
 0x50e   : > { %v1544_v0 = vadd.f32 %v1543_v12, %v1542_v20 }
 0x510   : > { %v1545_v15 = vrot.slane %v1544_v0, 2  ;;  %1455 = vxpose.xlu1.b32.cont [14/16] (narrow) %v1439_v63, 8 }
 0x512   : > { %v1546_v17 = vadd.f32 %v1545_v15, %v1544_v0 }
 0x514   : > { %v1547_v43 = vrot.slane %v1546_v17, 1  ;;  %1456 = vxpose.xlu1.b32.cont [15/16] (narrow) %v1440_v3, 8 }
 0x516   : > { %v1548_v53 = vadd.f32 %v1547_v43, %v1546_v17 }
 0x518   : > { %v1550_v50 = vsel %vm1549_vm8, %v1511_v31, %v1548_v53  ;;  %1457 = vxpose.xlu1.b32.end [16/16] (narrow) %v1441_v32, 8 }
 0x519   : > { %v1551_v49 = vsel %vm463_vm0, %v1550_v50, 0.0 }
 0x51a   : > { %1552 = vst [vmem:[%s233_s12] sm:$0x3] %v1551_v49 }
 0x55c   : > { %v1458_v41 = vpop.trf.xlu1 }
 0x55d   : > { %1474 = vst [vmem:[%s226_s26] sm:$0x3] %v1458_v41 }
 0x55e   : > { %2076 = shalt.err (!%p2073_p7)
}
 0x55f   : > { %s2077_s30 = scalar_lea.hbm %s3622_s22, 32  ;;  %s2081_s6 = scalar_lea.hbm %s3701_s3, 64 }
 0x560   : > { %p2078_p9 = scmp.ne.s32.totalorder %s3622_s22, %s2077_s30  ;;  %p2082_p6 = scmp.lt.u32.totalorder %s3622_s22, %s3701_s3 }
 0x561   : > { %p2083_p12 = scmp.lt.u32.totalorder %s2081_s6, %s2077_s30  ;;  %p2085_p8 = scmp.lt.u32.totalorder %s2077_s30, %s3622_s22 }
 0x562   : > { %p2079_p1 = pnand %p2078_p9, %p3889_p11 }
 0x563   : > { %p2084_p13 = por %p2083_p12, %p2082_p6 }
 0x564   : > { %p2080_p3 = pneg %p2079_p1 }
 0x565   : > { %p2086_p10 = por %p2085_p8, %p2084_p13 }
 0x567   : > { %p2087_p0 = pnand %p2086_p10, %p2080_p3 }
 0x569   : > { %2090 = shalt.err (!%p2087_p0)
}
 0x56a   : > { %1869 = dma.vmem_to_hbm [thread:$0]  (%p3889_p11), %s3616_s5, 32, %s3622_s22, %s3632_s19  }
 0x56b   : > { %s2091_s14 = scalar_lea.vmem %s3630_s7, 32  ;;  %s2169_s23 = smov [#allocation8]  }
 0x56c   : > { %p2092_p2 = scmp.ne.s32.totalorder %s3630_s7, %s2091_s14  ;;  %s2095_s25 = sshll.u32 %s2169_s23, 4  ;;  %s2096_s25 = int_to_ptr.vmem [resolvable:$false] %s2095_s25 }
 0x56d   : > { %s2097_s10 = scalar_lea.vmem %s2096_s25, 64  ;;  %p2098_p7 = scmp.lt.s32.totalorder %s3630_s7, %s2096_s25 }
 0x56e   : > { %p2093_p4 = pnand %p2092_p2, %p3889_p11  ;;  %p2099_p9 = scmp.lt.s32.totalorder %s2097_s10, %s2091_s14 }
 0x570   : > { %p2094_p5 = pneg %p2093_p4  ;;  %p2100_p1 = por %p2099_p9, %p2098_p7 }
 0x572   : > { %p2101_p3 = pnand %p2100_p1, %p2094_p5 }
 0x574   : > { %2104 = shalt.err (!%p2101_p3)
}
 0x575   : > { %s2105_s5 = scalar_lea.hbm %s3628_s8, 32  ;;  %s2109_s29 = scalar_lea.hbm %s3702_s4, 64 }
 0x576   : > { %p2106_p6 = scmp.ne.s32.totalorder %s3628_s8, %s2105_s5  ;;  %p2110_p8 = scmp.lt.u32.totalorder %s3628_s8, %s3702_s4 }
 0x577   : > { %p2111_p10 = scmp.lt.u32.totalorder %s2109_s29, %s2105_s5  ;;  %p2113_p2 = scmp.lt.u32.totalorder %s2105_s5, %s3628_s8 }
 0x578   : > { %p2107_p12 = pnand %p2106_p6, %p3889_p11 }
 0x579   : > { %p2112_p0 = por %p2111_p10, %p2110_p8 }
 0x57a   : > { %p2108_p13 = pneg %p2107_p12 }
 0x57b   : > { %p2114_p4 = por %p2113_p2, %p2112_p0 }
 0x57d   : > { %p2115_p5 = pnand %p2114_p4, %p2108_p13 }
 0x57f   : > { %2118 = shalt.err (!%p2115_p5)
}
 0x580   : > { %1870 = dma.vmem_to_hbm [thread:$0]  (%p3889_p11), %s3630_s7, 32, %s3628_s8, %s3632_s19  }
 0x581 PF: > { %s1615_s26 = sand.u32 1, %s2149_s15   ;;  %p3892_p7 = scmp.ne.s32.totalorder %s3785_s28, 0 }
 0x582   : > { %p3893_p9 = scmp.ge.s32.totalorder %s2161_s18, 2  ;;  %s1616_s6 = scalar_lea.sflag [#allocation4], %s1615_s26 }
 0x584   : > { %p1879_p1 = pnand %p3893_p9, %p3892_p7 }
 0x586   : > { %2140 = dma.done.wait (!%p1879_p1), %s1616_s6, 32  }
 0x587   : > { %2142 = vsyncadd (!%p1879_p1), %s1616_s6, 4294967264  ;;  %s1624_s9 = sand.u32 1, %s1734_s20  }
 0x588   : > { %s1625_s13 = scalar_lea.sflag [#allocation7], %s1624_s9 }
 0x589   : > { %2144 = dma.done.wait (!%p1879_p1), %s1625_s13, 64  }
 0x58a   : > { %2146 = vsyncadd (!%p1879_p1), %s1625_s13, 4294967232  ;;  %p21_p11 = scmp.ge.s32.totalorder %s2220_s21, 4   ;;  %s3894_s15 = smov %s2153_s16 }
 0x58b   : > { %s3895_s16 = smov %s2157_s17  ;;  %s3896_s17 = smov %s2232_s24 }
 0x58c   : > { %s3897_s18 = smov %s2220_s21  ;;  %23 = sbr.rel (!%p21_p11) target bundleno = 7 (0x7), region = 105 }
 0x593   :  { %1639 = vsyncpa [#allocation3], 1 }
 0x594   :  { %1641 = vsyncpa [#allocation3 + $0x1], 1 }
 0x595   :  { %1642 = vsyncpa [#allocation4], 1 }
 0x596   :  { %1644 = vsyncpa [#allocation4 + $0x1], 1 }
 0x597   :  { %1645 = vsyncpa [#allocation7], 1 }
 0x598   :  { %1647 = vsyncpa [#allocation7 + $0x1], 1 }

</bundles_post_ra>
